<compile_context>
chip_gen: v7x
topology: tpu7x:2x2x1
jax: 0.10.0
libtpu: 0.0.40
codegen_flags: <defaults>
</compile_context>

<pallas_src>
import jax
import jax.numpy as jnp
from jax.experimental import pallas as pl
from jax.experimental.pallas import tpu as pltpu

H = 10      # hidden width of both MLPs (matches nn.LazyLinear(10))
HP = 16     # H rounded up to the sublane granule (8)
HGP = 128   # lane-padded width of the pooled block (one full lane tile -> aligned transpose)


def _deepset_kernel(x_ref, w1_ref, b1_ref, w2_ref, b2_ref, w3_ref, gwt_ref, gb_ref, out_ref):
    # ---- element MLP on all N set elements at once (block-diagonal weights, lane-dense) ----
    h = jnp.tanh(jnp.dot(x_ref[...], w1_ref[...], preferred_element_type=jnp.float32)
                 + b1_ref[...])
    h = jnp.tanh(jnp.dot(h, w2_ref[...], preferred_element_type=jnp.float32)
                 + b2_ref[...])

    # ---- permutation-invariant pooling fused with the linear third element layer:
    #      sum_n(h_n @ W3 + b3) == h @ [W3; W3; ...; W3] + N*b3   (N*b3 added below) ----
    p = jnp.dot(h, w3_ref[...], preferred_element_type=jnp.float32)          # (TB, HGP)

    # ---- global MLP, transposed: hidden on sublanes, batch on lanes (lane-dense) ----
    hg = gwt_ref.shape[-1]
    pt = p.T[:hg, :] + gb_ref[:, 0:1]                                        # (HG, TB), + N*b3
    g = jnp.tanh(jnp.dot(gwt_ref[0], pt, preferred_element_type=jnp.float32) + gb_ref[:, 1:2])
    g = jnp.tanh(jnp.dot(gwt_ref[1], g, preferred_element_type=jnp.float32) + gb_ref[:, 2:3])
    v = jnp.dot(gwt_ref[2], g, preferred_element_type=jnp.float32) + gb_ref[:, 3:4]  # (HG, TB)

    # lane-dense output: row 0 of v is value^T for this batch tile -> unmasked 128-wide stores.
    out_ref[...] = v[0:1, :].astype(out_ref.dtype)


def pack_params(params, n_set):
    """Pack the 12 (in,out)-layout weights/biases into lane-dense, zero-padded slabs."""
    (w1, b1, w2, b2, w3, b3, g1, c1, g2, c2, g3, c3) = params
    N = n_set
    F = jnp.asarray(w1).shape[0]

    def pad2(w, rows, cols):
        w = jnp.asarray(w, jnp.float32)
        r, c = w.shape
        return jnp.zeros((rows, cols), jnp.float32).at[:r, :c].set(w)

    def pad1(b, cols):
        b = jnp.asarray(b, jnp.float32).reshape(-1)
        return jnp.zeros((cols,), jnp.float32).at[: b.shape[0]].set(b)

    eye_n = jnp.eye(N, dtype=jnp.float32)
    w1blk = jnp.kron(eye_n, pad2(w1, F, HP))              # (N*F,  N*HP) block-diagonal
    w2blk = jnp.kron(eye_n, pad2(w2, HP, HP))             # (N*HP, N*HP) block-diagonal
    b1blk = jnp.tile(pad1(b1, HP), N).reshape(1, N * HP)  # (1, N*HP)
    b2blk = jnp.tile(pad1(b2, HP), N).reshape(1, N * HP)

    # pooling + linear third element layer fused into one (N*HP, HGP) matmul.
    w3pool = jnp.tile(pad2(w3, HP, HGP), (N, 1))          # (N*HP, HGP)

    # transposed global-MLP weights (hidden on sublanes, batch on lanes).
    gwt = jnp.stack([pad2(jnp.asarray(g1, jnp.float32).T, HP, HP),
                     pad2(jnp.asarray(g2, jnp.float32).T, HP, HP),
                     pad2(jnp.asarray(g3, jnp.float32).T, HP, HP)])          # (3, HP, HP)

    # bias columns [N*b3, c1, c2, c3]; each column broadcasts along the batch lanes.
    gb = jnp.stack([N * pad1(b3, HP), pad1(c1, HP), pad1(c2, HP), pad1(c3, HP)], axis=1)  # (HP, 4)

    return w1blk, b1blk, w2blk, b2blk, w3pool, gwt, gb


def deepset_value(states, params, *, batch_tile=512, stream_bf16=False):
    """states: (B, N, F) float32.  Returns (B,) float32."""
    B, N, F = states.shape
    batch_tile = min(batch_tile, B)
    assert B % batch_tile == 0, "B must be divisible by batch_tile"
    # Note: batch_tile should be a multiple of 128 for unmasked lane-dense output stores;
    # a small B (< 128) falls back to masked partial stores (perf hazard only, not numerics).

    w1blk, b1blk, w2blk, b2blk, w3pool, gwt, gb = pack_params(params, N)

    x2d = states.reshape(B, N * F)                        # lane-dense input rows
    if stream_bf16:
        # TODO(synk): keep f32 on v5e (no bf16 vector units); bf16 streaming is the final
        # ~2x only once the kernel is HBM-bound (v6e/v7x).
        x2d = x2d.astype(jnp.bfloat16)
        w1blk = w1blk.astype(jnp.bfloat16)                # bf16 x bf16 MXU, f32 accumulation

    out_row = pl.pallas_call(
        _deepset_kernel,
        out_shape=jax.ShapeDtypeStruct((1, B), jnp.float32),
        grid_spec=pltpu.PrefetchScalarGridSpec(
            num_scalar_prefetch=0,
            grid=(B // batch_tile,),
            in_specs=[
                pl.BlockSpec((batch_tile, N * F), lambda i: (i, 0)),
                # constant index_maps -> weight/bias slabs are DMA'd once, not per step.
                pl.BlockSpec(w1blk.shape, lambda i: (0, 0)),
                pl.BlockSpec(b1blk.shape, lambda i: (0, 0)),
                pl.BlockSpec(w2blk.shape, lambda i: (0, 0)),
                pl.BlockSpec(b2blk.shape, lambda i: (0, 0)),
                pl.BlockSpec(w3pool.shape, lambda i: (0, 0)),
                pl.BlockSpec(gwt.shape, lambda i: (0, 0, 0)),
                pl.BlockSpec(gb.shape, lambda i: (0, 0)),
            ],
            out_specs=pl.BlockSpec((1, batch_tile), lambda i: (0, i)),
        ),
        compiler_params=pltpu.CompilerParams(dimension_semantics=("parallel",)),
    )(x2d, w1blk, b1blk, w2blk, b2blk, w3pool, gwt, gb)

    return out_row.reshape(B)   # == squeeze(-1) of the (B, 1) result


def init_params(key, in_features):
    """Deterministic init matching the PyTorch layer shapes.
       Linear weights stored as (in, out); biases as (1, out)."""
    def linear(k, fan_in, fan_out):
        kw, kb = jax.random.split(k)
        bound = 1.0 / jnp.sqrt(jnp.float32(fan_in))
        w = jax.random.uniform(kw, (fan_in, fan_out), jnp.float32, -bound, bound)
        b = jax.random.uniform(kb, (1, fan_out), jnp.float32, -bound, bound)
        return w, b

    keys = jax.random.split(key, 6)
    w1, b1 = linear(keys[0], in_features, H)   # elem: F -> 10 -> 10 -> 10
    w2, b2 = linear(keys[1], H, H)
    w3, b3 = linear(keys[2], H, H)
    g1, c1 = linear(keys[3], H, H)             # glob: 10 -> 10 -> 10 -> 1
    g2, c2 = linear(keys[4], H, H)
    g3, c3 = linear(keys[5], H, 1)
    return (w1, b1, w2, b2, w3, b3, g1, c1, g2, c2, g3, c3)


def deepset_value_ref(states, params):
    """Pure-JAX reference mirroring the PyTorch forward."""
    (w1, b1, w2, b2, w3, b3, g1, c1, g2, c2, g3, c3) = params
    h = jnp.tanh(states @ w1 + b1)
    h = jnp.tanh(h @ w2 + b2)
    h = h @ w3 + b3
    pooled = h.sum(axis=-2)
    g = jnp.tanh(pooled @ g1 + c1)
    g = jnp.tanh(g @ g2 + c2)
    v = g @ g3 + c3
    return jnp.squeeze(v, axis=-1)


if __name__ == "__main__":
    key = jax.random.PRNGKey(0)
    k_x, k_p = jax.random.split(key)

    # Small but pipeline-exercising demo: 8 grid steps at batch_tile=512
    # (>=4 steps per TensorCore on v7x).  N*F = 128 -> one full lane tile per row.
    B, N, F = 4096, 16, 8
    states = jax.random.normal(k_x, (B, N, F), dtype=jnp.float32)
    params = init_params(k_p, F)

    out = jax.block_until_ready(deepset_value(states, params, batch_tile=512))
    ref = deepset_value_ref(states, params)
    assert out.shape == (B,)
    # commuting W3 past the pooling sum changes float summation order slightly
    assert jnp.allclose(out, ref, atol=1e-4, rtol=1e-4), float(jnp.max(jnp.abs(out - ref)))

    # bf16-streamed states (halves HBM traffic of the dominant input).  Compare against a
    # reference with identically bf16-quantized first-layer inputs: downstream math is f32
    # in both, so only summation order differs.
    out_bf = jax.block_until_ready(
        deepset_value(states, params, batch_tile=512, stream_bf16=True))
    q = lambda a: jnp.asarray(a, jnp.float32).astype(jnp.bfloat16).astype(jnp.float32)
    ref_bf = deepset_value_ref(q(states), (q(params[0]),) + tuple(params[1:]))
    assert jnp.allclose(out_bf, ref_bf, atol=2e-3, rtol=2e-3), \
        float(jnp.max(jnp.abs(out_bf - ref_bf)))

    print("KERNEL_OK")
</pallas_src>

<mosaic_0001>
module attributes {stable_mosaic.version = 11 : i64} {
  func.func @_deepset_kernel(%arg0: i32, %arg1: memref<512x128xf32, #tpu.memory_space<vmem>>, %arg2: memref<128x256xf32, #tpu.memory_space<vmem>>, %arg3: memref<1x256xf32, #tpu.memory_space<vmem>>, %arg4: memref<256x256xf32, #tpu.memory_space<vmem>>, %arg5: memref<1x256xf32, #tpu.memory_space<vmem>>, %arg6: memref<256x128xf32, #tpu.memory_space<vmem>>, %arg7: memref<3x16x16xf32, #tpu.memory_space<vmem>>, %arg8: memref<16x4xf32, #tpu.memory_space<vmem>>, %arg9: memref<1x512xf32, #tpu.memory_space<vmem>>) attributes {dimension_semantics = [#tpu.dimension_semantics<parallel>], iteration_bounds = array<i64: 8>, scalar_prefetch = 0 : i64, scratch_operands = 0 : i64, tpu.core_type = #tpu.core_type<tc>, window_params = [{transform_indices = @transform_0, window_bounds = array<i64: 512, 128>}, {pipeline_mode = #tpu.pipeline_mode<synchronous>, transform_indices = @transform_1, window_bounds = array<i64: 128, 256>}, {pipeline_mode = #tpu.pipeline_mode<synchronous>, transform_indices = @transform_2, window_bounds = array<i64: 1, 256>}, {pipeline_mode = #tpu.pipeline_mode<synchronous>, transform_indices = @transform_3, window_bounds = array<i64: 256, 256>}, {pipeline_mode = #tpu.pipeline_mode<synchronous>, transform_indices = @transform_4, window_bounds = array<i64: 1, 256>}, {pipeline_mode = #tpu.pipeline_mode<synchronous>, transform_indices = @transform_5, window_bounds = array<i64: 256, 128>}, {pipeline_mode = #tpu.pipeline_mode<synchronous>, transform_indices = @transform_6, window_bounds = array<i64: 3, 16, 16>}, {pipeline_mode = #tpu.pipeline_mode<synchronous>, transform_indices = @transform_7, window_bounds = array<i64: 16, 4>}, {transform_indices = @transform_8, window_bounds = array<i64: 1, 512>}]} {
    %c0 = arith.constant 0 : index
    %c0_0 = arith.constant 0 : index
    %0 = vector.load %arg1[%c0, %c0_0] : memref<512x128xf32, #tpu.memory_space<vmem>>, vector<512x128xf32>
    %c0_1 = arith.constant 0 : index
    %c0_2 = arith.constant 0 : index
    %1 = vector.load %arg2[%c0_1, %c0_2] : memref<128x256xf32, #tpu.memory_space<vmem>>, vector<128x256xf32>
    %cst = arith.constant dense<0.000000e+00> : vector<512x256xf32>
    %2 = tpu.matmul %0, %1, %cst {dimension_numbers = #tpu.dot_dimension_numbers<[1], [0], [0], [1], [0, 0, 1, 1], [], []>} : vector<512x128xf32>, vector<128x256xf32>, vector<512x256xf32> -> vector<512x256xf32>
    %c0_3 = arith.constant 0 : index
    %c0_4 = arith.constant 0 : index
    %3 = vector.load %arg3[%c0_3, %c0_4] : memref<1x256xf32, #tpu.memory_space<vmem>>, vector<1x256xf32>
    %4 = vector.broadcast %3 : vector<1x256xf32> to vector<512x256xf32>
    %5 = arith.addf %2, %4 : vector<512x256xf32>
    %6 = math.tanh %5 : vector<512x256xf32>
    %c0_5 = arith.constant 0 : index
    %c0_6 = arith.constant 0 : index
    %7 = vector.load %arg4[%c0_5, %c0_6] : memref<256x256xf32, #tpu.memory_space<vmem>>, vector<256x256xf32>
    %cst_7 = arith.constant dense<0.000000e+00> : vector<512x256xf32>
    %8 = tpu.matmul %6, %7, %cst_7 {dimension_numbers = #tpu.dot_dimension_numbers<[1], [0], [0], [1], [0, 0, 1, 1], [], []>} : vector<512x256xf32>, vector<256x256xf32>, vector<512x256xf32> -> vector<512x256xf32>
    %c0_8 = arith.constant 0 : index
    %c0_9 = arith.constant 0 : index
    %9 = vector.load %arg5[%c0_8, %c0_9] : memref<1x256xf32, #tpu.memory_space<vmem>>, vector<1x256xf32>
    %10 = vector.broadcast %9 : vector<1x256xf32> to vector<512x256xf32>
    %11 = arith.addf %8, %10 : vector<512x256xf32>
    %12 = math.tanh %11 : vector<512x256xf32>
    %c0_10 = arith.constant 0 : index
    %c0_11 = arith.constant 0 : index
    %13 = vector.load %arg6[%c0_10, %c0_11] : memref<256x128xf32, #tpu.memory_space<vmem>>, vector<256x128xf32>
    %cst_12 = arith.constant dense<0.000000e+00> : vector<512x128xf32>
    %14 = tpu.matmul %12, %13, %cst_12 {dimension_numbers = #tpu.dot_dimension_numbers<[1], [0], [0], [1], [0, 0, 1, 1], [], []>} : vector<512x256xf32>, vector<256x128xf32>, vector<512x128xf32> -> vector<512x128xf32>
    %15 = tpu.transpose %14, [1, 0] : vector<512x128xf32> -> vector<128x512xf32>
    %16 = vector.extract_strided_slice %15 {offsets = [0, 0], sizes = [16, 512], strides = [1, 1]} : vector<128x512xf32> to vector<16x512xf32>
    %c0_13 = arith.constant 0 : index
    %c0_14 = arith.constant 0 : index
    %17 = vector.load %arg8[%c0_13, %c0_14] : memref<16x4xf32, #tpu.memory_space<vmem>>, vector<16x1xf32>
    %18 = vector.broadcast %17 : vector<16x1xf32> to vector<16x512xf32>
    %19 = arith.addf %16, %18 : vector<16x512xf32>
    %c0_15 = arith.constant 0 : index
    %c0_16 = arith.constant 0 : index
    %c0_17 = arith.constant 0 : index
    %20 = vector.load %arg7[%c0_15, %c0_16, %c0_17] : memref<3x16x16xf32, #tpu.memory_space<vmem>>, vector<1x16x16xf32>
    %21 = vector.shape_cast %20 : vector<1x16x16xf32> to vector<16x16xf32>
    %cst_18 = arith.constant dense<0.000000e+00> : vector<16x512xf32>
    %22 = tpu.matmul %21, %19, %cst_18 {dimension_numbers = #tpu.dot_dimension_numbers<[1], [0], [0], [1], [0, 0, 1, 1], [], []>} : vector<16x16xf32>, vector<16x512xf32>, vector<16x512xf32> -> vector<16x512xf32>
    %c0_19 = arith.constant 0 : index
    %c1 = arith.constant 1 : index
    %23 = vector.load %arg8[%c0_19, %c1] : memref<16x4xf32, #tpu.memory_space<vmem>>, vector<16x1xf32>
    %24 = vector.broadcast %23 : vector<16x1xf32> to vector<16x512xf32>
    %25 = arith.addf %22, %24 : vector<16x512xf32>
    %26 = math.tanh %25 : vector<16x512xf32>
    %c1_20 = arith.constant 1 : index
    %c0_21 = arith.constant 0 : index
    %c0_22 = arith.constant 0 : index
    %27 = vector.load %arg7[%c1_20, %c0_21, %c0_22] : memref<3x16x16xf32, #tpu.memory_space<vmem>>, vector<1x16x16xf32>
    %28 = vector.shape_cast %27 : vector<1x16x16xf32> to vector<16x16xf32>
    %cst_23 = arith.constant dense<0.000000e+00> : vector<16x512xf32>
    %29 = tpu.matmul %28, %26, %cst_23 {dimension_numbers = #tpu.dot_dimension_numbers<[1], [0], [0], [1], [0, 0, 1, 1], [], []>} : vector<16x16xf32>, vector<16x512xf32>, vector<16x512xf32> -> vector<16x512xf32>
    %c0_24 = arith.constant 0 : index
    %c2 = arith.constant 2 : index
    %30 = vector.load %arg8[%c0_24, %c2] : memref<16x4xf32, #tpu.memory_space<vmem>>, vector<16x1xf32>
    %31 = vector.broadcast %30 : vector<16x1xf32> to vector<16x512xf32>
    %32 = arith.addf %29, %31 : vector<16x512xf32>
    %33 = math.tanh %32 : vector<16x512xf32>
    %c2_25 = arith.constant 2 : index
    %c0_26 = arith.constant 0 : index
    %c0_27 = arith.constant 0 : index
    %34 = vector.load %arg7[%c2_25, %c0_26, %c0_27] : memref<3x16x16xf32, #tpu.memory_space<vmem>>, vector<1x16x16xf32>
    %35 = vector.shape_cast %34 : vector<1x16x16xf32> to vector<16x16xf32>
    %cst_28 = arith.constant dense<0.000000e+00> : vector<16x512xf32>
    %36 = tpu.matmul %35, %33, %cst_28 {dimension_numbers = #tpu.dot_dimension_numbers<[1], [0], [0], [1], [0, 0, 1, 1], [], []>} : vector<16x16xf32>, vector<16x512xf32>, vector<16x512xf32> -> vector<16x512xf32>
    %c0_29 = arith.constant 0 : index
    %c3 = arith.constant 3 : index
    %37 = vector.load %arg8[%c0_29, %c3] : memref<16x4xf32, #tpu.memory_space<vmem>>, vector<16x1xf32>
    %38 = vector.broadcast %37 : vector<16x1xf32> to vector<16x512xf32>
    %39 = arith.addf %36, %38 : vector<16x512xf32>
    %40 = vector.extract_strided_slice %39 {offsets = [0, 0], sizes = [1, 512], strides = [1, 1]} : vector<16x512xf32> to vector<1x512xf32>
    %c0_30 = arith.constant 0 : index
    %c0_31 = arith.constant 0 : index
    %41 = vector.load %arg9[%c0_30, %c0_31] : memref<1x512xf32, #tpu.memory_space<vmem>>, vector<1x512xf32>
    tpu.vector_store %arg9[%c0_30, %c0_31], %40 {strides = array<i32>} : memref<1x512xf32, #tpu.memory_space<vmem>>, vector<1x512xf32>,
    return
  }
  func.func @transform_0(%arg0: i32) -> (i32, i32) {
    %c0_i32 = arith.constant 0 : i32
    %c0_i32_0 = arith.constant 0 : i32
    return %arg0, %c0_i32 : i32, i32
  }
  func.func @transform_1(%arg0: i32) -> (i32, i32) {
    %c0_i32 = arith.constant 0 : i32
    %c0_i32_0 = arith.constant 0 : i32
    %c0_i32_1 = arith.constant 0 : i32
    return %c0_i32, %c0_i32_0 : i32, i32
  }
  func.func @transform_2(%arg0: i32) -> (i32, i32) {
    %c0_i32 = arith.constant 0 : i32
    %c0_i32_0 = arith.constant 0 : i32
    %c0_i32_1 = arith.constant 0 : i32
    return %c0_i32, %c0_i32_0 : i32, i32
  }
  func.func @transform_3(%arg0: i32) -> (i32, i32) {
    %c0_i32 = arith.constant 0 : i32
    %c0_i32_0 = arith.constant 0 : i32
    %c0_i32_1 = arith.constant 0 : i32
    return %c0_i32, %c0_i32_0 : i32, i32
  }
  func.func @transform_4(%arg0: i32) -> (i32, i32) {
    %c0_i32 = arith.constant 0 : i32
    %c0_i32_0 = arith.constant 0 : i32
    %c0_i32_1 = arith.constant 0 : i32
    return %c0_i32, %c0_i32_0 : i32, i32
  }
  func.func @transform_5(%arg0: i32) -> (i32, i32) {
    %c0_i32 = arith.constant 0 : i32
    %c0_i32_0 = arith.constant 0 : i32
    %c0_i32_1 = arith.constant 0 : i32
    return %c0_i32, %c0_i32_0 : i32, i32
  }
  func.func @transform_6(%arg0: i32) -> (i32, i32, i32) {
    %c0_i32 = arith.constant 0 : i32
    %c0_i32_0 = arith.constant 0 : i32
    %c0_i32_1 = arith.constant 0 : i32
    %c0_i32_2 = arith.constant 0 : i32
    return %c0_i32, %c0_i32_0, %c0_i32_1 : i32, i32, i32
  }
  func.func @transform_7(%arg0: i32) -> (i32, i32) {
    %c0_i32 = arith.constant 0 : i32
    %c0_i32_0 = arith.constant 0 : i32
    %c0_i32_1 = arith.constant 0 : i32
    return %c0_i32, %c0_i32_0 : i32, i32
  }
  func.func @transform_8(%arg0: i32) -> (i32, i32) {
    %c0_i32 = arith.constant 0 : i32
    %c0_i32_0 = arith.constant 0 : i32
    return %c0_i32, %arg0 : i32, i32
  }
}

</mosaic_0001>

<bundles_post_ra>
// kernel: tpu_custom_call.1
= control target key start
LH: loop header
LB: loop body
LE: loop exit
PB: predicated region body
PF: predicated region fallthrough
CT: control target
= control target key end

     0   :  { %s5217_s0 = inlined_call_operand.hbm [shape: f32[4096,128], index: 0, kind: input, shape index: {}]   ;;  %s5218_s1 = inlined_call_operand.hbm [shape: f32[128,256], index: 1, kind: input, shape index: {}]   ;;  %s5219_s2 = inlined_call_operand.hbm [shape: f32[1,256], index: 2, kind: input, shape index: {}]   ;;  %s5220_s3 = inlined_call_operand.hbm [shape: f32[256,256], index: 3, kind: input, shape index: {}]   ;;  %s5221_s4 = inlined_call_operand.hbm [shape: f32[1,256], index: 4, kind: input, shape index: {}]   ;;  %s5222_s5 = inlined_call_operand.hbm [shape: f32[256,128], index: 5, kind: input, shape index: {}]   ;;  %s5223_s6 = inlined_call_operand.hbm [shape: f32[3,16,16], index: 6, kind: input, shape index: {}]   ;;  %s5224_s7 = inlined_call_operand.vmem [shape: f32[16,4], index: 7, kind: input, shape index: {}]   ;;  %s5225_s8 = inlined_call_operand.hbm [shape: f32[1,4096], index: 8, kind: output, shape index: {}]  }
   0x1   :  { %5236 = sst [smem:[#allocation28_spill]] %s5218_s1 }
   0x2   :  { %5237 = sst [smem:[#allocation29_spill]] %s5220_s3 }
   0x3   :  { %13 = vsyncpa [#allocation3], 0 }
   0x4   :  { %15 = vsyncpa [#allocation3 + $0x1], 0 }
   0x5   :  { %16 = vsyncpa [#allocation6], 0 }
   0x6   :  { %17 = vsyncpa [#allocation9], 0 }
   0x7   :  { %18 = vsyncpa [#allocation12], 0 }
   0x8   :  { %19 = vsyncpa [#allocation4], 0 }
   0x9   :  { %21 = vsyncpa [#allocation4 + $0x1], 0  ;;  %s4248_s27 = smov 0   ;;  %s4250_s28 = smov 0  }
   0xa   :  { %s4252_s29 = smov 0   ;;  %s4254_s30 = smov 0  }
   0xb LB: > { %s4184_s9 = smov [#allocation5]   ;;  %s4269_s11 = sadd.s32 4294967295, %s4182_s30   ;;  %s4182_s30 = sphi %s4254_s30, %s5282_s30   ;;  %s4178_s29 = sphi %s4252_s29, %s5281_s29   ;;  %s4174_s28 = sphi %s4250_s28, %s5280_s28   ;;  %s4170_s27 = sphi %s4248_s27, %s5279_s27  }
   0xc   : > { %s243_s10 = sshll.u32 %s4184_s9, 4  ;;  %p3013_p0 = scmp.ge.s32.totalorder %s4182_s30, 1  ;;  %s4274_s10 = int_to_ptr.vmem [resolvable:$true] %s243_s10 }
   0xd   : > { %p5226_p1 = scmp.eq.s32.totalorder %s4269_s11, 0  ;;  %p231_p2 = scmp.lt.s32.totalorder %s4182_s30, 9 }
   0xe   : > { %s4185_s13 = smov [#allocation8]   ;;  %s4186_s16 = smov [#allocation11]  }
   0xf   : > { %p4276_p3 = pnand %p3013_p0, %p231_p2  ;;  %s267_s14 = sshll.u32 %s4185_s13, 4  ;;  %s4288_s14 = int_to_ptr.vmem [resolvable:$true] %s267_s14 }
  0x10   : > { %s291_s17 = sshll.u32 %s4186_s16, 4  ;;  %s5240_s1 = sld [smem:[#allocation28_spill]]  ;;  %s4290_s17 = int_to_ptr.vmem [resolvable:$true] %s291_s17 }
  0x11   : > { %s5238_s12 = scalar_select %p4276_p3, 1, 0 }
  0x12   : > { %p3264_p4 = pneg %p4276_p3 }
  0x14   : > { %p4284_p5 = pnand %p3264_p4, %p5226_p1 }
  0x16   : > { %s3906_s20 = scalar_lea.hbm %s5240_s1, 4096  ;;  %p4300_p7 = pneg %p4284_p5 }
  0x17   : > { %p3907_p6 = scmp.ne.s32.totalorder %s5240_s1, %s3906_s20  ;;  %p3913_p10 = scmp.lt.u32.totalorder %s3906_s20, %s5240_s1 }
  0x19   : > { %p3909_p8 = pnand %p4300_p7, %p3907_p6 }
  0x1b   : > { %p3910_p9 = pneg %p3909_p8 }
  0x1d   : > { %p3915_p11 = pnand %p3913_p10, %p3910_p9 }
  0x1f   : > { %3918 = shalt.err (!%p3915_p11)
}
  0x20   : > { %s3919_s26 = scalar_lea.vmem %s4274_s10, 4096  ;;  %p3927_p2 = scmp.lt.s32.totalorder %s4274_s10, %s4274_s10 }
  0x21   : > { %p3920_p12 = scmp.ne.s32.totalorder %s4274_s10, %s3919_s26  ;;  %p3928_p4 = scmp.lt.s32.totalorder %s3919_s26, %s3919_s26 }
  0x23   : > { %p3922_p13 = pnand %p3920_p12, %p4300_p7  ;;  %p3929_p6 = por %p3928_p4, %p3927_p2 }
  0x25   : > { %p3923_p0 = pneg %p3922_p13 }
  0x27   : > { %p3930_p8 = pnand %p3929_p6, %p3923_p0 }
  0x29   : > { %3933 = shalt.err (!%p3930_p8)
}
  0x2a   : > { %s4187_s9 = smov 256   ;;  %s4188_s13 = smov 16  }
  0x2b   : > { %3267 = dma.hbm_to_vmem [thread:$0]  (!%p4284_p5), %s5240_s1, 4096, %s4274_s10, [#allocation6], %s4187_s9, %s4187_s9, %s4188_s13  }
  0x2c   : > { %s5242_s3 = sld [smem:[#allocation29_spill]] }
  0x32   : > { %s3934_s21 = scalar_lea.hbm %s5242_s3, 8192 }
  0x33   : > { %p3935_p9 = scmp.ne.s32.totalorder %s5242_s3, %s3934_s21  ;;  %p3941_p12 = scmp.lt.u32.totalorder %s3934_s21, %s5242_s3 }
  0x35   : > { %p3937_p10 = pnand %p3935_p9, %p4300_p7 }
  0x37   : > { %p3938_p11 = pneg %p3937_p10 }
  0x39   : > { %p3943_p13 = pnand %p3941_p12, %p3938_p11 }
  0x3b   : > { %3946 = shalt.err (!%p3943_p13)
}
  0x3c   : > { %s3947_s10 = scalar_lea.vmem %s4288_s14, 8192  ;;  %p3955_p6 = scmp.lt.s32.totalorder %s4288_s14, %s4288_s14 }
  0x3d   : > { %p3948_p0 = scmp.ne.s32.totalorder %s4288_s14, %s3947_s10  ;;  %p3956_p8 = scmp.lt.s32.totalorder %s3947_s10, %s3947_s10 }
  0x3f   : > { %p3950_p2 = pnand %p3948_p0, %p4300_p7  ;;  %p3957_p9 = por %p3956_p8, %p3955_p6 }
  0x41   : > { %p3951_p4 = pneg %p3950_p2 }
  0x43   : > { %p3958_p10 = pnand %p3957_p9, %p3951_p4 }
  0x45   : > { %3961 = shalt.err (!%p3958_p10)
}
  0x46   : > { %3273 = dma.hbm_to_vmem [thread:$0]  (!%p4284_p5), %s5242_s3, 8192, %s4288_s14, [#allocation9], %s4187_s9, %s4187_s9, %s4188_s13  }
  0x47   : > { %s3962_s21 = scalar_lea.hbm %s5222_s5, 4096 }
  0x48   : > { %p3963_p11 = scmp.ne.s32.totalorder %s5222_s5, %s3962_s21  ;;  %p3969_p0 = scmp.lt.u32.totalorder %s3962_s21, %s5222_s5 }
  0x4a   : > { %p3965_p12 = pnand %p3963_p11, %p4300_p7 }
  0x4c   : > { %p3966_p13 = pneg %p3965_p12 }
  0x4e   : > { %p3971_p2 = pnand %p3969_p0, %p3966_p13 }
  0x50   : > { %3974 = shalt.err (!%p3971_p2)
}
  0x51   : > { %s3975_s14 = scalar_lea.vmem %s4290_s17, 4096  ;;  %p3983_p9 = scmp.lt.s32.totalorder %s4290_s17, %s4290_s17 }
  0x52   : > { %p3976_p4 = scmp.ne.s32.totalorder %s4290_s17, %s3975_s14  ;;  %p3984_p10 = scmp.lt.s32.totalorder %s3975_s14, %s3975_s14 }
  0x54   : > { %p3978_p6 = pnand %p3976_p4, %p4300_p7  ;;  %p3985_p11 = por %p3984_p10, %p3983_p9 }
  0x56   : > { %p3979_p8 = pneg %p3978_p6 }
  0x58   : > { %p3986_p12 = pnand %p3985_p11, %p3979_p8 }
  0x5a   : > { %3989 = shalt.err (!%p3986_p12)
}
  0x5b   : > { %s4189_s9 = smov 128   ;;  %s4190_s13 = smov 8  }
  0x5c   : > { %3279 = dma.hbm_to_vmem [thread:$0]  (!%p4284_p5), %s5222_s5, 4096, %s4290_s17, [#allocation12], %s4189_s9, %s4189_s9, %s4190_s13  }
  0x5d   : > { %s4191_s18 = smov [#allocation7]   ;;  %s4192_s20 = smov [#allocation10]  }
  0x5e   : > { %s257_s19 = sshll.u32 %s4191_s18, 4  ;;  %s281_s21 = sshll.u32 %s4192_s20, 4  ;;  %s258_s19 = int_to_ptr.vmem [resolvable:$true] %s257_s19  ;;  %s282_s21 = int_to_ptr.vmem [resolvable:$true] %s281_s21 }
  0x5f   : > { %s3990_s25 = scalar_lea.hbm %s5219_s2, 32 }
  0x60   : > { %p3991_p13 = scmp.ne.s32.totalorder %s5219_s2, %s3990_s25  ;;  %p3997_p4 = scmp.lt.u32.totalorder %s3990_s25, %s5219_s2 }
  0x62   : > { %p3993_p0 = pnand %p3991_p13, %p4300_p7 }
  0x64   : > { %p3994_p2 = pneg %p3993_p0 }
  0x66   : > { %p3999_p6 = pnand %p3997_p4, %p3994_p2 }
  0x68   : > { %4002 = shalt.err (!%p3999_p6)
}
  0x69   : > { %s4003_s17 = scalar_lea.vmem %s258_s19, 32  ;;  %p4011_p11 = scmp.lt.s32.totalorder %s258_s19, %s258_s19 }
  0x6a   : > { %p4004_p8 = scmp.ne.s32.totalorder %s258_s19, %s4003_s17  ;;  %p4012_p12 = scmp.lt.s32.totalorder %s4003_s17, %s4003_s17 }
  0x6c   : > { %p4006_p9 = pnand %p4004_p8, %p4300_p7  ;;  %p4013_p1 = por %p4012_p12, %p4011_p11 }
  0x6e   : > { %p4007_p10 = pneg %p4006_p9 }
  0x70   : > { %p4014_p3 = pnand %p4013_p1, %p4007_p10 }
  0x72   : > { %4017 = shalt.err (!%p4014_p3)
}
  0x73   : > { %3270 = dma.hbm_to_vmem [thread:$0]  (!%p4284_p5), %s5219_s2, 32, %s258_s19, [#allocation6]  }
  0x74   : > { %s4018_s18 = scalar_lea.hbm %s5221_s4, 32 }
  0x75   : > { %p4019_p13 = scmp.ne.s32.totalorder %s5221_s4, %s4018_s18  ;;  %p4025_p3 = scmp.lt.u32.totalorder %s4018_s18, %s5221_s4 }
  0x77   : > { %p4021_p0 = pnand %p4019_p13, %p4300_p7 }
  0x79   : > { %p4022_p1 = pneg %p4021_p0 }
  0x7b   : > { %p4027_p2 = pnand %p4025_p3, %p4022_p1 }
  0x7d   : > { %4030 = shalt.err (!%p4027_p2)
}
  0x7e   : > { %s4031_s26 = scalar_lea.vmem %s282_s21, 32  ;;  %p4039_p9 = scmp.lt.s32.totalorder %s282_s21, %s282_s21 }
  0x7f   : > { %p4032_p4 = scmp.ne.s32.totalorder %s282_s21, %s4031_s26  ;;  %p4040_p10 = scmp.lt.s32.totalorder %s4031_s26, %s4031_s26 }
  0x81   : > { %p4034_p6 = pnand %p4032_p4, %p4300_p7  ;;  %p4041_p11 = por %p4040_p10, %p4039_p9 }
  0x83   : > { %p4035_p8 = pneg %p4034_p6 }
  0x85   : > { %p4042_p12 = pnand %p4041_p11, %p4035_p8 }
  0x87   : > { %4045 = shalt.err (!%p4042_p12)
}
  0x88   : > { %3276 = dma.hbm_to_vmem [thread:$0]  (!%p4284_p5), %s5221_s4, 32, %s282_s21, [#allocation9]  }
  0x89   : > { %s4193_s17 = smov [#allocation13]   ;;  %s4046_s3 = scalar_lea.hbm %s5223_s6, 768 }
  0x8a   : > { %s304_s10 = sshll.u32 %s4193_s17, 4  ;;  %p4047_p13 = scmp.ne.s32.totalorder %s5223_s6, %s4046_s3  ;;  %s305_s10 = int_to_ptr.vmem [resolvable:$true] %s304_s10 }
  0x8b   : > { %p4053_p3 = scmp.lt.u32.totalorder %s4046_s3, %s5223_s6 }
  0x8c   : > { %p4049_p0 = pnand %p4047_p13, %p4300_p7 }
  0x8e   : > { %p4050_p1 = pneg %p4049_p0 }
  0x90   : > { %p4055_p2 = pnand %p4053_p3, %p4050_p1 }
  0x92   : > { %4058 = shalt.err (!%p4055_p2)
}
  0x93   : > { %s4059_s21 = scalar_lea.vmem %s305_s10, 768  ;;  %p4067_p9 = scmp.lt.s32.totalorder %s305_s10, %s305_s10 }
  0x94   : > { %p4060_p4 = scmp.ne.s32.totalorder %s305_s10, %s4059_s21  ;;  %p4068_p10 = scmp.lt.s32.totalorder %s4059_s21, %s4059_s21 }
  0x96   : > { %p4062_p6 = pnand %p4060_p4, %p4300_p7  ;;  %p4069_p11 = por %p4068_p10, %p4067_p9 }
  0x98   : > { %p4063_p8 = pneg %p4062_p6 }
  0x9a   : > { %p4070_p12 = pnand %p4069_p11, %p4063_p8 }
  0x9c   : > { %4073 = shalt.err (!%p4070_p12)
}
  0x9d   : > { %3282 = dma.hbm_to_vmem [thread:$0]  (!%p4284_p5), %s5223_s6, 768, %s305_s10, [#allocation12], %s4189_s9, %s4189_s9, %s4190_s13  }
  0x9e   : > { %s3012_s15 = sadd.s32 4294967294, %s4182_s30   ;;  %s4429_s23 = sadd.s32 1, %s4182_s30  }
  0x9f   : > { %s31_s19 = ssub.s32 %s4182_s30, %s4429_s23  ;;  %s34_s14 = sadd.s32 1, %s4178_s29 }
  0xa0   : > { %p32_p7 = scmp.eq.s32.totalorder %s31_s19, 0  ;;  %p41_p13 = scmp.ne.s32.totalorder %s4178_s29, %s4174_s28 }
  0xa1   : > { %p42_p0 = scmp.eq.s32.totalorder %s4182_s30, 0  ;;  %p47_p1 = scmp.ne.s32.totalorder %s4174_s28, %s4170_s27 }
  0xa2   : > { %s4440_s17 = scalar_select %p32_p7, %s4178_s29, %s34_s14  }
  0xa3   : > { %p4442_p3 = por %p42_p0, %p41_p13  ;;  %p5244_p2 = scmp.eq.s32.totalorder %s4269_s11, 0 }
  0xa4   : > { %p218_p4 = scmp.eq.s32.totalorder %s4269_s11, 7  ;;  %p224_p6 = scmp.eq.s32.totalorder %s3012_s15, 7 }
  0xa5   : > { %p4448_p5 = por %p5244_p2, %p47_p1  ;;  %p3297_p8 = scmp.lt.s32.totalorder %s4182_s30, 8 }
  0xa6   : > { %s321_s1 = sand.u32 1, %s4178_s29   ;;  %p4455_p9 = por %p218_p4, %p41_p13 }
  0xa7   : > { %p4459_p10 = por %p224_p6, %p47_p1  ;;  %s3021_s20 = sshll.u32 %s321_s1, 9 }
  0xa8   : > { %s5246_s3 = scalar_select %p4455_p9, 1, 0 }
  0xa9   : > { %s5247_s18 = scalar_select %p4459_p10, 1, 0 }
  0xaa   : > { %s3050_s22 = sshll.u32 %s4182_s30, 13  ;;  %s325_s26 = scalar_lea.vmem [#allocation2], %s3021_s20 }
  0xab   : > { %s4467_s25 = scalar_lea.hbm %s5217_s0, %s3050_s22  ;;  %s332_s15 = sshll.u32 %s325_s26, 4  ;;  %s4469_s15 = int_to_ptr.vmem [resolvable:$true] %s332_s15 }
  0xac   : > { %p4473_p11 = pnand %p3297_p8, %p4442_p3  ;;  %s4477_s14 = scalar_lea.sflag [#allocation3], %s321_s1 }
  0xad   : > { %s4074_s24 = scalar_lea.hbm %s4467_s25, 8192  ;;  %s4079_s16 = scalar_lea.hbm %s5217_s0, 65536 }
  0xae   : > { %p4075_p12 = scmp.ne.s32.totalorder %s4467_s25, %s4074_s24  ;;  %p4076_p7 = pneg %p4473_p11 }
  0xaf   : > { %p4080_p1 = scmp.lt.u32.totalorder %s4467_s25, %s5217_s0  ;;  %p4081_p3 = scmp.lt.u32.totalorder %s4079_s16, %s4074_s24 }
  0xb0   : > { %p4077_p13 = pnand %p4076_p7, %p4075_p12  ;;  %p4083_p4 = scmp.lt.u32.totalorder %s4074_s24, %s4467_s25 }
  0xb1   : > { %p4082_p2 = por %p4081_p3, %p4080_p1 }
  0xb2   : > { %p4078_p0 = pneg %p4077_p13 }
  0xb3   : > { %p4084_p6 = por %p4083_p4, %p4082_p2 }
  0xb5   : > { %p4085_p8 = pnand %p4084_p6, %p4078_p0 }
  0xb7   : > { %4088 = shalt.err (!%p4085_p8)
}
  0xb8   : > { %s4089_s1 = scalar_lea.vmem %s4469_s15, 8192  ;;  %s4194_s20 = smov [#allocation2]  }
  0xb9   : > { %p4090_p12 = scmp.ne.s32.totalorder %s4469_s15, %s4089_s1  ;;  %s4094_s22 = sshll.u32 %s4194_s20, 4  ;;  %s4095_s22 = int_to_ptr.vmem [resolvable:$false] %s4094_s22 }
  0xba   : > { %s4096_s21 = scalar_lea.vmem %s4095_s22, 16384  ;;  %p4097_p9 = scmp.lt.s32.totalorder %s4469_s15, %s4095_s22 }
  0xbb   : > { %p4092_p13 = pnand %p4090_p12, %p4076_p7  ;;  %p4098_p1 = scmp.lt.s32.totalorder %s4096_s21, %s4089_s1 }
  0xbd   : > { %p4093_p10 = pneg %p4092_p13  ;;  %p4099_p3 = por %p4098_p1, %p4097_p9 }
  0xbf   : > { %p4100_p2 = pnand %p4099_p3, %p4093_p10 }
  0xc1   : > { %4103 = shalt.err (!%p4100_p2)
}
  0xc2   : > { %3286 = dma.hbm_to_vmem [thread:$0]  (!%p4473_p11), %s4467_s25, 8192, %s4469_s15, %s4477_s14, %s4189_s9, %s4189_s9, %s4190_s13  }
  0xc3   : > { %p5249_p7 = scmp.ne.s32.totalorder %s5238_s12, 0 }
  0xc5   : > { %344 = sbr.rel (%p5249_p7) target bundleno = 1961 (0x7a9), region = 52 }
  0xcc   : > { %s4511_s24 = sand.u32 1, %s4174_s28  }
  0xcd   : > { %s3025_s16 = sshll.u32 %s4511_s24, 9  ;;  %s347_s26 = scalar_lea.sflag [#allocation3], %s4511_s24 }
  0xce   : > { %s4515_s1 = scalar_lea.vmem [#allocation2], %s3025_s16 }
  0xcf   : > { %4149 = dma.done.wait (%p4448_p5), %s347_s26, 8192  }
  0xd0   : > { %4151 = vsyncadd (%p4448_p5), %s347_s26, 4294959104  ;;  %p5250_p9 = scmp.eq.s32.totalorder %s4269_s11, 0 }
  0xd2   : > { %4153 = dma.done.wait (%p5250_p9), [#allocation6], 4128   ;;  %p5251_p10 = pmov %p5250_p9 }
  0xd3   : > { %p5252_p11 = pmov %p5250_p9 }
  0xd4   : > { %4155 = vsyncadd (%p5251_p10), [#allocation6], 4294963168 }
  0xd5   : > { %4157 = dma.done.wait (%p5252_p11), [#allocation9], 8224   ;;  %p5253_p0 = pmov %p5250_p9 }
  0xd7   : > { %4159 = vsyncadd (%p5253_p0), [#allocation9], 4294959072  ;;  %p5254_p4 = pmov %p5253_p0 }
  0xd8   : > { %p5255_p6 = pmov %p5253_p0 }
  0xd9   : > { %4161 = dma.done.wait (%p5254_p4), [#allocation12], 4864  }
  0xda   : > { %4163 = vsyncadd (%p5255_p6), [#allocation12], 4294962432  ;;  %v5230_v0 = vmov 0.0   ;;  %v474_v1 = vld [vmem:[#allocation5 + $0x8] sm:$0xff]  ;;  %v476_v2 = vld [vmem:[#allocation5 + $0x18] sm:$0xff]  ;;  %vm2322_vm0 = vcmask 130048  }
  0xdb   : > { %581 = vmatprep.mubr.f32.mxu0 %v5230_v0  ;;  %809 = vmatprep.mubr.f32.mxu1 %v5230_v0  ;;  %v473_v3 = vld [vmem:[#allocation5] sm:$0xff]  ;;  %v3052_v4 = vpack.c.bf16 %v476_v2, %v474_v1  ;;  %v475_v5 = vld [vmem:[#allocation5 + $0x10] sm:$0xff]  ;;  %v478_v6 = vld [vmem:[#allocation5 + $0x28] sm:$0xff]  ;;  %s3032_s20 = sshll.u32 %s4511_s24, 2  ;;  %s3051_s22 = sshll.u32 %s4269_s11, 6 }
  0xdc   : > { %v480_v7 = vld [vmem:[#allocation5 + $0x38] sm:$0xff]  ;;  %v3054_v8 = vpack.c.bf16 %v475_v5, %v473_v3  ;;  %v477_v10 = vld [vmem:[#allocation5 + $0x20] sm:$0xff]  ;;  %v479_v11 = vld [vmem:[#allocation5 + $0x30] sm:$0xff]  ;;  %s406_s21 = scalar_lea.vmem [#allocation14], %s3032_s20  ;;  %s5174_s12 = scalar_lea.hbm %s5225_s8, %s3051_s22 }
  0xdd   : > { %v3056_v9 = vpack.c.bf16 %v480_v7, %v478_v6  ;;  %v482_v12 = vld [vmem:[#allocation5 + $0x48] sm:$0xff]  ;;  %3053 = vmatprep.subr.bf16.mxu0 %v3052_v4  ;;  %v484_v13 = vld [vmem:[#allocation5 + $0x58] sm:$0xff]  ;;  %3220 = vmatprep.subr.bf16.mxu1 %v3052_v4  ;;  %v3058_v14 = vpack.c.bf16 %v479_v11, %v477_v10  ;;  %v481_v16 = vld [vmem:[#allocation5 + $0x40] sm:$0xff]  ;;  %s2885_s16 = sshll.u32 %s406_s21, 4  ;;  %s2871_s9 = scalar_lea.sflag [#allocation4], %s4511_s24  ;;  %s5176_s16 = int_to_ptr.vmem [resolvable:$true] %s2885_s16 }
  0xde   : > { %3055 = vmatpush1.bf16.msra.mxu0 %v3054_v8  ;;  %3228 = vmatpush1.bf16.msra.mxu1 %v3054_v8  ;;  %v3060_v15 = vpack.c.bf16 %v484_v13, %v482_v12  ;;  %v483_v17 = vld [vmem:[#allocation5 + $0x50] sm:$0xff]  ;;  %v486_v18 = vld [vmem:[#allocation5 + $0x68] sm:$0xff]  ;;  %v488_v19 = vld [vmem:[#allocation5 + $0x78] sm:$0xff]  ;;  %s4104_s13 = scalar_lea.vmem %s5176_s16, 64  ;;  %p5277_p8 = scmp.ne.s32.totalorder %s5246_s3, 0 }
  0xdf   : > { %3057 = vmatprep.subr.bf16.mxu0 %v3056_v9  ;;  %3221 = vmatprep.subr.bf16.mxu1 %v3056_v9  ;;  %v3062_v20 = vpack.c.bf16 %v483_v17, %v481_v16  ;;  %v3064_v21 = vpack.c.bf16 %v488_v19, %v486_v18  ;;  %v485_v22 = vld [vmem:[#allocation5 + $0x60] sm:$0xff]  ;;  %v487_v23 = vld [vmem:[#allocation5 + $0x70] sm:$0xff]  ;;  %v490_v24 = vld [vmem:[#allocation5 + $0x88] sm:$0xff]  ;;  %p4105_p5 = scmp.ne.s32.totalorder %s5176_s16, %s4104_s13  ;;  %s4202_s11 = smov [#allocation14]  }
  0xe0   : > { %v492_v25 = vld [vmem:[#allocation5 + $0x98] sm:$0xff]  ;;  %v3066_v26 = vpack.c.bf16 %v487_v23, %v485_v22  ;;  %v489_v28 = vld [vmem:[#allocation5 + $0x80] sm:$0xff]  ;;  %v491_v29 = vld [vmem:[#allocation5 + $0x90] sm:$0xff]  ;;  %s4108_s10 = sshll.u32 %s4202_s11, 4  ;;  %s4109_s10 = int_to_ptr.vmem [resolvable:$false] %s4108_s10 }
  0xe1   : > { %v3068_v27 = vpack.c.bf16 %v492_v25, %v490_v24  ;;  %v494_v30 = vld [vmem:[#allocation5 + $0xa8] sm:$0xff]  ;;  %v496_v31 = vld [vmem:[#allocation5 + $0xb8] sm:$0xff]  ;;  %v3070_v32 = vpack.c.bf16 %v491_v29, %v489_v28  ;;  %v493_v34 = vld [vmem:[#allocation5 + $0xa0] sm:$0xff]  ;;  %p4106_p12 = pnand %p4105_p5, %p5277_p8  ;;  %s4110_s25 = scalar_lea.vmem %s4109_s10, 128 }
  0xe2   : > { %3059 = vmatpush1.bf16.msra.mxu0 %v3058_v14  ;;  %3229 = vmatpush1.bf16.msra.mxu1 %v3058_v14  ;;  %v3072_v33 = vpack.c.bf16 %v496_v31, %v494_v30  ;;  %v495_v35 = vld [vmem:[#allocation5 + $0xb0] sm:$0xff]  ;;  %v498_v36 = vld [vmem:[#allocation5 + $0xc8] sm:$0xff]  ;;  %v500_v37 = vld [vmem:[#allocation5 + $0xd8] sm:$0xff]  ;;  %p4111_p1 = scmp.lt.s32.totalorder %s5176_s16, %s4109_s10  ;;  %p4112_p3 = scmp.lt.s32.totalorder %s4110_s25, %s4104_s13 }
  0xe3   : > { %3061 = vmatprep.subr.bf16.mxu0 %v3060_v15  ;;  %3222 = vmatprep.subr.bf16.mxu1 %v3060_v15  ;;  %v3074_v38 = vpack.c.bf16 %v495_v35, %v493_v34  ;;  %v3076_v39 = vpack.c.bf16 %v500_v37, %v498_v36  ;;  %v497_v40 = vld [vmem:[#allocation5 + $0xc0] sm:$0xff]  ;;  %v499_v41 = vld [vmem:[#allocation5 + $0xd0] sm:$0xff]  ;;  %v502_v42 = vld [vmem:[#allocation5 + $0xe8] sm:$0xff]  ;;  %p4107_p13 = pneg %p4106_p12 }
  0xe4   : > { %v504_v43 = vld [vmem:[#allocation5 + $0xf8] sm:$0xff]  ;;  %v3078_v44 = vpack.c.bf16 %v499_v41, %v497_v40  ;;  %v501_v46 = vld [vmem:[#allocation5 + $0xe0] sm:$0xff]  ;;  %v503_v47 = vld [vmem:[#allocation5 + $0xf0] sm:$0xff]  ;;  %p4113_p2 = por %p4112_p3, %p4111_p1 }
  0xe5   : > { %v3080_v45 = vpack.c.bf16 %v504_v43, %v502_v42  ;;  %v3082_v48 = vpack.c.bf16 %v503_v47, %v501_v46  ;;  %v409_v49 = vld [vmem:[%s4515_s1] sm:$0xff]  ;;  %v447_v50 = vld [vmem:[%s4515_s1 + $0x130] sm:$0xff]  ;;  %v410_v51 = vld [vmem:[%s4515_s1 + $0x8] sm:$0xff] }
  0xe6   : > { %3063 = vmatpush1.bf16.msra.mxu0 %v3062_v20  ;;  %3230 = vmatpush1.bf16.msra.mxu1 %v3062_v20  ;;  %v448_v52 = vld [vmem:[%s4515_s1 + $0x138] sm:$0xff]  ;;  %v411_v53 = vld [vmem:[%s4515_s1 + $0x10] sm:$0xff]  ;;  %v449_v54 = vld [vmem:[%s4515_s1 + $0x140] sm:$0xff]  ;;  %p4114_p7 = pnand %p4113_p2, %p4107_p13 }
  0xe7   : > { %3065 = vmatprep.subr.bf16.mxu0 %v3064_v21  ;;  %3223 = vmatprep.subr.bf16.mxu1 %v3064_v21  ;;  %v412_v55 = vld [vmem:[%s4515_s1 + $0x18] sm:$0xff]  ;;  %v450_v56 = vld [vmem:[%s4515_s1 + $0x148] sm:$0xff]  ;;  %v413_v57 = vld [vmem:[%s4515_s1 + $0x20] sm:$0xff] }
  0xe8   : > { %v451_v58 = vld [vmem:[%s4515_s1 + $0x150] sm:$0xff]  ;;  %v414_v59 = vld [vmem:[%s4515_s1 + $0x28] sm:$0xff]  ;;  %v452_v60 = vld [vmem:[%s4515_s1 + $0x158] sm:$0xff] }
  0xe9   : > { %v415_v61 = vld [vmem:[%s4515_s1 + $0x30] sm:$0xff]  ;;  %v453_v62 = vld [vmem:[%s4515_s1 + $0x160] sm:$0xff]  ;;  %v416_v10 = vld [vmem:[%s4515_s1 + $0x38] sm:$0xff] }
  0xea   : > { %3067 = vmatpush1.bf16.msra.mxu0 %v3066_v26  ;;  %3231 = vmatpush1.bf16.msra.mxu1 %v3066_v26  ;;  %v1095_v63 = vld [vmem:[#allocation8 + $0x8] sm:$0xff]  ;;  %v1097_v1 = vld [vmem:[#allocation8 + $0x18] sm:$0xff]  ;;  %v1094_v3 = vld [vmem:[#allocation8] sm:$0xff] }
  0xeb   : > { %3069 = vmatprep.subr.bf16.mxu0 %v3068_v27  ;;  %3224 = vmatprep.subr.bf16.mxu1 %v3068_v27  ;;  %v3084_v2 = vpack.c.bf16 %v1097_v1, %v1095_v63  ;;  %v1096_v4 = vld [vmem:[#allocation8 + $0x10] sm:$0xff]  ;;  %v1099_v6 = vld [vmem:[#allocation8 + $0x28] sm:$0xff]  ;;  %v1101_v7 = vld [vmem:[#allocation8 + $0x38] sm:$0xff] }
  0xec   : > { %v3086_v5 = vpack.c.bf16 %v1096_v4, %v1094_v3  ;;  %v1098_v8 = vld [vmem:[#allocation8 + $0x20] sm:$0xff]  ;;  %v1100_v9 = vld [vmem:[#allocation8 + $0x30] sm:$0xff]  ;;  %v3088_v12 = vpack.c.bf16 %v1101_v7, %v1099_v6  ;;  %v1103_v14 = vld [vmem:[#allocation8 + $0x48] sm:$0xff] }
  0xed   : > { %v454_v11 = vld [vmem:[%s4515_s1 + $0x168] sm:$0xff]  ;;  %v3090_v13 = vpack.c.bf16 %v1100_v9, %v1098_v8  ;;  %v1105_v15 = vld [vmem:[#allocation8 + $0x58] sm:$0xff]  ;;  %v1104_v17 = vld [vmem:[#allocation8 + $0x50] sm:$0xff] }
  0xee   : > { %3071 = vmatpush1.bf16.msra.mxu0 %v3070_v32  ;;  %3232 = vmatpush1.bf16.msra.mxu1 %v3070_v32  ;;  %v1102_v16 = vld [vmem:[#allocation8 + $0x40] sm:$0xff]  ;;  %v455_v19 = vld [vmem:[%s4515_s1 + $0x170] sm:$0xff]  ;;  %v3092_v20 = vpack.c.bf16 %v1105_v15, %v1103_v14  ;;  %v1109_v23 = vld [vmem:[#allocation8 + $0x78] sm:$0xff] }
  0xef   : > { %3073 = vmatprep.subr.bf16.mxu0 %v3072_v33  ;;  %3225 = vmatprep.subr.bf16.mxu1 %v3072_v33  ;;  %v417_v18 = vld [vmem:[%s4515_s1 + $0x40] sm:$0xff]  ;;  %v3094_v21 = vpack.c.bf16 %v1104_v17, %v1102_v16  ;;  %v1107_v22 = vld [vmem:[#allocation8 + $0x68] sm:$0xff]  ;;  %v1108_v25 = vld [vmem:[#allocation8 + $0x70] sm:$0xff] }
  0xf0   : > { %v1106_v24 = vld [vmem:[#allocation8 + $0x60] sm:$0xff]  ;;  %v456_v27 = vld [vmem:[%s4515_s1 + $0x178] sm:$0xff]  ;;  %v3096_v28 = vpack.c.bf16 %v1109_v23, %v1107_v22  ;;  %v1111_v30 = vld [vmem:[#allocation8 + $0x88] sm:$0xff] }
  0xf1   : > { %v418_v26 = vld [vmem:[%s4515_s1 + $0x48] sm:$0xff]  ;;  %v3098_v29 = vpack.c.bf16 %v1108_v25, %v1106_v24  ;;  %v1113_v31 = vld [vmem:[#allocation8 + $0x98] sm:$0xff]  ;;  %v1112_v33 = vld [vmem:[#allocation8 + $0x90] sm:$0xff] }
  0xf2   : > { %3075 = vmatpush1.bf16.msra.mxu0 %v3074_v38  ;;  %3233 = vmatpush1.bf16.msra.mxu1 %v3074_v38  ;;  %v1110_v32 = vld [vmem:[#allocation8 + $0x80] sm:$0xff]  ;;  %v419_v34 = vld [vmem:[%s4515_s1 + $0x50] sm:$0xff]  ;;  %v3100_v36 = vpack.c.bf16 %v1113_v31, %v1111_v30  ;;  %v420_v42 = vld [vmem:[%s4515_s1 + $0x58] sm:$0xff] }
  0xf3   : > { %3077 = vmatprep.subr.bf16.mxu0 %v3076_v39  ;;  %3226 = vmatprep.subr.bf16.mxu1 %v3076_v39  ;;  %v457_v35 = vld [vmem:[%s4515_s1 + $0x180] sm:$0xff]  ;;  %v3102_v37 = vpack.c.bf16 %v1112_v33, %v1110_v32  ;;  %v1115_v38 = vld [vmem:[#allocation8 + $0xa8] sm:$0xff]  ;;  %v1116_v41 = vld [vmem:[#allocation8 + $0xb0] sm:$0xff] }
  0xf4   : > { %v1117_v39 = vld [vmem:[#allocation8 + $0xb8] sm:$0xff]  ;;  %v1114_v40 = vld [vmem:[#allocation8 + $0xa0] sm:$0xff]  ;;  %v1119_v46 = vld [vmem:[#allocation8 + $0xc8] sm:$0xff] }
  0xf5   : > { %v458_v43 = vld [vmem:[%s4515_s1 + $0x188] sm:$0xff]  ;;  %v1121_v47 = vld [vmem:[#allocation8 + $0xd8] sm:$0xff]  ;;  %v423_v3 = vld [vmem:[%s4515_s1 + $0x70] sm:$0xff] }
  0xf6   : > { %3079 = vmatpush1.bf16.msra.mxu0 %v3078_v44  ;;  %3234 = vmatpush1.bf16.msra.mxu1 %v3078_v44  ;;  %v3104_v44 = vpack.c.bf16 %v1117_v39, %v1115_v38  ;;  %v1129_v63 = vld [vmem:[#allocation8 + $0x118] sm:$0xff]  ;;  %v1126_v1 = vld [vmem:[#allocation8 + $0x100] sm:$0xff]  ;;  %v1131_v7 = vld [vmem:[#allocation8 + $0x128] sm:$0xff] }
  0xf7   : > { %3081 = vmatprep.subr.bf16.mxu0 %v3080_v45  ;;  %3227 = vmatprep.subr.bf16.mxu1 %v3080_v45  ;;  %v3106_v45 = vpack.c.bf16 %v1116_v41, %v1114_v40  ;;  %v461_v4 = vld [vmem:[%s4515_s1 + $0x1a0] sm:$0xff]  ;;  %v1135_v15 = vld [vmem:[#allocation8 + $0x148] sm:$0xff]  ;;  %v428_v33 = vld [vmem:[%s4515_s1 + $0x98] sm:$0xff] }
  0xf8   : > { %v1133_v8 = vld [vmem:[#allocation8 + $0x138] sm:$0xff]  ;;  %v1130_v9 = vld [vmem:[#allocation8 + $0x120] sm:$0xff]  ;;  %v1139_v23 = vld [vmem:[#allocation8 + $0x168] sm:$0xff] }
  0xf9   : > { %v1137_v16 = vld [vmem:[#allocation8 + $0x158] sm:$0xff]  ;;  %v1134_v17 = vld [vmem:[#allocation8 + $0x140] sm:$0xff]  ;;  %v427_v31 = vld [vmem:[%s4515_s1 + $0x90] sm:$0xff] }
  0xfa   : > { %3083 = vmatpush1.bf16.msra.mxu0 %v3082_v48  ;;  %3235 = vmatpush1.bf16.msra.mxu1 %v3082_v48  ;;  %v1118_v48 = vld [vmem:[#allocation8 + $0xc0] sm:$0xff]  ;;  %v1141_v24 = vld [vmem:[#allocation8 + $0x178] sm:$0xff]  ;;  %v1143_v38 = vld [vmem:[#allocation8 + $0x188] sm:$0xff] }
  0xfb   : > { %3085 = vmatprep.subr.bf16.mxu1 %v3084_v2  ;;  %v1128_v2 = vld [vmem:[#allocation8 + $0x110] sm:$0xff]  ;;  %v1138_v25 = vld [vmem:[#allocation8 + $0x160] sm:$0xff]  ;;  %v1145_v39 = vld [vmem:[#allocation8 + $0x198] sm:$0xff] }
  0xfc   : > { %v3118_v6 = vpack.c.bf16 %v1128_v2, %v1126_v1  ;;  %v465_v32 = vld [vmem:[%s4515_s1 + $0x1c0] sm:$0xff]  ;;  %v468_v40 = vld [vmem:[%s4515_s1 + $0x1d8] sm:$0xff]  ;;  %v3132_v41 = vpack.c.bf16 %v1145_v39, %v1143_v38  ;;  %v471_v1 = vld [vmem:[%s4515_s1 + $0x1f0] sm:$0xff] }
  0xfd   : > { %582 = vmatmul.mubr.f32.vlgmr.msra.gmra.mrb[0].mxu0 %v409_v49  ;;  %810 = vmatmul.mubr.f32.vlgmr.msra.gmra.mrb[0].mxu1 %v447_v50  ;;  %v1120_v49 = vld [vmem:[#allocation8 + $0xd0] sm:$0xff]  ;;  %v421_v50 = vld [vmem:[%s4515_s1 + $0x60] sm:$0xff] }
  0xfe   : > { %587 = vmatprep.mubr.f32.mxu0 %v5230_v0  ;;  %815 = vmatprep.mubr.f32.mxu1 %v5230_v0 }
  0xff   : > { %3087 = vmatpush1.bf16.msra.mxu1 %v3086_v5 }
 0x100   : > { %3089 = vmatprep.subr.bf16.mxu1 %v3088_v12  ;;  %v462_v12 = vld [vmem:[%s4515_s1 + $0x1a8] sm:$0xff] }
 0x101   : > { %588 = vmatmul.mubr.f32.gmra.mrb[2].mxu0 %v410_v51  ;;  %816 = vmatmul.mubr.f32.gmra.mrb[2].mxu1 %v448_v52  ;;  %v459_v51 = vld [vmem:[%s4515_s1 + $0x190] sm:$0xff]  ;;  %v3108_v52 = vpack.c.bf16 %v1121_v47, %v1119_v46  ;;  %v1149_v47 = vld [vmem:[#allocation8 + $0x1b8] sm:$0xff] }
 0x102   : > { %593 = vmatprep.mubr.f32.mxu0 %v5230_v0  ;;  %821 = vmatprep.mubr.f32.mxu1 %v5230_v0  ;;  %v1147_v46 = vld [vmem:[#allocation8 + $0x1a8] sm:$0xff] }
 0x103   : > { %3091 = vmatpush1.bf16.msra.mxu1 %v3090_v13  ;;  %v3120_v13 = vpack.c.bf16 %v1133_v8, %v1131_v7  ;;  %v472_v7 = vld [vmem:[%s4515_s1 + $0x1f8] sm:$0xff]  ;;  %v435_v8 = vld [vmem:[%s4515_s1 + $0xd0] sm:$0xff] }
 0x104   : > { %3093 = vmatprep.subr.bf16.mxu1 %v3092_v20  ;;  %v463_v20 = vld [vmem:[%s4515_s1 + $0x1b0] sm:$0xff] }
 0x105   : > { %594 = vmatmul.mubr.f32.gmra.mrb[4].mxu0 %v411_v53  ;;  %822 = vmatmul.mubr.f32.gmra.mrb[4].mxu1 %v449_v54  ;;  %v3110_v53 = vpack.c.bf16 %v1120_v49, %v1118_v48  ;;  %v1123_v54 = vld [vmem:[#allocation8 + $0xe8] sm:$0xff]  ;;  %v469_v48 = vld [vmem:[%s4515_s1 + $0x1e0] sm:$0xff]  ;;  %v3136_v49 = vpack.c.bf16 %v1149_v47, %v1147_v46 }
 0x106   : > { %599 = vmatprep.mubr.f32.mxu0 %v5230_v0  ;;  %827 = vmatprep.mubr.f32.mxu1 %v5230_v0 }
 0x107   : > { %3095 = vmatpush1.bf16.msra.mxu1 %v3094_v21  ;;  %v3124_v21 = vpack.c.bf16 %v1137_v16, %v1135_v15  ;;  %v442_v15 = vld [vmem:[%s4515_s1 + $0x108] sm:$0xff]  ;;  %v443_v16 = vld [vmem:[%s4515_s1 + $0x110] sm:$0xff] }
 0x108   : > { %3097 = vmatprep.subr.bf16.mxu1 %v3096_v28  ;;  %v464_v28 = vld [vmem:[%s4515_s1 + $0x1b8] sm:$0xff] }
 0x109   : > { %600 = vmatmul.mubr.f32.gmra.mrb[6].mxu0 %v412_v55  ;;  %828 = vmatmul.mubr.f32.gmra.mrb[6].mxu1 %v450_v56  ;;  %v1125_v55 = vld [vmem:[#allocation8 + $0xf8] sm:$0xff]  ;;  %v1122_v56 = vld [vmem:[#allocation8 + $0xe0] sm:$0xff] }
 0x10a   : > { %605 = vmatprep.mubr.f32.mxu0 %v5230_v0  ;;  %833 = vmatprep.mubr.f32.mxu1 %v5230_v0 }
 0x10b   : > { %3099 = vmatpush1.bf16.msra.mxu1 %v3098_v29  ;;  %v3128_v29 = vpack.c.bf16 %v1141_v24, %v1139_v23  ;;  %v505_v23 = vld [vmem:[#allocation7] sm:$0x3] }
 0x10c   : > { %3101 = vmatprep.subr.bf16.mxu1 %v3100_v36  ;;  %v467_v36 = vld [vmem:[%s4515_s1 + $0x1d0] sm:$0xff] }
 0x10d   : > { %606 = vmatmul.mubr.f32.gmra.mrb[8].mxu0 %v413_v57  ;;  %834 = vmatmul.mubr.f32.gmra.mrb[8].mxu1 %v451_v58  ;;  %v1124_v57 = vld [vmem:[#allocation8 + $0xf0] sm:$0xff]  ;;  %v422_v58 = vld [vmem:[%s4515_s1 + $0x68] sm:$0xff] }
 0x10e   : > { %611 = vmatprep.mubr.f32.mxu0 %v5230_v0  ;;  %839 = vmatprep.mubr.f32.mxu1 %v5230_v0 }
 0x10f   : > { %3103 = vmatpush1.bf16.msra.mxu1 %v3102_v37  ;;  %v430_v37 = vld [vmem:[%s4515_s1 + $0xa8] sm:$0xff] }
 0x110   : > { %3105 = vmatprep.subr.bf16.mxu1 %v3104_v44 }
 0x111   : > { %612 = vmatmul.mubr.f32.gmra.mrb[10].mxu0 %v414_v59  ;;  %840 = vmatmul.mubr.f32.gmra.mrb[10].mxu1 %v452_v60  ;;  %v460_v59 = vld [vmem:[%s4515_s1 + $0x198] sm:$0xff]  ;;  %v3112_v60 = vpack.c.bf16 %v1125_v55, %v1123_v54  ;;  %v1151_v54 = vld [vmem:[#allocation8 + $0x1c8] sm:$0xff] }
 0x112   : > { %617 = vmatprep.mubr.f32.mxu0 %v5230_v0  ;;  %845 = vmatprep.mubr.f32.mxu1 %v5230_v0  ;;  %v1153_v55 = vld [vmem:[#allocation8 + $0x1d8] sm:$0xff] }
 0x113   : > { %3107 = vmatpush1.bf16.msra.mxu1 %v3106_v45  ;;  %v431_v45 = vld [vmem:[%s4515_s1 + $0xb0] sm:$0xff] }
 0x114   : > { %3109 = vmatprep.subr.bf16.mxu1 %v3108_v52 }
 0x115   : > { %618 = vmatmul.mubr.f32.gmra.mrb[12].mxu0 %v415_v61  ;;  %846 = vmatmul.mubr.f32.gmra.mrb[12].mxu1 %v453_v62  ;;  %v3114_v61 = vpack.c.bf16 %v1124_v57, %v1122_v56  ;;  %v1127_v62 = vld [vmem:[#allocation8 + $0x108] sm:$0xff]  ;;  %v3140_v57 = vpack.c.bf16 %v1153_v55, %v1151_v54 }
 0x116   : > { %623 = vmatprep.mubr.f32.mxu0 %v5230_v0  ;;  %851 = vmatprep.mubr.f32.mxu1 %v5230_v0  ;;  %v3116_v5 = vpack.c.bf16 %v1129_v63, %v1127_v62  ;;  %v470_v56 = vld [vmem:[%s4515_s1 + $0x1e8] sm:$0xff]  ;;  %v1157_v63 = vld [vmem:[#allocation8 + $0x1f8] sm:$0xff] }
 0x117   : > { %3111 = vmatpush1.bf16.msra.mxu1 %v3110_v53  ;;  %v432_v53 = vld [vmem:[%s4515_s1 + $0xb8] sm:$0xff]  ;;  %v1155_v62 = vld [vmem:[#allocation8 + $0x1e8] sm:$0xff] }
 0x118   : > { %3113 = vmatprep.subr.bf16.mxu1 %v3112_v60  ;;  %v3144_v2 = vpack.c.bf16 %v1157_v63, %v1155_v62 }
 0x119   : > { %624 = vmatmul.mubr.f32.gmra.mrb[14].mxu0 %v416_v10  ;;  %852 = vmatmul.mubr.f32.gmra.mrb[14].mxu1 %v454_v11  ;;  %v1132_v10 = vld [vmem:[#allocation8 + $0x130] sm:$0xff] }
 0x11a   : > { %629 = vmatprep.mubr.f32.mxu0 %v5230_v0  ;;  %857 = vmatprep.mubr.f32.mxu1 %v5230_v0  ;;  %v424_v11 = vld [vmem:[%s4515_s1 + $0x78] sm:$0xff]  ;;  %v3122_v14 = vpack.c.bf16 %v1132_v10, %v1130_v9  ;;  %v437_v10 = vld [vmem:[%s4515_s1 + $0xe0] sm:$0xff] }
 0x11b   : > { %3115 = vmatpush1.bf16.msra.mxu1 %v3114_v61  ;;  %v433_v61 = vld [vmem:[%s4515_s1 + $0xc0] sm:$0xff]  ;;  %v436_v9 = vld [vmem:[%s4515_s1 + $0xd8] sm:$0xff] }
 0x11c   : > { %3117 = vmatprep.subr.bf16.mxu1 %v3116_v5 }
 0x11d   : > { %630 = vmatmul.mubr.f32.gmra.mrb[16].mxu0 %v417_v18  ;;  %858 = vmatmul.mubr.f32.gmra.mrb[16].mxu1 %v455_v19  ;;  %v1136_v18 = vld [vmem:[#allocation8 + $0x150] sm:$0xff]  ;;  %v425_v19 = vld [vmem:[%s4515_s1 + $0x80] sm:$0xff] }
 0x11e   : > { %635 = vmatprep.mubr.f32.mxu0 %v5230_v0  ;;  %863 = vmatprep.mubr.f32.mxu1 %v5230_v0  ;;  %v3126_v22 = vpack.c.bf16 %v1136_v18, %v1134_v17  ;;  %v444_v17 = vld [vmem:[%s4515_s1 + $0x118] sm:$0xff]  ;;  %v445_v18 = vld [vmem:[%s4515_s1 + $0x120] sm:$0xff] }
 0x11f   : > { %3119 = vmatpush1.bf16.msra.mxu1 %v3118_v6  ;;  %v434_v6 = vld [vmem:[%s4515_s1 + $0xc8] sm:$0xff] }
 0x120   : > { %3121 = vmatprep.subr.bf16.mxu1 %v3120_v13  ;;  %v440_v13 = vld [vmem:[%s4515_s1 + $0xf8] sm:$0xff] }
 0x121   : > { %636 = vmatmul.mubr.f32.gmra.mrb[18].mxu0 %v418_v26  ;;  %864 = vmatmul.mubr.f32.gmra.mrb[18].mxu1 %v456_v27  ;;  %v1140_v26 = vld [vmem:[#allocation8 + $0x170] sm:$0xff]  ;;  %v426_v27 = vld [vmem:[%s4515_s1 + $0x88] sm:$0xff] }
 0x122   : > { %641 = vmatprep.mubr.f32.mxu0 %v5230_v0  ;;  %869 = vmatprep.mubr.f32.mxu1 %v5230_v0  ;;  %v3130_v30 = vpack.c.bf16 %v1140_v26, %v1138_v25 }
 0x123   : > { %3123 = vmatpush1.bf16.msra.mxu1 %v3122_v14  ;;  %v441_v14 = vld [vmem:[%s4515_s1 + $0x100] sm:$0xff] }
 0x124   : > { %3125 = vmatprep.subr.bf16.mxu1 %v3124_v21 }
 0x125   : > { %642 = vmatmul.mubr.f32.gmra.mrb[20].mxu0 %v419_v34  ;;  %870 = vmatmul.mubr.f32.gmra.mrb[20].mxu1 %v457_v35  ;;  %v466_v34 = vld [vmem:[%s4515_s1 + $0x1c8] sm:$0xff]  ;;  %v429_v35 = vld [vmem:[%s4515_s1 + $0xa0] sm:$0xff] }
 0x126   : > { %647 = vmatprep.mubr.f32.mxu0 %v5230_v0  ;;  %875 = vmatprep.mubr.f32.mxu1 %v5230_v0 }
 0x127   : > { %3127 = vmatpush1.bf16.msra.mxu1 %v3126_v22 }
 0x128   : > { %3129 = vmatprep.subr.bf16.mxu1 %v3128_v29 }
 0x129   : > { %648 = vmatmul.mubr.f32.gmra.mrb[22].mxu0 %v420_v42  ;;  %876 = vmatmul.mubr.f32.gmra.mrb[22].mxu1 %v458_v43  ;;  %v1142_v42 = vld [vmem:[#allocation8 + $0x180] sm:$0xff]  ;;  %v1144_v43 = vld [vmem:[#allocation8 + $0x190] sm:$0xff] }
 0x12a   : > { %653 = vmatprep.mubr.f32.mxu0 %v5230_v0  ;;  %881 = vmatprep.mubr.f32.mxu1 %v5230_v0  ;;  %v3134_v44 = vpack.c.bf16 %v1144_v43, %v1142_v42 }
 0x12b   : > { %3131 = vmatpush1.bf16.msra.mxu1 %v3130_v30 }
 0x12c   : > { %3133 = vmatprep.subr.bf16.mxu1 %v3132_v41 }
 0x12d   : > { %654 = vmatmul.mubr.f32.gmra.mrb[24].mxu0 %v421_v50  ;;  %882 = vmatmul.mubr.f32.gmra.mrb[24].mxu1 %v459_v51  ;;  %v1146_v50 = vld [vmem:[#allocation8 + $0x1a0] sm:$0xff]  ;;  %v1148_v51 = vld [vmem:[#allocation8 + $0x1b0] sm:$0xff] }
 0x12e   : > { %659 = vmatprep.mubr.f32.mxu0 %v5230_v0  ;;  %887 = vmatprep.mubr.f32.mxu1 %v5230_v0  ;;  %v3138_v52 = vpack.c.bf16 %v1148_v51, %v1146_v50 }
 0x12f   : > { %3135 = vmatpush1.bf16.msra.mxu1 %v3134_v44 }
 0x130   : > { %3137 = vmatprep.subr.bf16.mxu1 %v3136_v49 }
 0x131   : > { %660 = vmatmul.mubr.f32.gmra.mrb[26].mxu0 %v422_v58  ;;  %888 = vmatmul.mubr.f32.gmra.mrb[26].mxu1 %v460_v59  ;;  %v1150_v58 = vld [vmem:[#allocation8 + $0x1c0] sm:$0xff]  ;;  %v1152_v59 = vld [vmem:[#allocation8 + $0x1d0] sm:$0xff] }
 0x132   : > { %665 = vmatprep.mubr.f32.mxu0 %v5230_v0  ;;  %893 = vmatprep.mubr.f32.mxu1 %v5230_v0  ;;  %v3142_v60 = vpack.c.bf16 %v1152_v59, %v1150_v58 }
 0x133   : > { %3139 = vmatpush1.bf16.msra.mxu1 %v3138_v52 }
 0x134   : > { %3141 = vmatprep.subr.bf16.mxu1 %v3140_v57 }
 0x135   : > { %666 = vmatmul.mubr.f32.gmra.mrb[28].mxu0 %v423_v3  ;;  %894 = vmatmul.mubr.f32.gmra.mrb[28].mxu1 %v461_v4  ;;  %v1154_v3 = vld [vmem:[#allocation8 + $0x1e0] sm:$0xff]  ;;  %v1156_v4 = vld [vmem:[#allocation8 + $0x1f0] sm:$0xff] }
 0x136   : > { %671 = vmatprep.mubr.f32.mxu0 %v5230_v0  ;;  %899 = vmatprep.mubr.f32.mxu1 %v5230_v0  ;;  %v3146_v5 = vpack.c.bf16 %v1156_v4, %v1154_v3 }
 0x137   : > { %3143 = vmatpush1.bf16.msra.mxu1 %v3142_v60 }
 0x138   : > { %3145 = vmatprep.subr.bf16.mxu1 %v3144_v2 }
 0x139   : > { %672 = vmatmul.mubr.f32.gmra.mrb[30].mxu0 %v424_v11  ;;  %900 = vmatmul.mubr.f32.gmra.mrb[30].mxu1 %v462_v12  ;;  %v438_v11 = vld [vmem:[%s4515_s1 + $0xe8] sm:$0xff]  ;;  %v439_v12 = vld [vmem:[%s4515_s1 + $0xf0] sm:$0xff] }
 0x13a   : > { %677 = vmatprep.mubr.f32.mxu0 %v5230_v0  ;;  %905 = vmatprep.mubr.f32.mxu1 %v5230_v0 }
 0x13b   : > { %3147 = vmatpush1.bf16.msra.mxu1 %v3146_v5 }
 0x13d   : > { %678 = vmatmul.mubr.f32.gmra.mrb[32].mxu0 %v425_v19  ;;  %906 = vmatmul.mubr.f32.gmra.mrb[32].mxu1 %v463_v20  ;;  %v446_v19 = vld [vmem:[%s4515_s1 + $0x128] sm:$0xff]  ;;  %v5229_v20 = vlaneseq }
 0x13e   : > { %683 = vmatprep.mubr.f32.mxu0 %v5230_v0  ;;  %911 = vmatprep.mubr.f32.mxu1 %v5230_v0 }
 0x13f   : > { %v4662_v21 = vshrl.u32 %v5229_v20, 7  ;;  %v1766_v20 = vld [vmem:[#allocation11 + $0x98] sm:$0xff] }
 0x141   : > { %684 = vmatmul.mubr.f32.gmra.mrb[34].mxu0 %v426_v27  ;;  %912 = vmatmul.mubr.f32.gmra.mrb[34].mxu1 %v464_v28  ;;  %v5233_v22 = vsub.s32 0, %v4662_v21  ;;  %v5232_v24 = vsub.s32 1, %v4662_v21 }
 0x142   : > { %689 = vmatprep.mubr.f32.mxu0 %v5230_v0  ;;  %917 = vmatprep.mubr.f32.mxu1 %v5230_v0 }
 0x143   : > { %v4668_v25 = vrot.slane %v505_v23, %v5233_v22  ;;  %v4672_v26 = vrot.slane %v505_v23, %v5232_v24  ;;  %v1768_v24 = vld [vmem:[#allocation11 + $0xa8] sm:$0xff]  ;;  %v1769_v22 = vld [vmem:[#allocation11 + $0xb0] sm:$0xff] }
 0x145   : > { %690 = vmatmul.mubr.f32.gmra.mrb[36].mxu0 %v427_v31  ;;  %918 = vmatmul.mubr.f32.gmra.mrb[36].mxu1 %v465_v32 }
 0x146   : > { %695 = vmatprep.mubr.f32.mxu0 %v5230_v0  ;;  %923 = vmatprep.mubr.f32.mxu1 %v5230_v0 }
 0x149   : > { %696 = vmatmul.mubr.f32.gmra.mrb[38].mxu0 %v428_v33  ;;  %924 = vmatmul.mubr.f32.gmra.mrb[38].mxu1 %v466_v34 }
 0x14a   : > { %701 = vmatprep.mubr.f32.mxu0 %v5230_v0  ;;  %929 = vmatprep.mubr.f32.mxu1 %v5230_v0 }
 0x14d   : > { %702 = vmatmul.mubr.f32.gmra.mrb[40].mxu0 %v429_v35  ;;  %930 = vmatmul.mubr.f32.gmra.mrb[40].mxu1 %v467_v36 }
 0x14e   : > { %707 = vmatprep.mubr.f32.mxu0 %v5230_v0  ;;  %935 = vmatprep.mubr.f32.mxu1 %v5230_v0 }
 0x151   : > { %708 = vmatmul.mubr.f32.gmra.mrb[42].mxu0 %v430_v37  ;;  %936 = vmatmul.mubr.f32.gmra.mrb[42].mxu1 %v468_v40 }
 0x152   : > { %713 = vmatprep.mubr.f32.mxu0 %v5230_v0  ;;  %941 = vmatprep.mubr.f32.mxu1 %v5230_v0 }
 0x155   : > { %714 = vmatmul.mubr.f32.gmra.mrb[44].mxu0 %v431_v45  ;;  %942 = vmatmul.mubr.f32.gmra.mrb[44].mxu1 %v469_v48 }
 0x156   : > { %719 = vmatprep.mubr.f32.mxu0 %v5230_v0  ;;  %947 = vmatprep.mubr.f32.mxu1 %v5230_v0 }
 0x159   : > { %720 = vmatmul.mubr.f32.gmra.mrb[46].mxu0 %v432_v53  ;;  %948 = vmatmul.mubr.f32.gmra.mrb[46].mxu1 %v470_v56 }
 0x15a   : > { %725 = vmatprep.mubr.f32.mxu0 %v5230_v0  ;;  %953 = vmatprep.mubr.f32.mxu1 %v5230_v0 }
 0x15d   : > { %726 = vmatmul.mubr.f32.gmra.mrb[48].mxu0 %v433_v61  ;;  %954 = vmatmul.mubr.f32.gmra.mrb[48].mxu1 %v471_v1 }
 0x15e   : > { %731 = vmatprep.mubr.f32.mxu0 %v5230_v0  ;;  %959 = vmatprep.mubr.f32.mxu1 %v5230_v0 }
 0x161   : > { %732 = vmatmul.mubr.f32.gmra.mrb[50].mxu0 %v434_v6  ;;  %960 = vmatmul.mubr.f32.gmra.mrb[50].mxu1 %v472_v7 }
 0x162   : > { %737 = vmatprep.mubr.f32.mxu0 %v5230_v0 }
 0x165   : > { %738 = vmatmul.mubr.f32.gmra.mrb[52].mxu0 %v435_v8 }
 0x166   : > { %743 = vmatprep.mubr.f32.mxu0 %v5230_v0 }
 0x169   : > { %744 = vmatmul.mubr.f32.gmra.mrb[54].mxu0 %v436_v9 }
 0x16a   : > { %749 = vmatprep.mubr.f32.mxu0 %v5230_v0 }
 0x16d   : > { %750 = vmatmul.mubr.f32.gmra.mrb[56].mxu0 %v437_v10 }
 0x16e   : > { %755 = vmatprep.mubr.f32.mxu0 %v5230_v0 }
 0x171   : > { %756 = vmatmul.mubr.f32.gmra.mrb[58].mxu0 %v438_v11 }
 0x172   : > { %761 = vmatprep.mubr.f32.mxu0 %v5230_v0 }
 0x175   : > { %762 = vmatmul.mubr.f32.gmra.mrb[60].mxu0 %v439_v12 }
 0x176   : > { %767 = vmatprep.mubr.f32.mxu0 %v5230_v0 }
 0x179   : > { %768 = vmatmul.mubr.f32.gmra.mrb[62].mxu0 %v440_v13 }
 0x17a   : > { %773 = vmatprep.mubr.f32.mxu0 %v5230_v0 }
 0x17d   : > { %774 = vmatmul.mubr.f32.gmra.mrb[64].mxu0 %v441_v14 }
 0x17e   : > { %779 = vmatprep.mubr.f32.mxu0 %v5230_v0 }
 0x181   : > { %780 = vmatmul.mubr.f32.gmra.mrb[66].mxu0 %v442_v15 }
 0x182   : > { %785 = vmatprep.mubr.f32.mxu0 %v5230_v0 }
 0x185   : > { %786 = vmatmul.mubr.f32.gmra.mrb[68].mxu0 %v443_v16 }
 0x186   : > { %791 = vmatprep.mubr.f32.mxu0 %v5230_v0 }
 0x189   : > { %792 = vmatmul.mubr.f32.gmra.mrb[70].mxu0 %v444_v17 }
 0x18a   : > { %797 = vmatprep.mubr.f32.mxu0 %v5230_v0 }
 0x18d   : > { %798 = vmatmul.mubr.f32.gmra.mrb[72].mxu0 %v445_v18 }
 0x18e   : > { %803 = vmatprep.mubr.f32.mxu0 %v5230_v0  ;;  %v1767_v0 = vld [vmem:[#allocation11 + $0xa0] sm:$0xff] }
 0x191   : > { %804 = vmatmul.mubr.f32.gmra.mrb[74].mxu0 %v446_v19 }
 0x1d0   : > { %v583_v27 = vpop.f32.mrb[0].mxu0  ;;  %v4674_v28 = vpop.f32.mrb[0].mxu1 }
 0x1d1   : > { %v584_v29 = vadd.f32 %v583_v27, %v4668_v25  ;;  %v585_v30 = vpop.f32.mrb[1].mxu0  ;;  %v4677_v31 = vpop.f32.mrb[1].mxu1 }
 0x1d2   : > { %v586_v32 = vadd.f32 %v585_v30, %v4672_v26 }
 0x1d4   : > { %3360 = vtanh.f32 %v586_v32  ;;  %v589_v33 = vpop.f32.mrb[2].mxu0  ;;  %v4680_v34 = vpop.f32.mrb[2].mxu1 }
 0x1d5   : > { %3362 = vtanh.f32 %v584_v29  ;;  %v590_v35 = vadd.f32 %v589_v33, %v4668_v25  ;;  %v591_v36 = vpop.f32.mrb[3].mxu0  ;;  %v4683_v37 = vpop.f32.mrb[3].mxu1 }
 0x1d6   : > { %v592_v38 = vadd.f32 %v591_v36, %v4672_v26 }
 0x1d8   : > { %3364 = vtanh.f32 %v592_v38  ;;  %v595_v39 = vpop.f32.mrb[4].mxu0  ;;  %v4686_v40 = vpop.f32.mrb[4].mxu1 }
 0x1d9   : > { %3366 = vtanh.f32 %v590_v35  ;;  %v596_v41 = vadd.f32 %v595_v39, %v4668_v25  ;;  %v597_v42 = vpop.f32.mrb[5].mxu0  ;;  %v4689_v43 = vpop.f32.mrb[5].mxu1 }
 0x1da   : > { %v598_v44 = vadd.f32 %v597_v42, %v4672_v26 }
 0x1dc   : > { %3368 = vtanh.f32 %v598_v44  ;;  %v601_v45 = vpop.f32.mrb[6].mxu0  ;;  %v4692_v46 = vpop.f32.mrb[6].mxu1 }
 0x1dd   : > { %3370 = vtanh.f32 %v596_v41  ;;  %v602_v47 = vadd.f32 %v601_v45, %v4668_v25  ;;  %v603_v48 = vpop.f32.mrb[7].mxu0  ;;  %v4695_v49 = vpop.f32.mrb[7].mxu1 }
 0x1de   : > { %v3361_v50 = vpop.eup %3360  ;;  %v604_v51 = vadd.f32 %v603_v48, %v4672_v26 }
 0x1df   : > { %v3363_v52 = vpop.eup %3362  ;;  %1234 = vmatprep.mubr.f32.mxu1 %v3361_v50 }
 0x1e0   : > { %3372 = vtanh.f32 %v604_v51  ;;  %v607_v53 = vpop.f32.mrb[8].mxu0  ;;  %1235 = vmatmul.mubr.f32.vlgmr.msra.gmra.mrb[52].mxu1 %v3363_v52  ;;  %v4698_v54 = vpop.f32.mrb[8].mxu1 }
 0x1e1   : > { %3374 = vtanh.f32 %v602_v47  ;;  %v608_v55 = vadd.f32 %v607_v53, %v4668_v25  ;;  %v609_v56 = vpop.f32.mrb[9].mxu0  ;;  %v4701_v57 = vpop.f32.mrb[9].mxu1 }
 0x1e2   : > { %v3365_v58 = vpop.eup %3364  ;;  %v610_v59 = vadd.f32 %v609_v56, %v4672_v26 }
 0x1e3   : > { %v3367_v60 = vpop.eup %3366  ;;  %1240 = vmatprep.mubr.f32.mxu1 %v3365_v58 }
 0x1e4   : > { %3376 = vtanh.f32 %v610_v59  ;;  %v613_v61 = vpop.f32.mrb[10].mxu0  ;;  %1241 = vmatmul.mubr.f32.gmra.mrb[54].mxu1 %v3367_v60  ;;  %v4704_v62 = vpop.f32.mrb[10].mxu1 }
 0x1e5   : > { %3378 = vtanh.f32 %v608_v55  ;;  %v614_v63 = vadd.f32 %v613_v61, %v4668_v25  ;;  %v615_v1 = vpop.f32.mrb[11].mxu0  ;;  %v4707_v2 = vpop.f32.mrb[11].mxu1 }
 0x1e6   : > { %v3369_v3 = vpop.eup %3368  ;;  %v616_v4 = vadd.f32 %v615_v1, %v4672_v26 }
 0x1e7   : > { %v3371_v5 = vpop.eup %3370  ;;  %1246 = vmatprep.mubr.f32.mxu1 %v3369_v3 }
 0x1e8   : > { %3380 = vtanh.f32 %v616_v4  ;;  %v619_v6 = vpop.f32.mrb[12].mxu0  ;;  %1247 = vmatmul.mubr.f32.gmra.mrb[56].mxu1 %v3371_v5  ;;  %v4710_v7 = vpop.f32.mrb[12].mxu1 }
 0x1e9   : > { %3382 = vtanh.f32 %v614_v63  ;;  %v620_v8 = vadd.f32 %v619_v6, %v4668_v25  ;;  %v621_v9 = vpop.f32.mrb[13].mxu0  ;;  %v4713_v10 = vpop.f32.mrb[13].mxu1 }
 0x1ea   : > { %v3373_v11 = vpop.eup %3372  ;;  %v622_v12 = vadd.f32 %v621_v9, %v4672_v26 }
 0x1eb   : > { %v3375_v13 = vpop.eup %3374  ;;  %1252 = vmatprep.mubr.f32.mxu1 %v3373_v11 }
 0x1ec   : > { %3384 = vtanh.f32 %v622_v12  ;;  %v625_v14 = vpop.f32.mrb[14].mxu0  ;;  %1253 = vmatmul.mubr.f32.gmra.mrb[58].mxu1 %v3375_v13  ;;  %v4716_v15 = vpop.f32.mrb[14].mxu1 }
 0x1ed   : > { %3386 = vtanh.f32 %v620_v8  ;;  %v626_v16 = vadd.f32 %v625_v14, %v4668_v25  ;;  %v627_v17 = vpop.f32.mrb[15].mxu0  ;;  %v4719_v18 = vpop.f32.mrb[15].mxu1 }
 0x1ee   : > { %v3377_v19 = vpop.eup %3376  ;;  %v628_v23 = vadd.f32 %v627_v17, %v4672_v26  ;;  %v1747_v17 = vld [vmem:[#allocation11] sm:$0xff] }
 0x1ef   : > { %v3379_v27 = vpop.eup %3378  ;;  %1258 = vmatprep.mubr.f32.mxu1 %v3377_v19  ;;  %v1748_v19 = vld [vmem:[#allocation11 + $0x8] sm:$0xff] }
 0x1f0   : > { %3388 = vtanh.f32 %v628_v23  ;;  %v631_v29 = vpop.f32.mrb[16].mxu0  ;;  %1259 = vmatmul.mubr.f32.gmra.mrb[60].mxu1 %v3379_v27  ;;  %v4722_v30 = vpop.f32.mrb[16].mxu1 }
 0x1f1   : > { %3390 = vtanh.f32 %v626_v16  ;;  %v632_v32 = vadd.f32 %v631_v29, %v4668_v25  ;;  %v633_v33 = vpop.f32.mrb[17].mxu0  ;;  %v4725_v35 = vpop.f32.mrb[17].mxu1  ;;  %v5234_v29 = vmov 0.0|0.0  }
 0x1f2   : > { %v3381_v36 = vpop.eup %3380  ;;  %v634_v38 = vadd.f32 %v633_v33, %v4672_v26  ;;  %3148 = vmatprep.subr.bf16.mxu0 %v5234_v29 }
 0x1f3   : > { %v3383_v39 = vpop.eup %3382  ;;  %1264 = vmatprep.mubr.f32.mxu1 %v3381_v36 }
 0x1f4   : > { %3392 = vtanh.f32 %v634_v38  ;;  %v637_v41 = vpop.f32.mrb[18].mxu0  ;;  %1265 = vmatmul.mubr.f32.gmra.mrb[62].mxu1 %v3383_v39  ;;  %v4728_v42 = vpop.f32.mrb[18].mxu1 }
 0x1f5   : > { %3394 = vtanh.f32 %v632_v32  ;;  %v638_v44 = vadd.f32 %v637_v41, %v4668_v25  ;;  %v639_v45 = vpop.f32.mrb[19].mxu0  ;;  %v4731_v47 = vpop.f32.mrb[19].mxu1  ;;  %v3149_v32 = vpack.c.bf16 %v1748_v19, %v1747_v17 }
 0x1f6   : > { %v3385_v48 = vpop.eup %3384  ;;  %v640_v50 = vadd.f32 %v639_v45, %v4672_v26  ;;  %v1749_v45 = vld [vmem:[#allocation11 + $0x10] sm:$0xff] }
 0x1f7   : > { %v3387_v51 = vpop.eup %3386  ;;  %1270 = vmatprep.mubr.f32.mxu1 %v3385_v48  ;;  %3150 = vmatpush1.bf16.msra.mxu0 %v3149_v32  ;;  %v1750_v48 = vld [vmem:[#allocation11 + $0x18] sm:$0xff] }
 0x1f8   : > { %3396 = vtanh.f32 %v640_v50  ;;  %v643_v52 = vpop.f32.mrb[20].mxu0  ;;  %1271 = vmatmul.mubr.f32.gmra.mrb[64].mxu1 %v3387_v51  ;;  %v4734_v53 = vpop.f32.mrb[20].mxu1  ;;  %3151 = vmatprep.subr.bf16.mxu0 %v5234_v29  ;;  %v1754_v32 = vld [vmem:[#allocation11 + $0x38] sm:$0xff] }
 0x1f9   : > { %3398 = vtanh.f32 %v638_v44  ;;  %v644_v55 = vadd.f32 %v643_v52, %v4668_v25  ;;  %v645_v56 = vpop.f32.mrb[21].mxu0  ;;  %v4737_v58 = vpop.f32.mrb[21].mxu1  ;;  %v3152_v52 = vpack.c.bf16 %v1750_v48, %v1749_v45 }
 0x1fa   : > { %v3389_v59 = vpop.eup %3388  ;;  %v646_v60 = vadd.f32 %v645_v56, %v4672_v26 }
 0x1fb   : > { %v3391_v61 = vpop.eup %3390  ;;  %1276 = vmatprep.mubr.f32.mxu1 %v3389_v59  ;;  %3153 = vmatpush1.bf16.msra.mxu0 %v3152_v52 }
 0x1fc   : > { %3400 = vtanh.f32 %v646_v60  ;;  %v649_v63 = vpop.f32.mrb[22].mxu0  ;;  %1277 = vmatmul.mubr.f32.gmra.mrb[66].mxu1 %v3391_v61  ;;  %v4740_v1 = vpop.f32.mrb[22].mxu1  ;;  %3154 = vmatprep.subr.bf16.mxu0 %v5234_v29 }
 0x1fd   : > { %3402 = vtanh.f32 %v644_v55  ;;  %v650_v3 = vadd.f32 %v649_v63, %v4668_v25  ;;  %v651_v4 = vpop.f32.mrb[23].mxu0  ;;  %v4743_v5 = vpop.f32.mrb[23].mxu1 }
 0x1fe   : > { %v3393_v6 = vpop.eup %3392  ;;  %v652_v8 = vadd.f32 %v651_v4, %v4672_v26  ;;  %v1752_v4 = vld [vmem:[#allocation11 + $0x28] sm:$0xff] }
 0x1ff   : > { %v3395_v9 = vpop.eup %3394  ;;  %1282 = vmatprep.mubr.f32.mxu1 %v3393_v6 }
 0x200   : > { %3404 = vtanh.f32 %v652_v8  ;;  %v655_v11 = vpop.f32.mrb[24].mxu0  ;;  %1283 = vmatmul.mubr.f32.gmra.mrb[68].mxu1 %v3395_v9  ;;  %v4746_v12 = vpop.f32.mrb[24].mxu1 }
 0x201   : > { %3406 = vtanh.f32 %v650_v3  ;;  %v656_v13 = vadd.f32 %v655_v11, %v4668_v25  ;;  %v657_v14 = vpop.f32.mrb[25].mxu0  ;;  %v4749_v16 = vpop.f32.mrb[25].mxu1  ;;  %v1751_v3 = vld [vmem:[#allocation11 + $0x20] sm:$0xff] }
 0x202   : > { %v3397_v23 = vpop.eup %3396  ;;  %v658_v27 = vadd.f32 %v657_v14, %v4672_v26  ;;  %v3155_v9 = vpack.c.bf16 %v1752_v4, %v1751_v3 }
 0x203   : > { %v3399_v33 = vpop.eup %3398  ;;  %1288 = vmatprep.mubr.f32.mxu1 %v3397_v23 }
 0x204   : > { %3408 = vtanh.f32 %v658_v27  ;;  %v661_v36 = vpop.f32.mrb[26].mxu0  ;;  %1289 = vmatmul.mubr.f32.gmra.mrb[70].mxu1 %v3399_v33  ;;  %v4753_v38 = vpop.f32.mrb[26].mxu1  ;;  %3156 = vmatpush1.bf16.msra.mxu0 %v3155_v9  ;;  %v1753_v27 = vld [vmem:[#allocation11 + $0x30] sm:$0xff] }
 0x205   : > { %3410 = vtanh.f32 %v656_v13  ;;  %v662_v39 = vadd.f32 %v661_v36, %v4668_v25  ;;  %v663_v41 = vpop.f32.mrb[27].mxu0  ;;  %v4756_v44 = vpop.f32.mrb[27].mxu1  ;;  %3157 = vmatprep.subr.bf16.mxu0 %v5234_v29 }
 0x206   : > { %v3401_v50 = vpop.eup %3400  ;;  %v664_v51 = vadd.f32 %v663_v41, %v4672_v26 }
 0x207   : > { %v3403_v55 = vpop.eup %3402  ;;  %1294 = vmatprep.mubr.f32.mxu1 %v3401_v50 }
 0x208   : > { %3412 = vtanh.f32 %v664_v51  ;;  %v667_v56 = vpop.f32.mrb[28].mxu0  ;;  %1295 = vmatmul.mubr.f32.gmra.mrb[72].mxu1 %v3403_v55  ;;  %v4760_v59 = vpop.f32.mrb[28].mxu1  ;;  %v1755_v55 = vld [vmem:[#allocation11 + $0x40] sm:$0xff] }
 0x209   : > { %3414 = vtanh.f32 %v662_v39  ;;  %v668_v60 = vadd.f32 %v667_v56, %v4668_v25  ;;  %v669_v61 = vpop.f32.mrb[29].mxu0  ;;  %v4763_v63 = vpop.f32.mrb[29].mxu1  ;;  %v3158_v39 = vpack.c.bf16 %v1754_v32, %v1753_v27  ;;  %v1756_v56 = vld [vmem:[#allocation11 + $0x48] sm:$0xff] }
 0x20a   : > { %v3405_v6 = vpop.eup %3404  ;;  %v670_v8 = vadd.f32 %v669_v61, %v4672_v26  ;;  %v3161_v3 = vpack.c.bf16 %v1756_v56, %v1755_v55  ;;  %v1759_v55 = vld [vmem:[#allocation11 + $0x60] sm:$0xff]  ;;  %v1760_v56 = vld [vmem:[#allocation11 + $0x68] sm:$0xff] }
 0x20b   : > { %v3407_v11 = vpop.eup %3406  ;;  %1300 = vmatprep.mubr.f32.mxu1 %v3405_v6  ;;  %3159 = vmatpush1.bf16.msra.mxu0 %v3158_v39 }
 0x20c   : > { %3416 = vtanh.f32 %v670_v8  ;;  %v673_v13 = vpop.f32.mrb[30].mxu0  ;;  %1301 = vmatmul.mubr.f32.gmra.mrb[74].mxu1 %v3407_v11  ;;  %v4767_v14 = vpop.f32.mrb[30].mxu1  ;;  %3160 = vmatprep.subr.bf16.mxu0 %v5234_v29 }
 0x20d   : > { %3418 = vtanh.f32 %v668_v60  ;;  %v674_v17 = vadd.f32 %v673_v13, %v4668_v25  ;;  %v675_v19 = vpop.f32.mrb[31].mxu0  ;;  %v4770_v23 = vpop.f32.mrb[31].mxu1 }
 0x20e   : > { %v3409_v33 = vpop.eup %3408  ;;  %v676_v36 = vadd.f32 %v675_v19, %v4672_v26  ;;  %v1758_v19 = vld [vmem:[#allocation11 + $0x58] sm:$0xff] }
 0x20f   : > { %v3411_v41 = vpop.eup %3410  ;;  %1306 = vmatprep.mubr.f32.mxu1 %v3409_v33  ;;  %3162 = vmatpush1.bf16.msra.mxu0 %v3161_v3  ;;  %v3167_v3 = vpack.c.bf16 %v1760_v56, %v1759_v55 }
 0x210   : > { %3420 = vtanh.f32 %v676_v36  ;;  %v679_v45 = vpop.f32.mrb[32].mxu0  ;;  %1307 = vmatmul.mubr.f32.gmra.mrb[76].mxu1 %v3411_v41  ;;  %v4774_v48 = vpop.f32.mrb[32].mxu1  ;;  %3163 = vmatprep.subr.bf16.mxu0 %v5234_v29 }
 0x211   : > { %3422 = vtanh.f32 %v674_v17  ;;  %v680_v50 = vadd.f32 %v679_v45, %v4668_v25  ;;  %v681_v51 = vpop.f32.mrb[33].mxu0  ;;  %v4777_v52 = vpop.f32.mrb[33].mxu1  ;;  %v1757_v17 = vld [vmem:[#allocation11 + $0x50] sm:$0xff] }
 0x212   : > { %v3413_v60 = vpop.eup %3412  ;;  %v682_v61 = vadd.f32 %v681_v51, %v4672_v26  ;;  %v3164_v33 = vpack.c.bf16 %v1758_v19, %v1757_v17 }
 0x213   : > { %v3415_v4 = vpop.eup %3414  ;;  %1312 = vmatprep.mubr.f32.mxu1 %v3413_v60 }
 0x214   : > { %3424 = vtanh.f32 %v682_v61  ;;  %v685_v6 = vpop.f32.mrb[34].mxu0  ;;  %1313 = vmatmul.mubr.f32.gmra.mrb[78].mxu1 %v3415_v4  ;;  %v4781_v8 = vpop.f32.mrb[34].mxu1  ;;  %3165 = vmatpush1.bf16.msra.mxu0 %v3164_v33 }
 0x215   : > { %3426 = vtanh.f32 %v680_v50  ;;  %v686_v9 = vadd.f32 %v685_v6, %v4668_v25  ;;  %v687_v11 = vpop.f32.mrb[35].mxu0  ;;  %v4784_v13 = vpop.f32.mrb[35].mxu1  ;;  %3166 = vmatprep.subr.bf16.mxu0 %v5234_v29 }
 0x216   : > { %v3417_v27 = vpop.eup %3416  ;;  %v688_v32 = vadd.f32 %v687_v11, %v4672_v26 }
 0x217   : > { %v3419_v36 = vpop.eup %3418  ;;  %1318 = vmatprep.mubr.f32.mxu1 %v3417_v27  ;;  %v1761_v27 = vld [vmem:[#allocation11 + $0x70] sm:$0xff] }
 0x218   : > { %3428 = vtanh.f32 %v688_v32  ;;  %v691_v39 = vpop.f32.mrb[36].mxu0  ;;  %1319 = vmatmul.mubr.f32.gmra.mrb[80].mxu1 %v3419_v36  ;;  %v4788_v41 = vpop.f32.mrb[36].mxu1  ;;  %3168 = vmatpush1.bf16.msra.mxu0 %v3167_v3  ;;  %v1762_v32 = vld [vmem:[#allocation11 + $0x78] sm:$0xff]  ;;  %v1763_v3 = vld [vmem:[#allocation11 + $0x80] sm:$0xff] }
 0x219   : > { %3430 = vtanh.f32 %v686_v9  ;;  %v692_v45 = vadd.f32 %v691_v39, %v4668_v25  ;;  %v693_v50 = vpop.f32.mrb[37].mxu0  ;;  %v4791_v51 = vpop.f32.mrb[37].mxu1  ;;  %3169 = vmatprep.subr.bf16.mxu0 %v5234_v29  ;;  %v3170_v39 = vpack.c.bf16 %v1762_v32, %v1761_v27 }
 0x21a   : > { %v3421_v60 = vpop.eup %3420  ;;  %v694_v61 = vadd.f32 %v693_v50, %v4672_v26 }
 0x21b   : > { %v3423_v4 = vpop.eup %3422  ;;  %1324 = vmatprep.mubr.f32.mxu1 %v3421_v60 }
 0x21c   : > { %3432 = vtanh.f32 %v694_v61  ;;  %v697_v6 = vpop.f32.mrb[38].mxu0  ;;  %1325 = vmatmul.mubr.f32.gmra.mrb[82].mxu1 %v3423_v4  ;;  %v4795_v11 = vpop.f32.mrb[38].mxu1  ;;  %3171 = vmatpush1.bf16.msra.mxu0 %v3170_v39  ;;  %v1764_v4 = vld [vmem:[#allocation11 + $0x88] sm:$0xff] }
 0x21d   : > { %3434 = vtanh.f32 %v692_v45  ;;  %v698_v9 = vadd.f32 %v697_v6, %v4668_v25  ;;  %v699_v17 = vpop.f32.mrb[39].mxu0  ;;  %v4798_v19 = vpop.f32.mrb[39].mxu1  ;;  %3172 = vmatprep.subr.bf16.mxu0 %v5234_v29  ;;  %v3173_v27 = vpack.c.bf16 %v1764_v4, %v1763_v3 }
 0x21e   : > { %v3425_v33 = vpop.eup %3424  ;;  %v700_v36 = vadd.f32 %v699_v17, %v4672_v26 }
 0x21f   : > { %v3427_v50 = vpop.eup %3426  ;;  %1330 = vmatprep.mubr.f32.mxu1 %v3425_v33 }
 0x220   : > { %3436 = vtanh.f32 %v700_v36  ;;  %v703_v55 = vpop.f32.mrb[40].mxu0  ;;  %1331 = vmatmul.mubr.f32.gmra.mrb[84].mxu1 %v3427_v50  ;;  %v4802_v56 = vpop.f32.mrb[40].mxu1  ;;  %3174 = vmatpush1.bf16.msra.mxu0 %v3173_v27 }
 0x221   : > { %3438 = vtanh.f32 %v698_v9  ;;  %v704_v45 = vadd.f32 %v703_v55, %v4668_v25  ;;  %v705_v60 = vpop.f32.mrb[41].mxu0  ;;  %v4805_v61 = vpop.f32.mrb[41].mxu1  ;;  %3175 = vmatprep.subr.bf16.mxu0 %v5234_v29  ;;  %v1765_v55 = vld [vmem:[#allocation11 + $0x90] sm:$0xff] }
 0x222   : > { %v3429_v6 = vpop.eup %3428  ;;  %v706_v17 = vadd.f32 %v705_v60, %v4672_v26  ;;  %v3176_v4 = vpack.c.bf16 %v1766_v20, %v1765_v55  ;;  %v3179_v55 = vpack.c.bf16 %v1768_v24, %v1767_v0 }
 0x223   : > { %v3431_v32 = vpop.eup %3430  ;;  %1336 = vmatprep.mubr.f32.mxu1 %v3429_v6 }
 0x224   : > { %3440 = vtanh.f32 %v706_v17  ;;  %v709_v33 = vpop.f32.mrb[42].mxu0  ;;  %1337 = vmatmul.mubr.f32.gmra.mrb[86].mxu1 %v3431_v32  ;;  %v4809_v36 = vpop.f32.mrb[42].mxu1  ;;  %3177 = vmatpush1.bf16.msra.mxu0 %v3176_v4 }
 0x225   : > { %3442 = vtanh.f32 %v704_v45  ;;  %v710_v9 = vadd.f32 %v709_v33, %v4668_v25  ;;  %v711_v39 = vpop.f32.mrb[43].mxu0  ;;  %v4812_v50 = vpop.f32.mrb[43].mxu1  ;;  %3178 = vmatprep.subr.bf16.mxu0 %v5234_v29 }
 0x226   : > { %v3433_v60 = vpop.eup %3432  ;;  %v712_v3 = vadd.f32 %v711_v39, %v4672_v26 }
 0x227   : > { %v3435_v6 = vpop.eup %3434  ;;  %1342 = vmatprep.mubr.f32.mxu1 %v3433_v60 }
 0x228   : > { %3444 = vtanh.f32 %v712_v3  ;;  %v715_v17 = vpop.f32.mrb[44].mxu0  ;;  %1343 = vmatmul.mubr.f32.gmra.mrb[88].mxu1 %v3435_v6  ;;  %v4816_v27 = vpop.f32.mrb[44].mxu1  ;;  %3180 = vmatpush1.bf16.msra.mxu0 %v3179_v55 }
 0x229   : > { %5256 = vst [vmem:[#allocation20_spill] sm:$0xff] %v4816_v27  ;;  %3446 = vtanh.f32 %v710_v9  ;;  %v716_v45 = vadd.f32 %v715_v17, %v4668_v25  ;;  %v717_v32 = vpop.f32.mrb[45].mxu0  ;;  %v4819_v33 = vpop.f32.mrb[45].mxu1  ;;  %3181 = vmatprep.subr.bf16.mxu0 %v5234_v29  ;;  %v1770_v27 = vld [vmem:[#allocation11 + $0xb8] sm:$0xff] }
 0x22a   : > { %5257 = vst [vmem:[#allocation21_spill] sm:$0xff] %v4819_v33  ;;  %v3437_v39 = vpop.eup %3436  ;;  %v718_v20 = vadd.f32 %v717_v32, %v4672_v26  ;;  %v3182_v24 = vpack.c.bf16 %v1770_v27, %v1769_v22  ;;  %v5264_v33 = vmov 0.0|0.0  }
 0x22b   : > { %v3439_v60 = vpop.eup %3438  ;;  %1348 = vmatprep.mubr.f32.mxu1 %v3437_v39 }
 0x22c   : > { %3448 = vtanh.f32 %v718_v20  ;;  %v721_v3 = vpop.f32.mrb[46].mxu0  ;;  %1349 = vmatmul.mubr.f32.gmra.mrb[90].mxu1 %v3439_v60  ;;  %v4823_v4 = vpop.f32.mrb[46].mxu1  ;;  %3183 = vmatpush1.bf16.msra.mxu0 %v3182_v24 }
 0x22d   : > { %5258 = vst [vmem:[#allocation22_spill] sm:$0xff] %v4823_v4  ;;  %3450 = vtanh.f32 %v716_v45  ;;  %v722_v9 = vadd.f32 %v721_v3, %v4668_v25  ;;  %v723_v6 = vpop.f32.mrb[47].mxu0  ;;  %v4826_v17 = vpop.f32.mrb[47].mxu1  ;;  %3184 = vmatprep.subr.bf16.mxu0 %v5234_v29  ;;  %v1771_v4 = vld [vmem:[#allocation11 + $0xc0] sm:$0xff]  ;;  %v1773_v29 = vld [vmem:[#allocation11 + $0xd0] sm:$0xff] }
 0x22e   : > { %5259 = vst [vmem:[#allocation23_spill] sm:$0xff] %v4826_v17  ;;  %v3441_v32 = vpop.eup %3440  ;;  %v724_v0 = vadd.f32 %v723_v6, %v4672_v26  ;;  %v1772_v17 = vld [vmem:[#allocation11 + $0xc8] sm:$0xff] }
 0x22f   : > { %v3443_v39 = vpop.eup %3442  ;;  %1354 = vmatprep.mubr.f32.mxu1 %v3441_v32  ;;  %v3185_v32 = vpack.c.bf16 %v1772_v17, %v1771_v4 }
 0x230   : > { %3452 = vtanh.f32 %v724_v0  ;;  %v727_v20 = vpop.f32.mrb[48].mxu0  ;;  %1355 = vmatmul.mubr.f32.gmra.mrb[92].mxu1 %v3443_v39  ;;  %v4830_v55 = vpop.f32.mrb[48].mxu1 }
 0x231   : > { %5260 = vst [vmem:[#allocation24_spill] sm:$0xff] %v4830_v55  ;;  %3454 = vtanh.f32 %v722_v9  ;;  %v728_v45 = vadd.f32 %v727_v20, %v4668_v25  ;;  %v729_v60 = vpop.f32.mrb[49].mxu0  ;;  %v4833_v3 = vpop.f32.mrb[49].mxu1  ;;  %3186 = vmatpush1.bf16.msra.mxu0 %v3185_v32  ;;  %v1774_v55 = vld [vmem:[#allocation11 + $0xd8] sm:$0xff]  ;;  %v1776_v32 = vld [vmem:[#allocation11 + $0xe8] sm:$0xff] }
 0x232   : > { %5261 = vst [vmem:[#allocation25_spill] sm:$0xff] %v4833_v3  ;;  %v3445_v6 = vpop.eup %3444  ;;  %v730_v22 = vadd.f32 %v729_v60, %v4672_v26  ;;  %3187 = vmatprep.subr.bf16.mxu0 %v5264_v33  ;;  %v3188_v4 = vpack.c.bf16 %v1774_v55, %v1773_v29 }
 0x233   : > { %v3447_v27 = vpop.eup %3446  ;;  %1360 = vmatprep.mubr.f32.mxu1 %v3445_v6 }
 0x234   : > { %3456 = vtanh.f32 %v730_v22  ;;  %v733_v0 = vpop.f32.mrb[50].mxu0  ;;  %1361 = vmatmul.mubr.f32.gmra.mrb[94].mxu1 %v3447_v27  ;;  %v4837_v24 = vpop.f32.mrb[50].mxu1  ;;  %v1775_v27 = vld [vmem:[#allocation11 + $0xe0] sm:$0xff] }
 0x235   : > { %5262 = vst [vmem:[#allocation26_spill] sm:$0xff] %v4837_v24  ;;  %3458 = vtanh.f32 %v728_v45  ;;  %v734_v9 = vadd.f32 %v733_v0, %v4668_v25  ;;  %v735_v39 = vpop.f32.mrb[51].mxu0  ;;  %v4840_v20 = vpop.f32.mrb[51].mxu1  ;;  %3189 = vmatpush1.bf16.msra.mxu0 %v3188_v4 }
 0x236   : > { %5263 = vst [vmem:[#allocation27_spill] sm:$0xff] %v4840_v20  ;;  %v3449_v3 = vpop.eup %3448  ;;  %v736_v60 = vadd.f32 %v735_v39, %v4672_v26  ;;  %3190 = vmatprep.subr.bf16.mxu0 %v5264_v33  ;;  %v3191_v39 = vpack.c.bf16 %v1776_v32, %v1775_v27 }
 0x237   : > { %v3451_v17 = vpop.eup %3450  ;;  %1366 = vmatprep.mubr.f32.mxu1 %v3449_v3 }
 0x238   : > { %3460 = vtanh.f32 %v736_v60  ;;  %v739_v6 = vpop.f32.mrb[52].mxu0  ;;  %1367 = vmatmul.mubr.f32.gmra.mrb[96].mxu1 %v3451_v17  ;;  %v1778_v60 = vld [vmem:[#allocation11 + $0xf8] sm:$0xff] }
 0x239   : > { %3462 = vtanh.f32 %v734_v9  ;;  %v740_v45 = vadd.f32 %v739_v6, %v4668_v25  ;;  %v741_v22 = vpop.f32.mrb[53].mxu0  ;;  %3192 = vmatpush1.bf16.msra.mxu0 %v3191_v39  ;;  %v1777_v9 = vld [vmem:[#allocation11 + $0xf0] sm:$0xff] }
 0x23a   : > { %v3453_v0 = vpop.eup %3452  ;;  %v742_v24 = vadd.f32 %v741_v22, %v4672_v26  ;;  %3193 = vmatprep.subr.bf16.mxu0 %v5264_v33  ;;  %v3194_v6 = vpack.c.bf16 %v1778_v60, %v1777_v9 }
 0x23b   : > { %v3455_v20 = vpop.eup %3454  ;;  %1372 = vmatprep.mubr.f32.mxu1 %v3453_v0 }
 0x23c   : > { %3464 = vtanh.f32 %v742_v24  ;;  %v745_v29 = vpop.f32.mrb[54].mxu0  ;;  %1373 = vmatmul.mubr.f32.gmra.mrb[98].mxu1 %v3455_v20 }
 0x23d   : > { %3466 = vtanh.f32 %v740_v45  ;;  %v746_v55 = vadd.f32 %v745_v29, %v4668_v25  ;;  %v747_v3 = vpop.f32.mrb[55].mxu0  ;;  %3195 = vmatpush1.bf16.msra.mxu0 %v3194_v6 }
 0x23e   : > { %v3457_v4 = vpop.eup %3456  ;;  %v748_v17 = vadd.f32 %v747_v3, %v4672_v26 }
 0x23f   : > { %v3459_v22 = vpop.eup %3458  ;;  %1378 = vmatprep.mubr.f32.mxu1 %v3457_v4 }
 0x240   : > { %3468 = vtanh.f32 %v748_v17  ;;  %v751_v27 = vpop.f32.mrb[56].mxu0  ;;  %1379 = vmatmul.mubr.f32.gmra.mrb[100].mxu1 %v3459_v22 }
 0x241   : > { %3470 = vtanh.f32 %v746_v55  ;;  %v752_v24 = vadd.f32 %v751_v27, %v4668_v25  ;;  %v753_v20 = vpop.f32.mrb[57].mxu0 }
 0x242   : > { %v3461_v45 = vpop.eup %3460  ;;  %v754_v32 = vadd.f32 %v753_v20, %v4672_v26 }
 0x243   : > { %v3463_v0 = vpop.eup %3462  ;;  %1384 = vmatprep.mubr.f32.mxu1 %v3461_v45 }
 0x244   : > { %3472 = vtanh.f32 %v754_v32  ;;  %v757_v39 = vpop.f32.mrb[58].mxu0  ;;  %1385 = vmatmul.mubr.f32.gmra.mrb[102].mxu1 %v3463_v0 }
 0x245   : > { %3474 = vtanh.f32 %v752_v24  ;;  %v758_v33 = vadd.f32 %v757_v39, %v4668_v25  ;;  %v759_v29 = vpop.f32.mrb[59].mxu0 }
 0x246   : > { %v3465_v3 = vpop.eup %3464  ;;  %v760_v9 = vadd.f32 %v759_v29, %v4672_v26 }
 0x247   : > { %v3467_v55 = vpop.eup %3466  ;;  %1390 = vmatprep.mubr.f32.mxu1 %v3465_v3 }
 0x248   : > { %3476 = vtanh.f32 %v760_v9  ;;  %v763_v60 = vpop.f32.mrb[60].mxu0  ;;  %1391 = vmatmul.mubr.f32.gmra.mrb[104].mxu1 %v3467_v55 }
 0x249   : > { %3478 = vtanh.f32 %v758_v33  ;;  %v764_v4 = vadd.f32 %v763_v60, %v4668_v25  ;;  %v765_v17 = vpop.f32.mrb[61].mxu0 }
 0x24a   : > { %v3469_v6 = vpop.eup %3468  ;;  %v766_v22 = vadd.f32 %v765_v17, %v4672_v26 }
 0x24b   : > { %v3471_v27 = vpop.eup %3470  ;;  %1396 = vmatprep.mubr.f32.mxu1 %v3469_v6 }
 0x24c   : > { %3480 = vtanh.f32 %v766_v22  ;;  %v769_v24 = vpop.f32.mrb[62].mxu0  ;;  %1397 = vmatmul.mubr.f32.gmra.mrb[106].mxu1 %v3471_v27 }
 0x24d   : > { %3482 = vtanh.f32 %v764_v4  ;;  %v770_v20 = vadd.f32 %v769_v24, %v4668_v25  ;;  %v771_v45 = vpop.f32.mrb[63].mxu0 }
 0x24e   : > { %v3473_v32 = vpop.eup %3472  ;;  %v772_v0 = vadd.f32 %v771_v45, %v4672_v26 }
 0x24f   : > { %v3475_v39 = vpop.eup %3474  ;;  %1402 = vmatprep.mubr.f32.mxu1 %v3473_v32 }
 0x250   : > { %3484 = vtanh.f32 %v772_v0  ;;  %v775_v33 = vpop.f32.mrb[64].mxu0  ;;  %1403 = vmatmul.mubr.f32.gmra.mrb[108].mxu1 %v3475_v39 }
 0x251   : > { %3486 = vtanh.f32 %v770_v20  ;;  %v776_v29 = vadd.f32 %v775_v33, %v4668_v25  ;;  %v777_v3 = vpop.f32.mrb[65].mxu0 }
 0x252   : > { %v3477_v9 = vpop.eup %3476  ;;  %v778_v55 = vadd.f32 %v777_v3, %v4672_v26 }
 0x253   : > { %v3479_v60 = vpop.eup %3478  ;;  %1408 = vmatprep.mubr.f32.mxu1 %v3477_v9 }
 0x254   : > { %3488 = vtanh.f32 %v778_v55  ;;  %v781_v4 = vpop.f32.mrb[66].mxu0  ;;  %1409 = vmatmul.mubr.f32.gmra.mrb[110].mxu1 %v3479_v60 }
 0x255   : > { %3490 = vtanh.f32 %v776_v29  ;;  %v782_v17 = vadd.f32 %v781_v4, %v4668_v25  ;;  %v783_v6 = vpop.f32.mrb[67].mxu0 }
 0x256   : > { %v3481_v22 = vpop.eup %3480  ;;  %v784_v27 = vadd.f32 %v783_v6, %v4672_v26 }
 0x257   : > { %v3483_v24 = vpop.eup %3482  ;;  %1414 = vmatprep.mubr.f32.mxu1 %v3481_v22 }
 0x258   : > { %3492 = vtanh.f32 %v784_v27  ;;  %v787_v20 = vpop.f32.mrb[68].mxu0  ;;  %1415 = vmatmul.mubr.f32.gmra.mrb[112].mxu1 %v3483_v24 }
 0x259   : > { %3494 = vtanh.f32 %v782_v17  ;;  %v788_v45 = vadd.f32 %v787_v20, %v4668_v25  ;;  %v789_v32 = vpop.f32.mrb[69].mxu0 }
 0x25a   : > { %v3485_v0 = vpop.eup %3484  ;;  %v790_v39 = vadd.f32 %v789_v32, %v4672_v26 }
 0x25b   : > { %v3487_v33 = vpop.eup %3486  ;;  %1420 = vmatprep.mubr.f32.mxu1 %v3485_v0 }
 0x25c   : > { %3496 = vtanh.f32 %v790_v39  ;;  %v793_v29 = vpop.f32.mrb[70].mxu0  ;;  %1421 = vmatmul.mubr.f32.gmra.mrb[114].mxu1 %v3487_v33  ;;  %v814_v33 = vadd.f32 %v4677_v31, %v4672_v26  ;;  %v818_v31 = vadd.f32 %v4680_v34, %v4668_v25 }
 0x25d   : > { %3498 = vtanh.f32 %v788_v45  ;;  %v794_v3 = vadd.f32 %v793_v29, %v4668_v25  ;;  %v795_v9 = vpop.f32.mrb[71].mxu0 }
 0x25e   : > { %v3489_v55 = vpop.eup %3488  ;;  %v796_v60 = vadd.f32 %v795_v9, %v4672_v26  ;;  %v812_v9 = vadd.f32 %v4674_v28, %v4668_v25  ;;  %v824_v28 = vadd.f32 %v4686_v40, %v4668_v25 }
 0x25f   : > { %v3491_v4 = vpop.eup %3490  ;;  %1426 = vmatprep.mubr.f32.mxu1 %v3489_v55 }
 0x260   : > { %3500 = vtanh.f32 %v796_v60  ;;  %v799_v17 = vpop.f32.mrb[72].mxu0  ;;  %1427 = vmatmul.mubr.f32.gmra.mrb[116].mxu1 %v3491_v4  ;;  %v820_v60 = vadd.f32 %v4683_v37, %v4672_v26 }
 0x261   : > { %3502 = vtanh.f32 %v794_v3  ;;  %v800_v6 = vadd.f32 %v799_v17, %v4668_v25  ;;  %v801_v22 = vpop.f32.mrb[73].mxu0 }
 0x262   : > { %v3493_v27 = vpop.eup %3492  ;;  %v802_v24 = vadd.f32 %v801_v22, %v4672_v26 }
 0x263   : > { %v3495_v20 = vpop.eup %3494  ;;  %1432 = vmatprep.mubr.f32.mxu1 %v3493_v27  ;;  %v832_v27 = vadd.f32 %v4695_v49, %v4672_v26  ;;  %v836_v49 = vadd.f32 %v4698_v54, %v4668_v25  ;;  %v848_v54 = vadd.f32 %v4710_v7, %v4668_v25  ;;  %v860_v7 = vadd.f32 %v4722_v30, %v4668_v25 }
 0x264   : > { %3504 = vtanh.f32 %v802_v24  ;;  %v805_v45 = vpop.f32.mrb[74].mxu0  ;;  %1433 = vmatmul.mubr.f32.gmra.mrb[118].mxu1 %v3495_v20  ;;  %v838_v20 = vadd.f32 %v4701_v57, %v4672_v26  ;;  %v850_v57 = vadd.f32 %v4713_v10, %v4672_v26  ;;  %v862_v10 = vadd.f32 %v4725_v35, %v4672_v26 }
 0x265   : > { %3506 = vtanh.f32 %v800_v6  ;;  %v806_v32 = vadd.f32 %v805_v45, %v4668_v25  ;;  %v807_v0 = vpop.f32.mrb[75].mxu0  ;;  %v826_v6 = vadd.f32 %v4689_v43, %v4672_v26  ;;  %v830_v43 = vadd.f32 %v4692_v46, %v4668_v25 }
 0x266   : > { %v3497_v39 = vpop.eup %3496  ;;  %v808_v29 = vadd.f32 %v807_v0, %v4672_v26  ;;  %v842_v46 = vadd.f32 %v4704_v62, %v4668_v25  ;;  %v854_v62 = vadd.f32 %v4716_v15, %v4668_v25  ;;  %v866_v15 = vadd.f32 %v4728_v42, %v4668_v25 }
 0x267   : > { %v3499_v3 = vpop.eup %3498  ;;  %1438 = vmatprep.mubr.f32.mxu1 %v3497_v39  ;;  %v874_v35 = vadd.f32 %v4737_v58, %v4672_v26  ;;  %v872_v30 = vadd.f32 %v4734_v53, %v4668_v25  ;;  %v878_v42 = vadd.f32 %v4740_v1, %v4668_v25  ;;  %v886_v58 = vadd.f32 %v4749_v16, %v4672_v26 }
 0x268   : > { %3508 = vtanh.f32 %v808_v29  ;;  %1439 = vmatmul.mubr.f32.gmra.mrb[120].mxu1 %v3499_v3  ;;  %v884_v53 = vadd.f32 %v4746_v12, %v4668_v25  ;;  %v890_v1 = vadd.f32 %v4753_v38, %v4668_v25  ;;  %v898_v16 = vadd.f32 %v4763_v63, %v4672_v26 }
 0x269   : > { %3510 = vtanh.f32 %v806_v32  ;;  %v844_v32 = vadd.f32 %v4707_v2, %v4672_v26  ;;  %v856_v2 = vadd.f32 %v4719_v18, %v4672_v26  ;;  %v868_v18 = vadd.f32 %v4731_v47, %v4672_v26 }
 0x26a   : > { %v3501_v55 = vpop.eup %3500  ;;  %3512 = vtanh.f32 %v814_v33  ;;  %v880_v47 = vadd.f32 %v4743_v5, %v4672_v26  ;;  %v892_v5 = vadd.f32 %v4756_v44, %v4672_v26  ;;  %v896_v12 = vadd.f32 %v4760_v59, %v4668_v25 }
 0x26b   : > { %v3503_v4 = vpop.eup %3502  ;;  %1444 = vmatprep.mubr.f32.mxu1 %v3501_v55  ;;  %3514 = vtanh.f32 %v812_v9  ;;  %v904_v44 = vadd.f32 %v4770_v23, %v4672_v26  ;;  %v902_v38 = vadd.f32 %v4767_v14, %v4668_v25  ;;  %v910_v63 = vadd.f32 %v4777_v52, %v4672_v26  ;;  %v1158_v52 = vld [vmem:[#allocation10] sm:$0x3] }
 0x26c   : > { %1445 = vmatmul.mubr.f32.gmra.mrb[122].mxu1 %v3503_v4  ;;  %3516 = vtanh.f32 %v820_v60  ;;  %v908_v59 = vadd.f32 %v4774_v48, %v4668_v25  ;;  %v916_v23 = vadd.f32 %v4784_v13, %v4672_v26  ;;  %v914_v14 = vadd.f32 %v4781_v8, %v4668_v25 }
 0x26d   : > { %3518 = vtanh.f32 %v818_v31  ;;  %v920_v13 = vadd.f32 %v4788_v41, %v4668_v25  ;;  %v5266_v8 = vsub.s32 1, %v4662_v21  ;;  %v926_v41 = vadd.f32 %v4795_v11, %v4668_v25 }
 0x26e   : > { %v3505_v17 = vpop.eup %3504  ;;  %3520 = vtanh.f32 %v826_v6  ;;  %v932_v11 = vadd.f32 %v4802_v56, %v4668_v25  ;;  %v938_v56 = vadd.f32 %v4809_v36, %v4668_v25  ;;  %v5268_v36 = vld [vmem:[#allocation20_spill] sm:$0xff] }
 0x26f   : > { %v3507_v22 = vpop.eup %3506  ;;  %1450 = vmatprep.mubr.f32.mxu1 %v3505_v17  ;;  %3522 = vtanh.f32 %v824_v28 }
 0x270   : > { %1451 = vmatmul.mubr.f32.gmra.mrb[124].mxu1 %v3507_v22  ;;  %3524 = vtanh.f32 %v832_v27 }
 0x271   : > { %3526 = vtanh.f32 %v830_v43 }
 0x272   : > { %v3509_v37 = vpop.eup %3508  ;;  %3528 = vtanh.f32 %v838_v20 }
 0x273   : > { %v3511_v24 = vpop.eup %3510  ;;  %1456 = vmatprep.mubr.f32.mxu1 %v3509_v37  ;;  %3530 = vtanh.f32 %v836_v49 }
 0x274   : > { %v3513_v34 = vpop.eup %3512  ;;  %1457 = vmatmul.mubr.f32.gmra.mrb[126].mxu1 %v3511_v24  ;;  %3532 = vtanh.f32 %v844_v32 }
 0x275   : > { %1462 = vmatprep.mubr.f32.mxu1 %v3513_v34  ;;  %v3515_v45 = vpop.eup %3514  ;;  %3534 = vtanh.f32 %v842_v46  ;;  %v922_v46 = vadd.f32 %v4791_v51, %v4672_v26  ;;  %v928_v51 = vadd.f32 %v4798_v19, %v4672_v26 }
 0x276   : > { %v3517_v40 = vpop.eup %3516  ;;  %3536 = vtanh.f32 %v850_v57 }
 0x277   : > { %v3519_v0 = vpop.eup %3518  ;;  %3538 = vtanh.f32 %v848_v54  ;;  %v4952_v54 = vrot.slane %v1158_v52, %v5266_v8 }
 0x278   : > { %1463 = vmatmul.mubr.f32.gmra.mrb[128].mxu1 %v3515_v45  ;;  %v3521_v39 = vpop.eup %3520  ;;  %3540 = vtanh.f32 %v856_v2 }
 0x279   : > { %1468 = vmatprep.mubr.f32.mxu1 %v3517_v40  ;;  %v3523_v33 = vpop.eup %3522  ;;  %3542 = vtanh.f32 %v854_v62 }
 0x27a   : > { %v3525_v29 = vpop.eup %3524  ;;  %3544 = vtanh.f32 %v862_v10 }
 0x27b   : > { %v3527_v3 = vpop.eup %3526  ;;  %3546 = vtanh.f32 %v860_v7 }
 0x27c   : > { %1469 = vmatmul.mubr.f32.gmra.mrb[130].mxu1 %v3519_v0  ;;  %v3529_v9 = vpop.eup %3528  ;;  %3548 = vtanh.f32 %v868_v18 }
 0x27d   : > { %1474 = vmatprep.mubr.f32.mxu1 %v3521_v39  ;;  %v3531_v55 = vpop.eup %3530  ;;  %3550 = vtanh.f32 %v866_v15 }
 0x27e   : > { %v3533_v60 = vpop.eup %3532  ;;  %3552 = vtanh.f32 %v874_v35 }
 0x27f   : > { %v3535_v4 = vpop.eup %3534  ;;  %3554 = vtanh.f32 %v872_v30 }
 0x280   : > { %1475 = vmatmul.mubr.f32.gmra.mrb[132].mxu1 %v3523_v33  ;;  %v3537_v31 = vpop.eup %3536  ;;  %3556 = vtanh.f32 %v880_v47  ;;  %v5265_v33 = vsub.s32 0, %v4662_v21 }
 0x281   : > { %1480 = vmatprep.mubr.f32.mxu1 %v3525_v29  ;;  %v3539_v17 = vpop.eup %3538  ;;  %3558 = vtanh.f32 %v878_v42 }
 0x282   : > { %v3541_v6 = vpop.eup %3540  ;;  %3560 = vtanh.f32 %v886_v58  ;;  %v4946_v29 = vrot.slane %v1158_v52, %v5265_v33  ;;  %v5272_v33 = vld [vmem:[#allocation24_spill] sm:$0xff] }
 0x283   : > { %v3543_v22 = vpop.eup %3542  ;;  %3562 = vtanh.f32 %v884_v53 }
 0x284   : > { %1481 = vmatmul.mubr.f32.gmra.mrb[134].mxu1 %v3527_v3  ;;  %v3545_v28 = vpop.eup %3544  ;;  %3564 = vtanh.f32 %v892_v5 }
 0x285   : > { %1486 = vmatprep.mubr.f32.mxu1 %v3529_v9  ;;  %v3547_v37 = vpop.eup %3546  ;;  %3566 = vtanh.f32 %v890_v1 }
 0x286   : > { %v3549_v27 = vpop.eup %3548  ;;  %3568 = vtanh.f32 %v898_v16  ;;  %v5269_v16 = vld [vmem:[#allocation23_spill] sm:$0xff] }
 0x287   : > { %v3551_v24 = vpop.eup %3550  ;;  %3570 = vtanh.f32 %v896_v12 }
 0x288   : > { %1487 = vmatmul.mubr.f32.gmra.mrb[136].mxu1 %v3531_v55  ;;  %v3553_v34 = vpop.eup %3552  ;;  %3572 = vtanh.f32 %v904_v44 }
 0x289   : > { %1492 = vmatprep.mubr.f32.mxu1 %v3533_v60  ;;  %v3555_v43 = vpop.eup %3554  ;;  %3574 = vtanh.f32 %v902_v38  ;;  %v934_v60 = vadd.f32 %v4805_v61, %v4672_v26  ;;  %v940_v61 = vadd.f32 %v4812_v50, %v4672_v26 }
 0x28a   : > { %v3557_v20 = vpop.eup %3556  ;;  %3576 = vtanh.f32 %v910_v63  ;;  %v5270_v63 = vld [vmem:[#allocation22_spill] sm:$0xff] }
 0x28b   : > { %v3559_v45 = vpop.eup %3558  ;;  %3578 = vtanh.f32 %v908_v59 }
 0x28c   : > { %1493 = vmatmul.mubr.f32.gmra.mrb[138].mxu1 %v3535_v4  ;;  %v3561_v40 = vpop.eup %3560  ;;  %3580 = vtanh.f32 %v916_v23  ;;  %v5271_v23 = vld [vmem:[#allocation25_spill] sm:$0xff] }
 0x28d   : > { %1498 = vmatprep.mubr.f32.mxu1 %v3537_v31  ;;  %v3563_v49 = vpop.eup %3562  ;;  %3582 = vtanh.f32 %v914_v14 }
 0x28e   : > { %v3565_v32 = vpop.eup %3564  ;;  %3584 = vtanh.f32 %v922_v46 }
 0x28f   : > { %v3567_v0 = vpop.eup %3566  ;;  %3586 = vtanh.f32 %v920_v13  ;;  %v956_v13 = vadd.f32 %v5272_v33, %v4668_v25 }
 0x290   : > { %1499 = vmatmul.mubr.f32.gmra.mrb[140].mxu1 %v3539_v17  ;;  %v3569_v39 = vpop.eup %3568  ;;  %3588 = vtanh.f32 %v928_v51 }
 0x291   : > { %1504 = vmatprep.mubr.f32.mxu1 %v3541_v6  ;;  %v3571_v57 = vpop.eup %3570 }
 0x292   : > { %v3573_v48 = vpop.eup %3572 }
 0x293   : > { %v3575_v2 = vpop.eup %3574 }
 0x294   : > { %1505 = vmatmul.mubr.f32.gmra.mrb[142].mxu1 %v3543_v22  ;;  %v3577_v9 = vpop.eup %3576 }
 0x295   : > { %1510 = vmatprep.mubr.f32.mxu1 %v3545_v28  ;;  %v3579_v7 = vpop.eup %3578  ;;  %v5267_v28 = vld [vmem:[#allocation21_spill] sm:$0xff] }
 0x296   : > { %v3581_v18 = vpop.eup %3580  ;;  %v946_v50 = vadd.f32 %v5267_v28, %v4672_v26 }
 0x297   : > { %v3583_v35 = vpop.eup %3582 }
 0x298   : > { %1511 = vmatmul.mubr.f32.gmra.mrb[144].mxu1 %v3547_v37  ;;  %v3585_v6 = vpop.eup %3584 }
 0x299   : > { %1516 = vmatprep.mubr.f32.mxu1 %v3549_v27  ;;  %v3587_v42 = vpop.eup %3586 }
 0x29a   : > { %v3589_v37 = vpop.eup %3588 }
 0x29c   : > { %1517 = vmatmul.mubr.f32.gmra.mrb[146].mxu1 %v3551_v24  ;;  %v944_v24 = vadd.f32 %v5268_v36, %v4668_v25 }
 0x29d   : > { %1522 = vmatprep.mubr.f32.mxu1 %v3553_v34 }
 0x2a0   : > { %1523 = vmatmul.mubr.f32.gmra.mrb[148].mxu1 %v3555_v43  ;;  %v952_v43 = vadd.f32 %v5269_v16, %v4672_v26 }
 0x2a1   : > { %1528 = vmatprep.mubr.f32.mxu1 %v3557_v20 }
 0x2a4   : > { %1529 = vmatmul.mubr.f32.gmra.mrb[150].mxu1 %v3559_v45 }
 0x2a5   : > { %1534 = vmatprep.mubr.f32.mxu1 %v3561_v40 }
 0x2a8   : > { %1535 = vmatmul.mubr.f32.gmra.mrb[152].mxu1 %v3563_v49  ;;  %v950_v49 = vadd.f32 %v5270_v63, %v4668_v25 }
 0x2a9   : > { %1540 = vmatprep.mubr.f32.mxu1 %v3565_v32 }
 0x2ac   : > { %1541 = vmatmul.mubr.f32.gmra.mrb[154].mxu1 %v3567_v0  ;;  %v958_v0 = vadd.f32 %v5271_v23, %v4672_v26 }
 0x2ad   : > { %1546 = vmatprep.mubr.f32.mxu1 %v3569_v39 }
 0x2b0   : > { %1547 = vmatmul.mubr.f32.gmra.mrb[156].mxu1 %v3571_v57 }
 0x2b1   : > { %1552 = vmatprep.mubr.f32.mxu1 %v3573_v48 }
 0x2b3   : > { %v1236_v3 = vpop.f32.mrb[52].mxu1 }
 0x2b4   : > { %v1237_v62 = vadd.f32 %v1236_v3, %v4946_v29  ;;  %v1238_v10 = vpop.f32.mrb[53].mxu1  ;;  %1553 = vmatmul.mubr.f32.gmra.mrb[158].mxu1 %v3575_v2  ;;  %v5273_v2 = vld [vmem:[#allocation27_spill] sm:$0xff] }
 0x2b5   : > { %v1239_v55 = vadd.f32 %v1238_v10, %v4952_v54  ;;  %1558 = vmatprep.mubr.f32.mxu1 %v3577_v9  ;;  %v964_v3 = vadd.f32 %v5273_v2, %v4672_v26 }
 0x2b7   : > { %3590 = vtanh.f32 %v1239_v55  ;;  %v1242_v19 = vpop.f32.mrb[54].mxu1 }
 0x2b8   : > { %3592 = vtanh.f32 %v1237_v62  ;;  %v1243_v4 = vadd.f32 %v1242_v19, %v4946_v29  ;;  %v1244_v31 = vpop.f32.mrb[55].mxu1  ;;  %1559 = vmatmul.mubr.f32.gmra.mrb[160].mxu1 %v3579_v7  ;;  %v5274_v7 = vld [vmem:[#allocation26_spill] sm:$0xff] }
 0x2b9   : > { %3594 = vtanh.f32 %v926_v41  ;;  %v1245_v15 = vadd.f32 %v1244_v31, %v4952_v54  ;;  %1564 = vmatprep.mubr.f32.mxu1 %v3581_v18  ;;  %v962_v19 = vadd.f32 %v5274_v7, %v4668_v25 }
 0x2ba   : > { %3596 = vtanh.f32 %v934_v60 }
 0x2bb   : > { %3598 = vtanh.f32 %v1245_v15  ;;  %v1248_v17 = vpop.f32.mrb[56].mxu1 }
 0x2bc   : > { %3600 = vtanh.f32 %v1243_v4  ;;  %v1249_v30 = vadd.f32 %v1248_v17, %v4946_v29  ;;  %v1250_v47 = vpop.f32.mrb[57].mxu1  ;;  %1565 = vmatmul.mubr.f32.gmra.mrb[162].mxu1 %v3583_v35 }
 0x2bd   : > { %3602 = vtanh.f32 %v932_v11  ;;  %v1251_v22 = vadd.f32 %v1250_v47, %v4952_v54  ;;  %1570 = vmatprep.mubr.f32.mxu1 %v3585_v6 }
 0x2be   : > { %3604 = vtanh.f32 %v940_v61 }
 0x2bf   : > { %3606 = vtanh.f32 %v1251_v22  ;;  %v1254_v58 = vpop.f32.mrb[58].mxu1 }
 0x2c0   : > { %3608 = vtanh.f32 %v1249_v30  ;;  %v1255_v27 = vadd.f32 %v1254_v58, %v4946_v29  ;;  %v1256_v53 = vpop.f32.mrb[59].mxu1  ;;  %1571 = vmatmul.mubr.f32.gmra.mrb[164].mxu1 %v3587_v42 }
 0x2c1   : > { %v3591_v5 = vpop.eup %3590  ;;  %3610 = vtanh.f32 %v938_v56  ;;  %v1257_v34 = vadd.f32 %v1256_v53, %v4952_v54  ;;  %1576 = vmatprep.mubr.f32.mxu1 %v3589_v37 }
 0x2c2   : > { %v3593_v1 = vpop.eup %3592  ;;  %3612 = vtanh.f32 %v946_v50  ;;  %1843 = vmatprep.mubr.f32.mxu0 %v3591_v5 }
 0x2c3   : > { %v3595_v20 = vpop.eup %3594  ;;  %3614 = vtanh.f32 %v1257_v34  ;;  %v1260_v12 = vpop.f32.mrb[60].mxu1  ;;  %1844 = vmatmul.mubr.f32.vlgmr.msra.gmra.mrb[76].mxu0 %v3593_v1 }
 0x2c4   : > { %v3597_v44 = vpop.eup %3596  ;;  %3616 = vtanh.f32 %v1255_v27  ;;  %v1261_v45 = vadd.f32 %v1260_v12, %v4946_v29  ;;  %v1262_v40 = vpop.f32.mrb[61].mxu1  ;;  %1577 = vmatmul.mubr.f32.gmra.mrb[166].mxu1 %v3595_v20 }
 0x2c5   : > { %v3599_v38 = vpop.eup %3598  ;;  %3618 = vtanh.f32 %v944_v24  ;;  %v1263_v32 = vadd.f32 %v1262_v40, %v4952_v54  ;;  %1582 = vmatprep.mubr.f32.mxu1 %v3597_v44 }
 0x2c6   : > { %v3601_v59 = vpop.eup %3600  ;;  %3620 = vtanh.f32 %v952_v43  ;;  %1848 = vmatprep.mubr.f32.mxu0 %v3599_v38 }
 0x2c7   : > { %v3603_v39 = vpop.eup %3602  ;;  %3622 = vtanh.f32 %v1263_v32  ;;  %v1266_v14 = vpop.f32.mrb[62].mxu1  ;;  %1849 = vmatmul.mubr.f32.gmra.mrb[78].mxu0 %v3601_v59 }
 0x2c8   : > { %v3605_v52 = vpop.eup %3604  ;;  %3624 = vtanh.f32 %v1261_v45  ;;  %v1267_v46 = vadd.f32 %v1266_v14, %v4946_v29  ;;  %v1268_v57 = vpop.f32.mrb[63].mxu1  ;;  %1583 = vmatmul.mubr.f32.gmra.mrb[168].mxu1 %v3603_v39  ;;  %v5275_v45 = vmov 0.0  }
 0x2c9   : > { %v3607_v48 = vpop.eup %3606  ;;  %3626 = vtanh.f32 %v950_v49  ;;  %v1269_v8 = vadd.f32 %v1268_v57, %v4952_v54  ;;  %1588 = vmatprep.mubr.f32.mxu1 %v3605_v52 }
 0x2ca   : > { %v3609_v51 = vpop.eup %3608  ;;  %3628 = vtanh.f32 %v958_v0  ;;  %1853 = vmatprep.mubr.f32.mxu0 %v3607_v48 }
 0x2cb   : > { %v3611_v9 = vpop.eup %3610  ;;  %3630 = vtanh.f32 %v1269_v8  ;;  %v1272_v62 = vpop.f32.mrb[64].mxu1  ;;  %1854 = vmatmul.mubr.f32.gmra.mrb[80].mxu0 %v3609_v51 }
 0x2cc   : > { %v3613_v10 = vpop.eup %3612  ;;  %3632 = vtanh.f32 %v1267_v46  ;;  %v1273_v41 = vadd.f32 %v1272_v62, %v4946_v29  ;;  %v1274_v55 = vpop.f32.mrb[65].mxu1  ;;  %1589 = vmatmul.mubr.f32.gmra.mrb[170].mxu1 %v3611_v9 }
 0x2cd   : > { %v3615_v60 = vpop.eup %3614  ;;  %3634 = vtanh.f32 %v956_v13  ;;  %v1275_v18 = vadd.f32 %v1274_v55, %v4952_v54  ;;  %1594 = vmatprep.mubr.f32.mxu1 %v3613_v10 }
 0x2ce   : > { %v3617_v26 = vpop.eup %3616  ;;  %3636 = vtanh.f32 %v964_v3  ;;  %1858 = vmatprep.mubr.f32.mxu0 %v3615_v60 }
 0x2cf   : > { %v3619_v4 = vpop.eup %3618  ;;  %3638 = vtanh.f32 %v1275_v18  ;;  %v1278_v31 = vpop.f32.mrb[66].mxu1  ;;  %1859 = vmatmul.mubr.f32.gmra.mrb[82].mxu0 %v3617_v26 }
 0x2d0   : > { %v3621_v11 = vpop.eup %3620  ;;  %3640 = vtanh.f32 %v1273_v41  ;;  %v1279_v15 = vadd.f32 %v1278_v31, %v4946_v29  ;;  %v1280_v61 = vpop.f32.mrb[67].mxu1  ;;  %1595 = vmatmul.mubr.f32.gmra.mrb[172].mxu1 %v3619_v4 }
 0x2d1   : > { %v3623_v35 = vpop.eup %3622  ;;  %3642 = vtanh.f32 %v962_v19  ;;  %v1281_v25 = vadd.f32 %v1280_v61, %v4952_v54  ;;  %1600 = vmatprep.mubr.f32.mxu1 %v3621_v11  ;;  %v4197_v61 = vmov 0  }
 0x2d2   : > { %v3625_v17 = vpop.eup %3624  ;;  %1863 = vmatprep.mubr.f32.mxu0 %v3623_v35  ;;  %3354 = vset.pattern.permute.xlu0 %v4197_v61  ;;  %v2292_v35 = vld [vmem:[%s5224_s7] sm:$0xff] }
 0x2d3   : > { %v3627_v6 = vpop.eup %3626  ;;  %3644 = vtanh.f32 %v1281_v25  ;;  %v1284_v30 = vpop.f32.mrb[68].mxu1  ;;  %1864 = vmatmul.mubr.f32.gmra.mrb[84].mxu0 %v3625_v17  ;;  %2296 = vperm.xlu0 %3354, %v2292_v35  }
 0x2d4   : > { %v3629_v47 = vpop.eup %3628  ;;  %3646 = vtanh.f32 %v1279_v15  ;;  %v1285_v56 = vadd.f32 %v1284_v30, %v4946_v29  ;;  %v1286_v22 = vpop.f32.mrb[69].mxu1  ;;  %1601 = vmatmul.mubr.f32.gmra.mrb[174].mxu1 %v3627_v6 }
 0x2d5   : > { %v3631_v28 = vpop.eup %3630  ;;  %v1287_v50 = vadd.f32 %v1286_v22, %v4952_v54  ;;  %1606 = vmatprep.mubr.f32.mxu1 %v3629_v47  ;;  %v2293_v22 = vld [vmem:[%s5224_s7 + $0x8] sm:$0xff] }
 0x2d6   : > { %v3633_v42 = vpop.eup %3632  ;;  %1868 = vmatprep.mubr.f32.mxu0 %v3631_v28 }
 0x2d7   : > { %v3635_v58 = vpop.eup %3634  ;;  %3648 = vtanh.f32 %v1287_v50  ;;  %v1290_v37 = vpop.f32.mrb[70].mxu1  ;;  %1869 = vmatmul.mubr.f32.gmra.mrb[86].mxu0 %v3633_v42  ;;  %2301 = vperm.xlu0 %3354, %v2293_v22  }
 0x2d8   : > { %v3637_v27 = vpop.eup %3636  ;;  %3650 = vtanh.f32 %v1285_v56  ;;  %v1291_v53 = vadd.f32 %v1290_v37, %v4946_v29  ;;  %v1292_v5 = vpop.f32.mrb[71].mxu1  ;;  %1607 = vmatmul.mubr.f32.gmra.mrb[176].mxu1 %v3635_v58 }
 0x2d9   : > { %v3639_v36 = vpop.eup %3638  ;;  %v1293_v24 = vadd.f32 %v1292_v5, %v4952_v54  ;;  %1612 = vmatprep.mubr.f32.mxu1 %v3637_v27 }
 0x2da   : > { %v3641_v34 = vpop.eup %3640  ;;  %1873 = vmatprep.mubr.f32.mxu0 %v3639_v36 }
 0x2db   : > { %v3643_v1 = vpop.eup %3642  ;;  %3652 = vtanh.f32 %v1293_v24  ;;  %v1296_v16 = vpop.f32.mrb[72].mxu1  ;;  %1874 = vmatmul.mubr.f32.gmra.mrb[88].mxu0 %v3641_v34 }
 0x2dc   : > { %3654 = vtanh.f32 %v1291_v53  ;;  %v1297_v43 = vadd.f32 %v1296_v16, %v4946_v29  ;;  %v1298_v20 = vpop.f32.mrb[73].mxu1  ;;  %1613 = vmatmul.mubr.f32.gmra.mrb[178].mxu1 %v3643_v1 }
 0x2dd   : > { %v3645_v12 = vpop.eup %3644  ;;  %v1299_v44 = vadd.f32 %v1298_v20, %v4952_v54  ;;  %2393 = vmatprep.mubr.f32.mxu1 %v5275_v45 }
 0x2de   : > { %v3647_v40 = vpop.eup %3646  ;;  %1878 = vmatprep.mubr.f32.mxu0 %v3645_v12 }
 0x2df   : > { %3656 = vtanh.f32 %v1299_v44  ;;  %v1302_v38 = vpop.f32.mrb[74].mxu1  ;;  %1879 = vmatmul.mubr.f32.gmra.mrb[90].mxu0 %v3647_v40 }
 0x2e0   : > { %3658 = vtanh.f32 %v1297_v43  ;;  %v1303_v63 = vadd.f32 %v1302_v38, %v4946_v29  ;;  %v1304_v49 = vpop.f32.mrb[75].mxu1 }
 0x2e1   : > { %v3649_v32 = vpop.eup %3648  ;;  %v1305_v59 = vadd.f32 %v1304_v49, %v4952_v54 }
 0x2e2   : > { %v3651_v23 = vpop.eup %3650  ;;  %1883 = vmatprep.mubr.f32.mxu0 %v3649_v32 }
 0x2e3   : > { %3660 = vtanh.f32 %v1305_v59  ;;  %v1308_v0 = vpop.f32.mrb[76].mxu1  ;;  %1884 = vmatmul.mubr.f32.gmra.mrb[92].mxu0 %v3651_v23 }
 0x2e4   : > { %3662 = vtanh.f32 %v1303_v63  ;;  %v1309_v39 = vadd.f32 %v1308_v0, %v4946_v29  ;;  %v1310_v14 = vpop.f32.mrb[77].mxu1 }
 0x2e5   : > { %v3653_v52 = vpop.eup %3652  ;;  %v1311_v46 = vadd.f32 %v1310_v14, %v4952_v54 }
 0x2e6   : > { %v3655_v57 = vpop.eup %3654  ;;  %1888 = vmatprep.mubr.f32.mxu0 %v3653_v52 }
 0x2e7   : > { %3664 = vtanh.f32 %v1311_v46  ;;  %v1314_v48 = vpop.f32.mrb[78].mxu1  ;;  %1889 = vmatmul.mubr.f32.gmra.mrb[94].mxu0 %v3655_v57 }
 0x2e8   : > { %3666 = vtanh.f32 %v1309_v39  ;;  %v1315_v33 = vadd.f32 %v1314_v48, %v4946_v29  ;;  %v1316_v13 = vpop.f32.mrb[79].mxu1 }
 0x2e9   : > { %v3657_v8 = vpop.eup %3656  ;;  %v1317_v51 = vadd.f32 %v1316_v13, %v4952_v54 }
 0x2ea   : > { %v3659_v2 = vpop.eup %3658  ;;  %1893 = vmatprep.mubr.f32.mxu0 %v3657_v8 }
 0x2eb   : > { %3668 = vtanh.f32 %v1317_v51  ;;  %v1320_v3 = vpop.f32.mrb[80].mxu1  ;;  %1894 = vmatmul.mubr.f32.gmra.mrb[96].mxu0 %v3659_v2 }
 0x2ec   : > { %3670 = vtanh.f32 %v1315_v33  ;;  %v1321_v9 = vadd.f32 %v1320_v3, %v4946_v29  ;;  %v1322_v62 = vpop.f32.mrb[81].mxu1 }
 0x2ed   : > { %v3661_v10 = vpop.eup %3660  ;;  %v1323_v41 = vadd.f32 %v1322_v62, %v4952_v54 }
 0x2ee   : > { %v3663_v55 = vpop.eup %3662  ;;  %1898 = vmatprep.mubr.f32.mxu0 %v3661_v10 }
 0x2ef   : > { %3672 = vtanh.f32 %v1323_v41  ;;  %v1326_v60 = vpop.f32.mrb[82].mxu1  ;;  %1899 = vmatmul.mubr.f32.gmra.mrb[98].mxu0 %v3663_v55 }
 0x2f0   : > { %3674 = vtanh.f32 %v1321_v9  ;;  %v1327_v7 = vadd.f32 %v1326_v60, %v4946_v29  ;;  %v1328_v19 = vpop.f32.mrb[83].mxu1 }
 0x2f1   : > { %v3665_v18 = vpop.eup %3664  ;;  %v1329_v26 = vadd.f32 %v1328_v19, %v4952_v54 }
 0x2f2   : > { %v3667_v4 = vpop.eup %3666  ;;  %1903 = vmatprep.mubr.f32.mxu0 %v3665_v18 }
 0x2f3   : > { %3676 = vtanh.f32 %v1329_v26  ;;  %v1332_v31 = vpop.f32.mrb[84].mxu1  ;;  %1904 = vmatmul.mubr.f32.gmra.mrb[100].mxu0 %v3667_v4 }
 0x2f4   : > { %3678 = vtanh.f32 %v1327_v7  ;;  %v1333_v11 = vadd.f32 %v1332_v31, %v4946_v29  ;;  %v1334_v15 = vpop.f32.mrb[85].mxu1 }
 0x2f5   : > { %v3669_v25 = vpop.eup %3668  ;;  %v1335_v17 = vadd.f32 %v1334_v15, %v4952_v54 }
 0x2f6   : > { %v3671_v6 = vpop.eup %3670  ;;  %1908 = vmatprep.mubr.f32.mxu0 %v3669_v25 }
 0x2f7   : > { %3680 = vtanh.f32 %v1335_v17  ;;  %v1338_v30 = vpop.f32.mrb[86].mxu1  ;;  %1909 = vmatmul.mubr.f32.gmra.mrb[102].mxu0 %v3671_v6 }
 0x2f8   : > { %3682 = vtanh.f32 %v1333_v11  ;;  %v1339_v47 = vadd.f32 %v1338_v30, %v4946_v29  ;;  %v1340_v56 = vpop.f32.mrb[87].mxu1 }
 0x2f9   : > { %v3673_v28 = vpop.eup %3672  ;;  %v1341_v50 = vadd.f32 %v1340_v56, %v4952_v54 }
 0x2fa   : > { %v3675_v42 = vpop.eup %3674  ;;  %1913 = vmatprep.mubr.f32.mxu0 %v3673_v28 }
 0x2fb   : > { %3684 = vtanh.f32 %v1341_v50  ;;  %v1344_v58 = vpop.f32.mrb[88].mxu1  ;;  %1914 = vmatmul.mubr.f32.gmra.mrb[104].mxu0 %v3675_v42 }
 0x2fc   : > { %3686 = vtanh.f32 %v1339_v47  ;;  %v1345_v37 = vadd.f32 %v1344_v58, %v4946_v29  ;;  %v1346_v27 = vpop.f32.mrb[89].mxu1 }
 0x2fd   : > { %v3677_v53 = vpop.eup %3676  ;;  %v1347_v5 = vadd.f32 %v1346_v27, %v4952_v54 }
 0x2fe   : > { %v3679_v36 = vpop.eup %3678  ;;  %1918 = vmatprep.mubr.f32.mxu0 %v3677_v53 }
 0x2ff   : > { %3688 = vtanh.f32 %v1347_v5  ;;  %v1350_v24 = vpop.f32.mrb[90].mxu1  ;;  %1919 = vmatmul.mubr.f32.gmra.mrb[106].mxu0 %v3679_v36 }
 0x300   : > { %3690 = vtanh.f32 %v1345_v37  ;;  %v1351_v34 = vadd.f32 %v1350_v24, %v4946_v29  ;;  %v1352_v1 = vpop.f32.mrb[91].mxu1 }
 0x301   : > { %v3681_v16 = vpop.eup %3680  ;;  %v1353_v43 = vadd.f32 %v1352_v1, %v4952_v54 }
 0x302   : > { %v3683_v20 = vpop.eup %3682  ;;  %1923 = vmatprep.mubr.f32.mxu0 %v3681_v16 }
 0x303   : > { %3692 = vtanh.f32 %v1353_v43  ;;  %v1356_v12 = vpop.f32.mrb[92].mxu1  ;;  %1924 = vmatmul.mubr.f32.gmra.mrb[108].mxu0 %v3683_v20 }
 0x304   : > { %3694 = vtanh.f32 %v1351_v34  ;;  %v1357_v44 = vadd.f32 %v1356_v12, %v4946_v29  ;;  %v1358_v40 = vpop.f32.mrb[93].mxu1 }
 0x305   : > { %v3685_v38 = vpop.eup %3684  ;;  %v1359_v63 = vadd.f32 %v1358_v40, %v4952_v54 }
 0x306   : > { %v3687_v49 = vpop.eup %3686  ;;  %1928 = vmatprep.mubr.f32.mxu0 %v3685_v38 }
 0x307   : > { %3696 = vtanh.f32 %v1359_v63  ;;  %v1362_v32 = vpop.f32.mrb[94].mxu1  ;;  %1929 = vmatmul.mubr.f32.gmra.mrb[110].mxu0 %v3687_v49 }
 0x308   : > { %3698 = vtanh.f32 %v1357_v44  ;;  %v1363_v59 = vadd.f32 %v1362_v32, %v4946_v29  ;;  %v1364_v23 = vpop.f32.mrb[95].mxu1 }
 0x309   : > { %v3689_v0 = vpop.eup %3688  ;;  %v1365_v39 = vadd.f32 %v1364_v23, %v4952_v54 }
 0x30a   : > { %v3691_v14 = vpop.eup %3690  ;;  %1933 = vmatprep.mubr.f32.mxu0 %v3689_v0 }
 0x30b   : > { %3700 = vtanh.f32 %v1365_v39  ;;  %v1368_v52 = vpop.f32.mrb[96].mxu1  ;;  %1934 = vmatmul.mubr.f32.gmra.mrb[112].mxu0 %v3691_v14 }
 0x30c   : > { %3702 = vtanh.f32 %v1363_v59  ;;  %v1369_v46 = vadd.f32 %v1368_v52, %v4946_v29  ;;  %v1370_v57 = vpop.f32.mrb[97].mxu1 }
 0x30d   : > { %v3693_v48 = vpop.eup %3692  ;;  %v1371_v33 = vadd.f32 %v1370_v57, %v4952_v54 }
 0x30e   : > { %v3695_v13 = vpop.eup %3694  ;;  %1938 = vmatprep.mubr.f32.mxu0 %v3693_v48 }
 0x30f   : > { %3704 = vtanh.f32 %v1371_v33  ;;  %v1374_v8 = vpop.f32.mrb[98].mxu1  ;;  %1939 = vmatmul.mubr.f32.gmra.mrb[114].mxu0 %v3695_v13 }
 0x310   : > { %3706 = vtanh.f32 %v1369_v46  ;;  %v1375_v51 = vadd.f32 %v1374_v8, %v4946_v29  ;;  %v1376_v2 = vpop.f32.mrb[99].mxu1 }
 0x311   : > { %v3697_v3 = vpop.eup %3696  ;;  %v1377_v9 = vadd.f32 %v1376_v2, %v4952_v54 }
 0x312   : > { %v3699_v62 = vpop.eup %3698  ;;  %1943 = vmatprep.mubr.f32.mxu0 %v3697_v3 }
 0x313   : > { %3708 = vtanh.f32 %v1377_v9  ;;  %v1380_v10 = vpop.f32.mrb[100].mxu1  ;;  %1944 = vmatmul.mubr.f32.gmra.mrb[116].mxu0 %v3699_v62 }
 0x314   : > { %3710 = vtanh.f32 %v1375_v51  ;;  %v1381_v41 = vadd.f32 %v1380_v10, %v4946_v29  ;;  %v1382_v55 = vpop.f32.mrb[101].mxu1 }
 0x315   : > { %v3701_v60 = vpop.eup %3700  ;;  %v1383_v7 = vadd.f32 %v1382_v55, %v4952_v54 }
 0x316   : > { %v3703_v19 = vpop.eup %3702  ;;  %1948 = vmatprep.mubr.f32.mxu0 %v3701_v60 }
 0x317   : > { %3712 = vtanh.f32 %v1383_v7  ;;  %v1386_v18 = vpop.f32.mrb[102].mxu1  ;;  %1949 = vmatmul.mubr.f32.gmra.mrb[118].mxu0 %v3703_v19 }
 0x318   : > { %3714 = vtanh.f32 %v1381_v41  ;;  %v1387_v26 = vadd.f32 %v1386_v18, %v4946_v29  ;;  %v1388_v4 = vpop.f32.mrb[103].mxu1 }
 0x319   : > { %v3705_v31 = vpop.eup %3704  ;;  %v1389_v11 = vadd.f32 %v1388_v4, %v4952_v54 }
 0x31a   : > { %v3707_v15 = vpop.eup %3706  ;;  %1953 = vmatprep.mubr.f32.mxu0 %v3705_v31 }
 0x31b   : > { %3716 = vtanh.f32 %v1389_v11  ;;  %v1392_v61 = vpop.f32.mrb[104].mxu1  ;;  %1954 = vmatmul.mubr.f32.gmra.mrb[120].mxu0 %v3707_v15 }
 0x31c   : > { %3718 = vtanh.f32 %v1387_v26  ;;  %v1393_v35 = vadd.f32 %v1392_v61, %v4946_v29  ;;  %v1394_v25 = vpop.f32.mrb[105].mxu1 }
 0x31d   : > { %v3709_v17 = vpop.eup %3708  ;;  %v1395_v6 = vadd.f32 %v1394_v25, %v4952_v54 }
 0x31e   : > { %v3711_v30 = vpop.eup %3710  ;;  %1958 = vmatprep.mubr.f32.mxu0 %v3709_v17 }
 0x31f   : > { %3720 = vtanh.f32 %v1395_v6  ;;  %v1398_v47 = vpop.f32.mrb[106].mxu1  ;;  %1959 = vmatmul.mubr.f32.gmra.mrb[122].mxu0 %v3711_v30 }
 0x320   : > { %3722 = vtanh.f32 %v1393_v35  ;;  %v1399_v56 = vadd.f32 %v1398_v47, %v4946_v29  ;;  %v1400_v22 = vpop.f32.mrb[107].mxu1 }
 0x321   : > { %v3713_v28 = vpop.eup %3712  ;;  %v1401_v50 = vadd.f32 %v1400_v22, %v4952_v54 }
 0x322   : > { %v3715_v42 = vpop.eup %3714  ;;  %1963 = vmatprep.mubr.f32.mxu0 %v3713_v28 }
 0x323   : > { %3724 = vtanh.f32 %v1401_v50  ;;  %v1404_v58 = vpop.f32.mrb[108].mxu1  ;;  %1964 = vmatmul.mubr.f32.gmra.mrb[124].mxu0 %v3715_v42 }
 0x324   : > { %3726 = vtanh.f32 %v1399_v56  ;;  %v1405_v37 = vadd.f32 %v1404_v58, %v4946_v29  ;;  %v1406_v27 = vpop.f32.mrb[109].mxu1 }
 0x325   : > { %v3717_v53 = vpop.eup %3716  ;;  %v1407_v5 = vadd.f32 %v1406_v27, %v4952_v54 }
 0x326   : > { %v3719_v36 = vpop.eup %3718  ;;  %1968 = vmatprep.mubr.f32.mxu0 %v3717_v53 }
 0x327   : > { %3728 = vtanh.f32 %v1407_v5  ;;  %v1410_v24 = vpop.f32.mrb[110].mxu1  ;;  %1969 = vmatmul.mubr.f32.gmra.mrb[126].mxu0 %v3719_v36 }
 0x328   : > { %3730 = vtanh.f32 %v1405_v37  ;;  %v1411_v34 = vadd.f32 %v1410_v24, %v4946_v29  ;;  %v1412_v1 = vpop.f32.mrb[111].mxu1 }
 0x329   : > { %v3721_v16 = vpop.eup %3720  ;;  %v1413_v43 = vadd.f32 %v1412_v1, %v4952_v54 }
 0x32a   : > { %v3723_v20 = vpop.eup %3722  ;;  %1973 = vmatprep.mubr.f32.mxu0 %v3721_v16 }
 0x32b   : > { %3732 = vtanh.f32 %v1413_v43  ;;  %v1416_v12 = vpop.f32.mrb[112].mxu1  ;;  %1974 = vmatmul.mubr.f32.gmra.mrb[128].mxu0 %v3723_v20 }
 0x32c   : > { %3734 = vtanh.f32 %v1411_v34  ;;  %v1417_v44 = vadd.f32 %v1416_v12, %v4946_v29  ;;  %v1418_v40 = vpop.f32.mrb[113].mxu1 }
 0x32d   : > { %v3725_v38 = vpop.eup %3724  ;;  %v1419_v63 = vadd.f32 %v1418_v40, %v4952_v54 }
 0x32e   : > { %v3727_v49 = vpop.eup %3726  ;;  %1978 = vmatprep.mubr.f32.mxu0 %v3725_v38 }
 0x32f   : > { %3736 = vtanh.f32 %v1419_v63  ;;  %v1422_v32 = vpop.f32.mrb[114].mxu1  ;;  %1979 = vmatmul.mubr.f32.gmra.mrb[130].mxu0 %v3727_v49 }
 0x330   : > { %3738 = vtanh.f32 %v1417_v44  ;;  %v1423_v59 = vadd.f32 %v1422_v32, %v4946_v29  ;;  %v1424_v23 = vpop.f32.mrb[115].mxu1 }
 0x331   : > { %v3729_v0 = vpop.eup %3728  ;;  %v1425_v39 = vadd.f32 %v1424_v23, %v4952_v54 }
 0x332   : > { %v3731_v14 = vpop.eup %3730  ;;  %1983 = vmatprep.mubr.f32.mxu0 %v3729_v0 }
 0x333   : > { %3740 = vtanh.f32 %v1425_v39  ;;  %v1428_v52 = vpop.f32.mrb[116].mxu1  ;;  %1984 = vmatmul.mubr.f32.gmra.mrb[132].mxu0 %v3731_v14 }
 0x334   : > { %3742 = vtanh.f32 %v1423_v59  ;;  %v1429_v46 = vadd.f32 %v1428_v52, %v4946_v29  ;;  %v1430_v57 = vpop.f32.mrb[117].mxu1 }
 0x335   : > { %v3733_v48 = vpop.eup %3732  ;;  %v1431_v33 = vadd.f32 %v1430_v57, %v4952_v54 }
 0x336   : > { %v3735_v13 = vpop.eup %3734  ;;  %1988 = vmatprep.mubr.f32.mxu0 %v3733_v48 }
 0x337   : > { %3744 = vtanh.f32 %v1431_v33  ;;  %v1434_v8 = vpop.f32.mrb[118].mxu1  ;;  %1989 = vmatmul.mubr.f32.gmra.mrb[134].mxu0 %v3735_v13 }
 0x338   : > { %3746 = vtanh.f32 %v1429_v46  ;;  %v1435_v51 = vadd.f32 %v1434_v8, %v4946_v29  ;;  %v1436_v2 = vpop.f32.mrb[119].mxu1 }
 0x339   : > { %v3737_v3 = vpop.eup %3736  ;;  %v1437_v9 = vadd.f32 %v1436_v2, %v4952_v54 }
 0x33a   : > { %v3739_v62 = vpop.eup %3738  ;;  %1993 = vmatprep.mubr.f32.mxu0 %v3737_v3 }
 0x33b   : > { %3748 = vtanh.f32 %v1437_v9  ;;  %v1440_v10 = vpop.f32.mrb[120].mxu1  ;;  %1994 = vmatmul.mubr.f32.gmra.mrb[136].mxu0 %v3739_v62 }
 0x33c   : > { %3750 = vtanh.f32 %v1435_v51  ;;  %v1441_v41 = vadd.f32 %v1440_v10, %v4946_v29  ;;  %v1442_v55 = vpop.f32.mrb[121].mxu1 }
 0x33d   : > { %v3741_v60 = vpop.eup %3740  ;;  %v1443_v7 = vadd.f32 %v1442_v55, %v4952_v54 }
 0x33e   : > { %v3743_v19 = vpop.eup %3742  ;;  %1998 = vmatprep.mubr.f32.mxu0 %v3741_v60 }
 0x33f   : > { %3752 = vtanh.f32 %v1443_v7  ;;  %v1446_v18 = vpop.f32.mrb[122].mxu1  ;;  %1999 = vmatmul.mubr.f32.gmra.mrb[138].mxu0 %v3743_v19 }
 0x340   : > { %3754 = vtanh.f32 %v1441_v41  ;;  %v1447_v26 = vadd.f32 %v1446_v18, %v4946_v29  ;;  %v1448_v4 = vpop.f32.mrb[123].mxu1 }
 0x341   : > { %v3745_v31 = vpop.eup %3744  ;;  %v1449_v11 = vadd.f32 %v1448_v4, %v4952_v54 }
 0x342   : > { %v3747_v15 = vpop.eup %3746  ;;  %2003 = vmatprep.mubr.f32.mxu0 %v3745_v31 }
 0x343   : > { %3756 = vtanh.f32 %v1449_v11  ;;  %v1452_v61 = vpop.f32.mrb[124].mxu1  ;;  %2004 = vmatmul.mubr.f32.gmra.mrb[140].mxu0 %v3747_v15 }
 0x344   : > { %3758 = vtanh.f32 %v1447_v26  ;;  %v1453_v35 = vadd.f32 %v1452_v61, %v4946_v29  ;;  %v1454_v25 = vpop.f32.mrb[125].mxu1 }
 0x345   : > { %v3749_v17 = vpop.eup %3748  ;;  %v1455_v6 = vadd.f32 %v1454_v25, %v4952_v54 }
 0x346   : > { %v3751_v30 = vpop.eup %3750  ;;  %2008 = vmatprep.mubr.f32.mxu0 %v3749_v17 }
 0x347   : > { %3760 = vtanh.f32 %v1455_v6  ;;  %v1458_v47 = vpop.f32.mrb[126].mxu1  ;;  %2009 = vmatmul.mubr.f32.gmra.mrb[142].mxu0 %v3751_v30 }
 0x348   : > { %3762 = vtanh.f32 %v1453_v35  ;;  %v1459_v56 = vadd.f32 %v1458_v47, %v4946_v29  ;;  %v1460_v22 = vpop.f32.mrb[127].mxu1 }
 0x349   : > { %v3753_v28 = vpop.eup %3752  ;;  %v1461_v50 = vadd.f32 %v1460_v22, %v4952_v54 }
 0x34a   : > { %v3755_v42 = vpop.eup %3754  ;;  %2013 = vmatprep.mubr.f32.mxu0 %v3753_v28 }
 0x34b   : > { %3764 = vtanh.f32 %v1461_v50  ;;  %v1464_v58 = vpop.f32.mrb[128].mxu1  ;;  %2014 = vmatmul.mubr.f32.gmra.mrb[144].mxu0 %v3755_v42 }
 0x34c   : > { %3766 = vtanh.f32 %v1459_v56  ;;  %v1465_v37 = vadd.f32 %v1464_v58, %v4946_v29  ;;  %v1466_v27 = vpop.f32.mrb[129].mxu1 }
 0x34d   : > { %v3757_v53 = vpop.eup %3756  ;;  %v1467_v5 = vadd.f32 %v1466_v27, %v4952_v54 }
 0x34e   : > { %v3759_v36 = vpop.eup %3758  ;;  %2018 = vmatprep.mubr.f32.mxu0 %v3757_v53 }
 0x34f   : > { %3768 = vtanh.f32 %v1467_v5  ;;  %v1470_v24 = vpop.f32.mrb[130].mxu1  ;;  %2019 = vmatmul.mubr.f32.gmra.mrb[146].mxu0 %v3759_v36 }
 0x350   : > { %3770 = vtanh.f32 %v1465_v37  ;;  %v1471_v34 = vadd.f32 %v1470_v24, %v4946_v29  ;;  %v1472_v1 = vpop.f32.mrb[131].mxu1 }
 0x351   : > { %v3761_v16 = vpop.eup %3760  ;;  %v1473_v43 = vadd.f32 %v1472_v1, %v4952_v54 }
 0x352   : > { %v3763_v20 = vpop.eup %3762  ;;  %2023 = vmatprep.mubr.f32.mxu0 %v3761_v16 }
 0x353   : > { %3772 = vtanh.f32 %v1473_v43  ;;  %v1476_v12 = vpop.f32.mrb[132].mxu1  ;;  %2024 = vmatmul.mubr.f32.gmra.mrb[148].mxu0 %v3763_v20 }
 0x354   : > { %3774 = vtanh.f32 %v1471_v34  ;;  %v1477_v44 = vadd.f32 %v1476_v12, %v4946_v29  ;;  %v1478_v40 = vpop.f32.mrb[133].mxu1 }
 0x355   : > { %v3765_v38 = vpop.eup %3764  ;;  %v1479_v63 = vadd.f32 %v1478_v40, %v4952_v54 }
 0x356   : > { %v3767_v49 = vpop.eup %3766  ;;  %2028 = vmatprep.mubr.f32.mxu0 %v3765_v38 }
 0x357   : > { %3776 = vtanh.f32 %v1479_v63  ;;  %v1482_v32 = vpop.f32.mrb[134].mxu1  ;;  %2029 = vmatmul.mubr.f32.gmra.mrb[150].mxu0 %v3767_v49 }
 0x358   : > { %3778 = vtanh.f32 %v1477_v44  ;;  %v1483_v59 = vadd.f32 %v1482_v32, %v4946_v29  ;;  %v1484_v23 = vpop.f32.mrb[135].mxu1 }
 0x359   : > { %v3769_v0 = vpop.eup %3768  ;;  %v1485_v39 = vadd.f32 %v1484_v23, %v4952_v54 }
 0x35a   : > { %v3771_v14 = vpop.eup %3770  ;;  %2033 = vmatprep.mubr.f32.mxu0 %v3769_v0 }
 0x35b   : > { %3780 = vtanh.f32 %v1485_v39  ;;  %v1488_v52 = vpop.f32.mrb[136].mxu1  ;;  %2034 = vmatmul.mubr.f32.gmra.mrb[152].mxu0 %v3771_v14 }
 0x35c   : > { %3782 = vtanh.f32 %v1483_v59  ;;  %v1489_v46 = vadd.f32 %v1488_v52, %v4946_v29  ;;  %v1490_v57 = vpop.f32.mrb[137].mxu1 }
 0x35d   : > { %v3773_v48 = vpop.eup %3772  ;;  %v1491_v33 = vadd.f32 %v1490_v57, %v4952_v54 }
 0x35e   : > { %v3775_v13 = vpop.eup %3774  ;;  %2038 = vmatprep.mubr.f32.mxu0 %v3773_v48 }
 0x35f   : > { %3784 = vtanh.f32 %v1491_v33  ;;  %v1494_v8 = vpop.f32.mrb[138].mxu1  ;;  %2039 = vmatmul.mubr.f32.gmra.mrb[154].mxu0 %v3775_v13 }
 0x360   : > { %3786 = vtanh.f32 %v1489_v46  ;;  %v1495_v51 = vadd.f32 %v1494_v8, %v4946_v29  ;;  %v1496_v2 = vpop.f32.mrb[139].mxu1 }
 0x361   : > { %v3777_v3 = vpop.eup %3776  ;;  %v1497_v9 = vadd.f32 %v1496_v2, %v4952_v54 }
 0x362   : > { %v3779_v62 = vpop.eup %3778  ;;  %2043 = vmatprep.mubr.f32.mxu0 %v3777_v3 }
 0x363   : > { %3788 = vtanh.f32 %v1497_v9  ;;  %v1500_v10 = vpop.f32.mrb[140].mxu1  ;;  %2044 = vmatmul.mubr.f32.gmra.mrb[156].mxu0 %v3779_v62 }
 0x364   : > { %3790 = vtanh.f32 %v1495_v51  ;;  %v1501_v41 = vadd.f32 %v1500_v10, %v4946_v29  ;;  %v1502_v55 = vpop.f32.mrb[141].mxu1 }
 0x365   : > { %v3781_v60 = vpop.eup %3780  ;;  %v1503_v7 = vadd.f32 %v1502_v55, %v4952_v54 }
 0x366   : > { %v3783_v19 = vpop.eup %3782  ;;  %2048 = vmatprep.mubr.f32.mxu0 %v3781_v60 }
 0x367   : > { %3792 = vtanh.f32 %v1503_v7  ;;  %v1506_v18 = vpop.f32.mrb[142].mxu1  ;;  %2049 = vmatmul.mubr.f32.gmra.mrb[158].mxu0 %v3783_v19 }
 0x368   : > { %3794 = vtanh.f32 %v1501_v41  ;;  %v1507_v26 = vadd.f32 %v1506_v18, %v4946_v29  ;;  %v1508_v4 = vpop.f32.mrb[143].mxu1 }
 0x369   : > { %v3785_v31 = vpop.eup %3784  ;;  %v1509_v11 = vadd.f32 %v1508_v4, %v4952_v54 }
 0x36a   : > { %v3787_v15 = vpop.eup %3786  ;;  %2053 = vmatprep.mubr.f32.mxu0 %v3785_v31 }
 0x36b   : > { %3796 = vtanh.f32 %v1509_v11  ;;  %v1512_v61 = vpop.f32.mrb[144].mxu1  ;;  %2054 = vmatmul.mubr.f32.gmra.mrb[160].mxu0 %v3787_v15 }
 0x36c   : > { %3798 = vtanh.f32 %v1507_v26  ;;  %v1513_v35 = vadd.f32 %v1512_v61, %v4946_v29  ;;  %v1514_v25 = vpop.f32.mrb[145].mxu1 }
 0x36d   : > { %v3789_v17 = vpop.eup %3788  ;;  %v1515_v6 = vadd.f32 %v1514_v25, %v4952_v54 }
 0x36e   : > { %v3791_v30 = vpop.eup %3790  ;;  %2058 = vmatprep.mubr.f32.mxu0 %v3789_v17 }
 0x36f   : > { %3800 = vtanh.f32 %v1515_v6  ;;  %v1518_v47 = vpop.f32.mrb[146].mxu1  ;;  %2059 = vmatmul.mubr.f32.gmra.mrb[162].mxu0 %v3791_v30 }
 0x370   : > { %3802 = vtanh.f32 %v1513_v35  ;;  %v1519_v56 = vadd.f32 %v1518_v47, %v4946_v29  ;;  %v1520_v22 = vpop.f32.mrb[147].mxu1 }
 0x371   : > { %v3793_v28 = vpop.eup %3792  ;;  %v1521_v50 = vadd.f32 %v1520_v22, %v4952_v54 }
 0x372   : > { %v3795_v42 = vpop.eup %3794  ;;  %2063 = vmatprep.mubr.f32.mxu0 %v3793_v28 }
 0x373   : > { %3804 = vtanh.f32 %v1521_v50  ;;  %v1524_v58 = vpop.f32.mrb[148].mxu1  ;;  %2064 = vmatmul.mubr.f32.gmra.mrb[164].mxu0 %v3795_v42 }
 0x374   : > { %3806 = vtanh.f32 %v1519_v56  ;;  %v1525_v37 = vadd.f32 %v1524_v58, %v4946_v29  ;;  %v1526_v27 = vpop.f32.mrb[149].mxu1 }
 0x375   : > { %v3797_v53 = vpop.eup %3796  ;;  %v1527_v5 = vadd.f32 %v1526_v27, %v4952_v54 }
 0x376   : > { %v3799_v36 = vpop.eup %3798  ;;  %2068 = vmatprep.mubr.f32.mxu0 %v3797_v53 }
 0x377   : > { %3808 = vtanh.f32 %v1527_v5  ;;  %v1530_v24 = vpop.f32.mrb[150].mxu1  ;;  %2069 = vmatmul.mubr.f32.gmra.mrb[166].mxu0 %v3799_v36 }
 0x378   : > { %3810 = vtanh.f32 %v1525_v37  ;;  %v1531_v34 = vadd.f32 %v1530_v24, %v4946_v29  ;;  %v1532_v1 = vpop.f32.mrb[151].mxu1 }
 0x379   : > { %v3801_v16 = vpop.eup %3800  ;;  %v1533_v43 = vadd.f32 %v1532_v1, %v4952_v54 }
 0x37a   : > { %v3803_v20 = vpop.eup %3802  ;;  %2073 = vmatprep.mubr.f32.mxu0 %v3801_v16 }
 0x37b   : > { %3812 = vtanh.f32 %v1533_v43  ;;  %v1536_v12 = vpop.f32.mrb[152].mxu1  ;;  %2074 = vmatmul.mubr.f32.gmra.mrb[168].mxu0 %v3803_v20 }
 0x37c   : > { %3814 = vtanh.f32 %v1531_v34  ;;  %v1537_v44 = vadd.f32 %v1536_v12, %v4946_v29  ;;  %v1538_v40 = vpop.f32.mrb[153].mxu1 }
 0x37d   : > { %v3805_v38 = vpop.eup %3804  ;;  %v1539_v63 = vadd.f32 %v1538_v40, %v4952_v54 }
 0x37e   : > { %v3807_v49 = vpop.eup %3806  ;;  %2078 = vmatprep.mubr.f32.mxu0 %v3805_v38 }
 0x37f   : > { %3816 = vtanh.f32 %v1539_v63  ;;  %v1542_v32 = vpop.f32.mrb[154].mxu1  ;;  %2079 = vmatmul.mubr.f32.gmra.mrb[170].mxu0 %v3807_v49 }
 0x380   : > { %3818 = vtanh.f32 %v1537_v44  ;;  %v1543_v59 = vadd.f32 %v1542_v32, %v4946_v29  ;;  %v1544_v23 = vpop.f32.mrb[155].mxu1 }
 0x381   : > { %v3809_v0 = vpop.eup %3808  ;;  %v1545_v39 = vadd.f32 %v1544_v23, %v4952_v54 }
 0x382   : > { %v3811_v14 = vpop.eup %3810  ;;  %2083 = vmatprep.mubr.f32.mxu0 %v3809_v0 }
 0x383   : > { %3820 = vtanh.f32 %v1545_v39  ;;  %v1548_v52 = vpop.f32.mrb[156].mxu1  ;;  %2084 = vmatmul.mubr.f32.gmra.mrb[172].mxu0 %v3811_v14 }
 0x384   : > { %3822 = vtanh.f32 %v1543_v59  ;;  %v1549_v46 = vadd.f32 %v1548_v52, %v4946_v29  ;;  %v1550_v57 = vpop.f32.mrb[157].mxu1 }
 0x385   : > { %v3813_v48 = vpop.eup %3812  ;;  %v1551_v33 = vadd.f32 %v1550_v57, %v4952_v54 }
 0x386   : > { %v3815_v13 = vpop.eup %3814  ;;  %2088 = vmatprep.mubr.f32.mxu0 %v3813_v48 }
 0x387   : > { %3824 = vtanh.f32 %v1551_v33  ;;  %v1554_v8 = vpop.f32.mrb[158].mxu1  ;;  %2089 = vmatmul.mubr.f32.gmra.mrb[174].mxu0 %v3815_v13 }
 0x388   : > { %3826 = vtanh.f32 %v1549_v46  ;;  %v1555_v51 = vadd.f32 %v1554_v8, %v4946_v29  ;;  %v1556_v2 = vpop.f32.mrb[159].mxu1 }
 0x389   : > { %v3817_v3 = vpop.eup %3816  ;;  %v1557_v9 = vadd.f32 %v1556_v2, %v4952_v54 }
 0x38a   : > { %v3819_v62 = vpop.eup %3818  ;;  %2093 = vmatprep.mubr.f32.mxu0 %v3817_v3 }
 0x38b   : > { %3828 = vtanh.f32 %v1557_v9  ;;  %v1560_v10 = vpop.f32.mrb[160].mxu1  ;;  %2094 = vmatmul.mubr.f32.gmra.mrb[176].mxu0 %v3819_v62 }
 0x38c   : > { %3830 = vtanh.f32 %v1555_v51  ;;  %v1561_v41 = vadd.f32 %v1560_v10, %v4946_v29  ;;  %v1562_v55 = vpop.f32.mrb[161].mxu1 }
 0x38d   : > { %v3821_v60 = vpop.eup %3820  ;;  %v1563_v7 = vadd.f32 %v1562_v55, %v4952_v54 }
 0x38e   : > { %v3823_v19 = vpop.eup %3822  ;;  %2098 = vmatprep.mubr.f32.mxu0 %v3821_v60 }
 0x38f   : > { %3832 = vtanh.f32 %v1563_v7  ;;  %v1566_v18 = vpop.f32.mrb[162].mxu1  ;;  %2099 = vmatmul.mubr.f32.gmra.mrb[178].mxu0 %v3823_v19 }
 0x390   : > { %3834 = vtanh.f32 %v1561_v41  ;;  %v1567_v26 = vadd.f32 %v1566_v18, %v4946_v29  ;;  %v1568_v4 = vpop.f32.mrb[163].mxu1 }
 0x391   : > { %v3825_v31 = vpop.eup %3824  ;;  %v1569_v11 = vadd.f32 %v1568_v4, %v4952_v54 }
 0x392   : > { %v3827_v15 = vpop.eup %3826  ;;  %2103 = vmatprep.mubr.f32.mxu0 %v3825_v31 }
 0x393   : > { %3836 = vtanh.f32 %v1569_v11  ;;  %v1572_v61 = vpop.f32.mrb[164].mxu1  ;;  %2104 = vmatmul.mubr.f32.gmra.mrb[180].mxu0 %v3827_v15 }
 0x394   : > { %3838 = vtanh.f32 %v1567_v26  ;;  %v1573_v35 = vadd.f32 %v1572_v61, %v4946_v29  ;;  %v1574_v25 = vpop.f32.mrb[165].mxu1 }
 0x395   : > { %v3829_v17 = vpop.eup %3828  ;;  %v1575_v6 = vadd.f32 %v1574_v25, %v4952_v54 }
 0x396   : > { %v3831_v30 = vpop.eup %3830  ;;  %v1845_v47 = vpop.f32.mrb[76].mxu0  ;;  %2108 = vmatprep.mubr.f32.mxu0 %v3829_v17 }
 0x397   : > { %3840 = vtanh.f32 %v1575_v6  ;;  %v1578_v56 = vpop.f32.mrb[166].mxu1  ;;  %2109 = vmatmul.mubr.f32.gmra.mrb[182].mxu0 %v3831_v30  ;;  %2164 = vxpose.xlu0.b32.start [1/16] (narrow) %v1845_v47, 16  ;;  %v1847_v22 = vpop.f32.mrb[77].mxu0 }
 0x398   : > { %3842 = vtanh.f32 %v1573_v35  ;;  %v1579_v28 = vadd.f32 %v1578_v56, %v4946_v29  ;;  %v1580_v50 = vpop.f32.mrb[167].mxu1 }
 0x399   : > { %v3833_v42 = vpop.eup %3832  ;;  %v1581_v58 = vadd.f32 %v1580_v50, %v4952_v54 }
 0x39a   : > { %v3835_v37 = vpop.eup %3834  ;;  %v1850_v27 = vpop.f32.mrb[78].mxu0  ;;  %2113 = vmatprep.mubr.f32.mxu0 %v3833_v42 }
 0x39b   : > { %3844 = vtanh.f32 %v1581_v58  ;;  %v1584_v53 = vpop.f32.mrb[168].mxu1  ;;  %2114 = vmatmul.mubr.f32.gmra.mrb[184].mxu0 %v3835_v37  ;;  %2165 = vxpose.xlu0.b32.cont [2/16] (narrow) %v1850_v27, 16  ;;  %v1852_v5 = vpop.f32.mrb[79].mxu0 }
 0x39c   : > { %3846 = vtanh.f32 %v1579_v28  ;;  %v1585_v36 = vadd.f32 %v1584_v53, %v4946_v29  ;;  %v1586_v24 = vpop.f32.mrb[169].mxu1 }
 0x39d   : > { %v3837_v34 = vpop.eup %3836  ;;  %v1587_v1 = vadd.f32 %v1586_v24, %v4952_v54 }
 0x39e   : > { %v3839_v16 = vpop.eup %3838  ;;  %v1855_v43 = vpop.f32.mrb[80].mxu0  ;;  %2118 = vmatprep.mubr.f32.mxu0 %v3837_v34 }
 0x39f   : > { %3848 = vtanh.f32 %v1587_v1  ;;  %v1590_v20 = vpop.f32.mrb[170].mxu1  ;;  %2119 = vmatmul.mubr.f32.gmra.mrb[186].mxu0 %v3839_v16  ;;  %2166 = vxpose.xlu0.b32.cont [3/16] (narrow) %v1855_v43, 16  ;;  %v1857_v12 = vpop.f32.mrb[81].mxu0 }
 0x3a0   : > { %3850 = vtanh.f32 %v1585_v36  ;;  %v1591_v44 = vadd.f32 %v1590_v20, %v4946_v29  ;;  %v1592_v40 = vpop.f32.mrb[171].mxu1 }
 0x3a1   : > { %v3841_v38 = vpop.eup %3840  ;;  %v1593_v63 = vadd.f32 %v1592_v40, %v4952_v54 }
 0x3a2   : > { %v3843_v49 = vpop.eup %3842  ;;  %v1860_v32 = vpop.f32.mrb[82].mxu0  ;;  %2123 = vmatprep.mubr.f32.mxu0 %v3841_v38 }
 0x3a3   : > { %3852 = vtanh.f32 %v1593_v63  ;;  %v1596_v59 = vpop.f32.mrb[172].mxu1  ;;  %2124 = vmatmul.mubr.f32.gmra.mrb[188].mxu0 %v3843_v49  ;;  %2167 = vxpose.xlu0.b32.cont [4/16] (narrow) %v1860_v32, 16  ;;  %v1862_v23 = vpop.f32.mrb[83].mxu0 }
 0x3a4   : > { %3854 = vtanh.f32 %v1591_v44  ;;  %v1597_v0 = vadd.f32 %v1596_v59, %v4946_v29  ;;  %v1598_v39 = vpop.f32.mrb[173].mxu1 }
 0x3a5   : > { %v3845_v14 = vpop.eup %3844  ;;  %v1599_v52 = vadd.f32 %v1598_v39, %v4952_v54 }
 0x3a6   : > { %v3847_v46 = vpop.eup %3846  ;;  %v1865_v57 = vpop.f32.mrb[84].mxu0  ;;  %2128 = vmatprep.mubr.f32.mxu0 %v3845_v14 }
 0x3a7   : > { %3856 = vtanh.f32 %v1599_v52  ;;  %v1602_v48 = vpop.f32.mrb[174].mxu1  ;;  %2129 = vmatmul.mubr.f32.gmra.mrb[190].mxu0 %v3847_v46  ;;  %2168 = vxpose.xlu0.b32.cont [5/16] (narrow) %v1865_v57, 16  ;;  %v1867_v33 = vpop.f32.mrb[85].mxu0 }
 0x3a8   : > { %3858 = vtanh.f32 %v1597_v0  ;;  %v1603_v13 = vadd.f32 %v1602_v48, %v4946_v29  ;;  %v1604_v8 = vpop.f32.mrb[175].mxu1 }
 0x3a9   : > { %v3849_v51 = vpop.eup %3848  ;;  %v1605_v2 = vadd.f32 %v1604_v8, %v4952_v54 }
 0x3aa   : > { %v3851_v3 = vpop.eup %3850  ;;  %v1870_v9 = vpop.f32.mrb[86].mxu0  ;;  %2133 = vmatprep.mubr.f32.mxu0 %v3849_v51 }
 0x3ab   : > { %3860 = vtanh.f32 %v1605_v2  ;;  %v1608_v62 = vpop.f32.mrb[176].mxu1  ;;  %2134 = vmatmul.mubr.f32.gmra.mrb[192].mxu0 %v3851_v3  ;;  %2169 = vxpose.xlu0.b32.cont [6/16] (narrow) %v1870_v9, 16  ;;  %v1872_v10 = vpop.f32.mrb[87].mxu0 }
 0x3ac   : > { %3862 = vtanh.f32 %v1603_v13  ;;  %v1609_v41 = vadd.f32 %v1608_v62, %v4946_v29  ;;  %v1610_v55 = vpop.f32.mrb[177].mxu1 }
 0x3ad   : > { %v3853_v60 = vpop.eup %3852  ;;  %v1611_v7 = vadd.f32 %v1610_v55, %v4952_v54 }
 0x3ae   : > { %v3855_v19 = vpop.eup %3854  ;;  %v1875_v18 = vpop.f32.mrb[88].mxu0  ;;  %2138 = vmatprep.mubr.f32.mxu0 %v3853_v60 }
 0x3af   : > { %3864 = vtanh.f32 %v1611_v7  ;;  %v1614_v26 = vpop.f32.mrb[178].mxu1  ;;  %2139 = vmatmul.mubr.f32.gmra.mrb[194].mxu0 %v3855_v19  ;;  %2170 = vxpose.xlu0.b32.cont [7/16] (narrow) %v1875_v18, 16  ;;  %v1877_v4 = vpop.f32.mrb[89].mxu0 }
 0x3b0   : > { %3866 = vtanh.f32 %v1609_v41  ;;  %v1615_v31 = vadd.f32 %v1614_v26, %v4946_v29  ;;  %v1616_v11 = vpop.f32.mrb[179].mxu1 }
 0x3b1   : > { %v3857_v15 = vpop.eup %3856  ;;  %v1617_v61 = vadd.f32 %v1616_v11, %v4952_v54 }
 0x3b2   : > { %v3859_v35 = vpop.eup %3858  ;;  %v1880_v25 = vpop.f32.mrb[90].mxu0  ;;  %2143 = vmatprep.mubr.f32.mxu0 %v3857_v15 }
 0x3b3   : > { %3868 = vtanh.f32 %v1617_v61  ;;  %2144 = vmatmul.mubr.f32.gmra.mrb[196].mxu0 %v3859_v35  ;;  %2171 = vxpose.xlu0.b32.cont [8/16] (narrow) %v1880_v25, 16  ;;  %v1882_v17 = vpop.f32.mrb[91].mxu0 }
 0x3b4   : > { %3870 = vtanh.f32 %v1615_v31 }
 0x3b5   : > { %v3861_v6 = vpop.eup %3860 }
 0x3b6   : > { %v3863_v30 = vpop.eup %3862  ;;  %v1885_v47 = vpop.f32.mrb[92].mxu0  ;;  %2148 = vmatprep.mubr.f32.mxu0 %v3861_v6 }
 0x3b7   : > { %2149 = vmatmul.mubr.f32.gmra.mrb[198].mxu0 %v3863_v30  ;;  %2172 = vxpose.xlu0.b32.cont [9/16] (narrow) %v1885_v47, 16  ;;  %v1887_v56 = vpop.f32.mrb[93].mxu0 }
 0x3b9   : > { %v3865_v29 = vpop.eup %3864 }
 0x3ba   : > { %v3867_v22 = vpop.eup %3866  ;;  %v1890_v28 = vpop.f32.mrb[94].mxu0  ;;  %2153 = vmatprep.mubr.f32.mxu0 %v3865_v29 }
 0x3bb   : > { %2154 = vmatmul.mubr.f32.gmra.mrb[200].mxu0 %v3867_v22  ;;  %2173 = vxpose.xlu0.b32.cont [10/16] (narrow) %v1890_v28, 16  ;;  %v1892_v54 = vpop.f32.mrb[95].mxu0 }
 0x3bd   : > { %v3869_v50 = vpop.eup %3868 }
 0x3be   : > { %v3871_v42 = vpop.eup %3870  ;;  %v1895_v58 = vpop.f32.mrb[96].mxu0  ;;  %2158 = vmatprep.mubr.f32.mxu0 %v3869_v50 }
 0x3bf   : > { %2159 = vmatmul.mubr.f32.gmra.mrb[202].mxu0 %v3871_v42  ;;  %2174 = vxpose.xlu0.b32.cont [11/16] (narrow) %v1895_v58, 16  ;;  %v1897_v37 = vpop.f32.mrb[97].mxu0 }
 0x3c2   : > { %v1900_v27 = vpop.f32.mrb[98].mxu0 }
 0x3c3   : > { %2175 = vxpose.xlu0.b32.cont [12/16] (narrow) %v1900_v27, 16  ;;  %v1902_v53 = vpop.f32.mrb[99].mxu0 }
 0x3c6   : > { %v1905_v5 = vpop.f32.mrb[100].mxu0 }
 0x3c7   : > { %2176 = vxpose.xlu0.b32.cont [13/16] (narrow) %v1905_v5, 16  ;;  %v1907_v36 = vpop.f32.mrb[101].mxu0 }
 0x3ca   : > { %v1910_v24 = vpop.f32.mrb[102].mxu0 }
 0x3cb   : > { %2177 = vxpose.xlu0.b32.cont [14/16] (narrow) %v1910_v24, 16  ;;  %v1912_v34 = vpop.f32.mrb[103].mxu0  ;;  %v5117_v24 = vpop.permute.xlu0 %2296 }
 0x3ce   : > { %v1915_v1 = vpop.f32.mrb[104].mxu0 }
 0x3cf   : > { %2178 = vxpose.xlu0.b32.cont [15/16] (narrow) %v1915_v1, 16  ;;  %v1917_v16 = vpop.f32.mrb[105].mxu0 }
 0x3d0   : > { %v5119_v16 = vpop.permute.xlu0 %2301 }
 0x3d2   : > { %v1920_v43 = vpop.f32.mrb[106].mxu0 }
 0x3d3   : > { %2179 = vxpose.xlu0.b32.end [16/16] (narrow) %v1920_v43, 16  ;;  %v1922_v20 = vpop.f32.mrb[107].mxu0 }
 0x3d6   : > { %v1925_v12 = vpop.f32.mrb[108].mxu0 }
 0x3d7   : > { %2196 = vxpose.xlu1.b32.start [1/16] (narrow) %v1925_v12, 16  ;;  %v1927_v44 = vpop.f32.mrb[109].mxu0 }
 0x3da   : > { %v1930_v40 = vpop.f32.mrb[110].mxu0 }
 0x3db   : > { %2197 = vxpose.xlu1.b32.cont [2/16] (narrow) %v1930_v40, 16  ;;  %v1932_v38 = vpop.f32.mrb[111].mxu0 }
 0x3de   : > { %v1935_v63 = vpop.f32.mrb[112].mxu0 }
 0x3df   : > { %2198 = vxpose.xlu1.b32.cont [3/16] (narrow) %v1935_v63, 16  ;;  %v1937_v49 = vpop.f32.mrb[113].mxu0 }
 0x3e2   : > { %v1940_v32 = vpop.f32.mrb[114].mxu0 }
 0x3e3   : > { %2199 = vxpose.xlu1.b32.cont [4/16] (narrow) %v1940_v32, 16  ;;  %v1942_v59 = vpop.f32.mrb[115].mxu0 }
 0x3e6   : > { %v1945_v23 = vpop.f32.mrb[116].mxu0 }
 0x3e7   : > { %2200 = vxpose.xlu1.b32.cont [5/16] (narrow) %v1945_v23, 16  ;;  %v1947_v0 = vpop.f32.mrb[117].mxu0 }
 0x3ea   : > { %v1950_v39 = vpop.f32.mrb[118].mxu0 }
 0x3eb   : > { %2201 = vxpose.xlu1.b32.cont [6/16] (narrow) %v1950_v39, 16  ;;  %v1952_v14 = vpop.f32.mrb[119].mxu0 }
 0x3ee   : > { %v1955_v52 = vpop.f32.mrb[120].mxu0 }
 0x3ef   : > { %2202 = vxpose.xlu1.b32.cont [7/16] (narrow) %v1955_v52, 16  ;;  %v1957_v46 = vpop.f32.mrb[121].mxu0 }
 0x3f2   : > { %v1960_v57 = vpop.f32.mrb[122].mxu0 }
 0x3f3   : > { %2203 = vxpose.xlu1.b32.cont [8/16] (narrow) %v1960_v57, 16  ;;  %v1962_v48 = vpop.f32.mrb[123].mxu0 }
 0x3f6   : > { %v1965_v33 = vpop.f32.mrb[124].mxu0 }
 0x3f7   : > { %2204 = vxpose.xlu1.b32.cont [9/16] (narrow) %v1965_v33, 16  ;;  %v1967_v13 = vpop.f32.mrb[125].mxu0 }
 0x3fa   : > { %v1970_v8 = vpop.f32.mrb[126].mxu0 }
 0x3fb   : > { %2205 = vxpose.xlu1.b32.cont [10/16] (narrow) %v1970_v8, 16  ;;  %v1972_v51 = vpop.f32.mrb[127].mxu0 }
 0x3fe   : > { %v1975_v2 = vpop.f32.mrb[128].mxu0 }
 0x3ff   : > { %2206 = vxpose.xlu1.b32.cont [11/16] (narrow) %v1975_v2, 16  ;;  %v1977_v3 = vpop.f32.mrb[129].mxu0  ;;  %v5125_v2 = vld [vmem:[#allocation13] sm:$0xff] }
 0x402   : > { %v1980_v9 = vpop.f32.mrb[130].mxu0 }
 0x403   : > { %2207 = vxpose.xlu1.b32.cont [12/16] (narrow) %v1980_v9, 16  ;;  %v1982_v62 = vpop.f32.mrb[131].mxu0 }
 0x404   : > { %v2313_v62 = vld [vmem:[#allocation13 + $0x8] sm:$0xff] }
 0x406   : > { %v1985_v10 = vpop.f32.mrb[132].mxu0 }
 0x407   : > { %2208 = vxpose.xlu1.b32.cont [13/16] (narrow) %v1985_v10, 16  ;;  %v1987_v41 = vpop.f32.mrb[133].mxu0 }
 0x40a   : > { %v1990_v55 = vpop.f32.mrb[134].mxu0 }
 0x40b   : > { %2209 = vxpose.xlu1.b32.cont [14/16] (narrow) %v1990_v55, 16  ;;  %v1992_v60 = vpop.f32.mrb[135].mxu0 }
 0x40e   : > { %v1995_v7 = vpop.f32.mrb[136].mxu0 }
 0x40f   : > { %2210 = vxpose.xlu1.b32.cont [15/16] (narrow) %v1995_v7, 16  ;;  %v1997_v19 = vpop.f32.mrb[137].mxu0 }
 0x412   : > { %v2000_v18 = vpop.f32.mrb[138].mxu0 }
 0x413   : > { %2211 = vxpose.xlu1.b32.end [16/16] (narrow) %v2000_v18, 16  ;;  %v2002_v26 = vpop.f32.mrb[139].mxu0 }
 0x416   : > { %v2005_v4 = vpop.f32.mrb[140].mxu0 }
 0x417   : > { %2228 = vxpose.xlu0.b32.start [1/16] (narrow) %v2005_v4, 16  ;;  %v2007_v31 = vpop.f32.mrb[141].mxu0  ;;  %v2180_v40 = vpop.trf.xlu0 }
 0x418   : > { %v2304_v0 = vadd.f32 %v5117_v24, %v2180_v40 }
 0x41a   : > { %v2010_v11 = vpop.f32.mrb[142].mxu0 }
 0x41b   : > { %2229 = vxpose.xlu0.b32.cont [2/16] (narrow) %v2010_v11, 16  ;;  %v2012_v15 = vpop.f32.mrb[143].mxu0  ;;  %v2181_v49 = vpop.trf.xlu0 }
 0x41c   : > { %v2308_v39 = vadd.f32 %v5119_v16, %v2181_v49 }
 0x41e   : > { %v2015_v61 = vpop.f32.mrb[144].mxu0  ;;  %v3198_v33 = vpack.c.bf16 %v2308_v39, %v2304_v0 }
 0x41f   : > { %2230 = vxpose.xlu0.b32.cont [3/16] (narrow) %v2015_v61, 16  ;;  %v2017_v35 = vpop.f32.mrb[145].mxu0 }
 0x422   : > { %v2020_v25 = vpop.f32.mrb[146].mxu0 }
 0x423   : > { %2231 = vxpose.xlu0.b32.cont [4/16] (narrow) %v2020_v25, 16  ;;  %v2022_v17 = vpop.f32.mrb[147].mxu0 }
 0x426   : > { %v2025_v6 = vpop.f32.mrb[148].mxu0 }
 0x427   : > { %2232 = vxpose.xlu0.b32.cont [5/16] (narrow) %v2025_v6, 16  ;;  %v2027_v30 = vpop.f32.mrb[149].mxu0 }
 0x42a   : > { %v2030_v47 = vpop.f32.mrb[150].mxu0 }
 0x42b   : > { %2233 = vxpose.xlu0.b32.cont [6/16] (narrow) %v2030_v47, 16  ;;  %v2032_v56 = vpop.f32.mrb[151].mxu0 }
 0x42e   : > { %v2035_v29 = vpop.f32.mrb[152].mxu0 }
 0x42f   : > { %2234 = vxpose.xlu0.b32.cont [7/16] (narrow) %v2035_v29, 16  ;;  %v2037_v22 = vpop.f32.mrb[153].mxu0 }
 0x432   : > { %v2040_v28 = vpop.f32.mrb[154].mxu0 }
 0x433   : > { %2235 = vxpose.xlu0.b32.cont [8/16] (narrow) %v2040_v28, 16  ;;  %v2042_v54 = vpop.f32.mrb[155].mxu0 }
 0x436   : > { %v2045_v50 = vpop.f32.mrb[156].mxu0 }
 0x437   : > { %2236 = vxpose.xlu0.b32.cont [9/16] (narrow) %v2045_v50, 16  ;;  %v2047_v42 = vpop.f32.mrb[157].mxu0  ;;  %v4198_v50 = vmov 1  }
 0x438   : > { %v5135_v42 = vld [vmem:[%s5224_s7] sm:$0xff] }
 0x43a   : > { %v2050_v58 = vpop.f32.mrb[158].mxu0 }
 0x43b   : > { %2237 = vxpose.xlu0.b32.cont [10/16] (narrow) %v2050_v58, 16  ;;  %v2052_v37 = vpop.f32.mrb[159].mxu0  ;;  %v3905_v58 = vld [vmem:[%s5224_s7 + $0x8] sm:$0xff] }
 0x43e   : > { %v2055_v27 = vpop.f32.mrb[160].mxu0 }
 0x43f   : > { %2238 = vxpose.xlu0.b32.cont [11/16] (narrow) %v2055_v27, 16  ;;  %v2057_v53 = vpop.f32.mrb[161].mxu0 }
 0x442   : > { %v2060_v5 = vpop.f32.mrb[162].mxu0 }
 0x443   : > { %2239 = vxpose.xlu0.b32.cont [12/16] (narrow) %v2060_v5, 16  ;;  %v2062_v36 = vpop.f32.mrb[163].mxu0 }
 0x446   : > { %v2065_v34 = vpop.f32.mrb[164].mxu0 }
 0x447   : > { %2240 = vxpose.xlu0.b32.cont [13/16] (narrow) %v2065_v34, 16  ;;  %v2067_v1 = vpop.f32.mrb[165].mxu0 }
 0x44a   : > { %v2070_v43 = vpop.f32.mrb[166].mxu0 }
 0x44b   : > { %2241 = vxpose.xlu0.b32.cont [14/16] (narrow) %v2070_v43, 16  ;;  %v2072_v20 = vpop.f32.mrb[167].mxu0 }
 0x44e   : > { %v2075_v12 = vpop.f32.mrb[168].mxu0 }
 0x44f   : > { %2242 = vxpose.xlu0.b32.cont [15/16] (narrow) %v2075_v12, 16  ;;  %v2077_v44 = vpop.f32.mrb[169].mxu0 }
 0x452   : > { %v2080_v38 = vpop.f32.mrb[170].mxu0 }
 0x453   : > { %2243 = vxpose.xlu0.b32.end [16/16] (narrow) %v2080_v38, 16  ;;  %v2082_v63 = vpop.f32.mrb[171].mxu0 }
 0x456   : > { %v2085_v32 = vpop.f32.mrb[172].mxu0 }
 0x457   : > { %v2212_v59 = vpop.trf.xlu1  ;;  %2260 = vxpose.xlu1.b32.start [1/16] (narrow) %v2085_v32, 16  ;;  %v2087_v23 = vpop.f32.mrb[173].mxu0 }
 0x458   : > { %v2305_v14 = vadd.f32 %v5117_v24, %v2212_v59 }
 0x45a   : > { %v2090_v52 = vpop.f32.mrb[174].mxu0 }
 0x45b   : > { %v2213_v46 = vpop.trf.xlu1  ;;  %2261 = vxpose.xlu1.b32.cont [2/16] (narrow) %v2090_v52, 16  ;;  %v2092_v57 = vpop.f32.mrb[175].mxu0 }
 0x45c   : > { %v2309_v48 = vadd.f32 %v5119_v16, %v2213_v46 }
 0x45e   : > { %v3196_v13 = vpack.c.bf16 %v2309_v48, %v2305_v14  ;;  %v2095_v8 = vpop.f32.mrb[176].mxu0  ;;  %v2492_v48 = vld [vmem:[#allocation13 + $0x10] sm:$0xff] }
 0x45f   : > { %2262 = vxpose.xlu1.b32.cont [3/16] (narrow) %v2095_v8, 16  ;;  %v2097_v51 = vpop.f32.mrb[177].mxu0 }
 0x460   : > { %3197 = vmatprep.subr.bf16.mxu1 %v3196_v13  ;;  %v4199_v13 = vmov 2  }
 0x461   : > { %3199 = vmatpush1.bf16.msra.mxu1 %v3198_v33  ;;  %v2493_v33 = vld [vmem:[#allocation13 + $0x18] sm:$0xff] }
 0x462   : > { %v2100_v3 = vpop.f32.mrb[178].mxu0 }
 0x463   : > { %2263 = vxpose.xlu1.b32.cont [4/16] (narrow) %v2100_v3, 16  ;;  %v2102_v9 = vpop.f32.mrb[179].mxu0 }
 0x464   : > { %3033 = vmatmul.mubr.msk.f32.vlgmr.msra.gmra.mrb[180].mxu1 %vm2322_vm0, %v5125_v2 }
 0x465   : > { %2399 = vmatprep.mubr.f32.mxu1 %v5275_v45 }
 0x466   : > { %v2105_v10 = vpop.f32.mrb[180].mxu0 }
 0x467   : > { %2264 = vxpose.xlu1.b32.cont [5/16] (narrow) %v2105_v10, 16  ;;  %v2107_v41 = vpop.f32.mrb[181].mxu0 }
 0x468   : > { %3034 = vmatmul.mubr.msk.f32.gmra.mrb[182].mxu1 %vm2322_vm0, %v2313_v62 }
 0x469   : > { %2470 = vmatprep.mubr.f32.mxu1 %v5275_v45 }
 0x46a   : > { %v2110_v55 = vpop.f32.mrb[182].mxu0 }
 0x46b   : > { %2265 = vxpose.xlu1.b32.cont [6/16] (narrow) %v2110_v55, 16  ;;  %v2112_v60 = vpop.f32.mrb[183].mxu0 }
 0x46e   : > { %v2115_v7 = vpop.f32.mrb[184].mxu0 }
 0x46f   : > { %2266 = vxpose.xlu1.b32.cont [7/16] (narrow) %v2115_v7, 16  ;;  %v2117_v19 = vpop.f32.mrb[185].mxu0 }
 0x472   : > { %v2120_v18 = vpop.f32.mrb[186].mxu0 }
 0x473   : > { %2267 = vxpose.xlu1.b32.cont [8/16] (narrow) %v2120_v18, 16  ;;  %v2122_v26 = vpop.f32.mrb[187].mxu0 }
 0x476   : > { %v2125_v4 = vpop.f32.mrb[188].mxu0 }
 0x477   : > { %2268 = vxpose.xlu1.b32.cont [9/16] (narrow) %v2125_v4, 16  ;;  %v2127_v31 = vpop.f32.mrb[189].mxu0 }
 0x47a   : > { %v2130_v11 = vpop.f32.mrb[190].mxu0 }
 0x47b   : > { %2269 = vxpose.xlu1.b32.cont [10/16] (narrow) %v2130_v11, 16  ;;  %v2132_v15 = vpop.f32.mrb[191].mxu0 }
 0x47c   : > { %3356 = vset.pattern.permute.xlu0 %v4199_v13 }
 0x47d   : > { %2495 = vperm.xlu0 %3356, %v5135_v42  }
 0x47e   : > { %v2135_v61 = vpop.f32.mrb[192].mxu0 }
 0x47f   : > { %2270 = vxpose.xlu1.b32.cont [11/16] (narrow) %v2135_v61, 16  ;;  %v2137_v35 = vpop.f32.mrb[193].mxu0 }
 0x482   : > { %v2140_v25 = vpop.f32.mrb[194].mxu0 }
 0x483   : > { %2271 = vxpose.xlu1.b32.cont [12/16] (narrow) %v2140_v25, 16  ;;  %v2142_v17 = vpop.f32.mrb[195].mxu0 }
 0x486   : > { %v2145_v6 = vpop.f32.mrb[196].mxu0 }
 0x487   : > { %2272 = vxpose.xlu1.b32.cont [13/16] (narrow) %v2145_v6, 16  ;;  %v2147_v30 = vpop.f32.mrb[197].mxu0 }
 0x48a   : > { %v2150_v47 = vpop.f32.mrb[198].mxu0 }
 0x48b   : > { %2273 = vxpose.xlu1.b32.cont [14/16] (narrow) %v2150_v47, 16  ;;  %v2152_v56 = vpop.f32.mrb[199].mxu0 }
 0x48e   : > { %v2155_v29 = vpop.f32.mrb[200].mxu0 }
 0x48f   : > { %2274 = vxpose.xlu1.b32.cont [15/16] (narrow) %v2155_v29, 16  ;;  %v2157_v22 = vpop.f32.mrb[201].mxu0 }
 0x492   : > { %v2160_v28 = vpop.f32.mrb[202].mxu0 }
 0x493   : > { %2275 = vxpose.xlu1.b32.end [16/16] (narrow) %v2160_v28, 16  ;;  %v2162_v54 = vpop.f32.mrb[203].mxu0 }
 0x497   : > { %v2244_v37 = vpop.trf.xlu0 }
 0x498   : > { %v2306_v43 = vadd.f32 %v5117_v24, %v2244_v37  ;;  %v4200_v37 = vmov 3  }
 0x499   : > { %3359 = vset.pattern.permute.xlu0 %v4200_v37 }
 0x49b   : > { %v2245_v53 = vpop.trf.xlu0 }
 0x49c   : > { %v2310_v5 = vadd.f32 %v5119_v16, %v2245_v53 }
 0x49e   : > { %v3202_v12 = vpack.c.bf16 %v2310_v5, %v2306_v43 }
 0x4b1   : > { %3355 = vset.pattern.permute.xlu1 %v4198_v50  ;;  %v2671_v50 = vld [vmem:[#allocation13 + $0x20] sm:$0xff] }
 0x4b2   : > { %2315 = vperm.xlu1 %3355, %v5135_v42  }
 0x4b6   : > { %2319 = vperm.xlu1 %3355, %v3905_v58  }
 0x4ba   : > { %3357 = vset.pattern.permute.xlu1 %v4199_v13 }
 0x4bb   : > { %2499 = vperm.xlu1 %3357, %v3905_v58   ;;  %v2672_v58 = vld [vmem:[#allocation13 + $0x28] sm:$0xff] }
 0x4bf   : > { %3358 = vset.pattern.permute.xlu1 %v4200_v37 }
 0x4c0   : > { %2674 = vperm.xlu1 %3358, %v5135_v42  }
 0x4d7   : > { %v2276_v27 = vpop.trf.xlu1 }
 0x4d8   : > { %v2307_v34 = vadd.f32 %v5117_v24, %v2276_v27 }
 0x4db   : > { %v2277_v36 = vpop.trf.xlu1 }
 0x4dc   : > { %v2311_v1 = vadd.f32 %v5119_v16, %v2277_v36 }
 0x4de   : > { %v3200_v20 = vpack.c.bf16 %v2311_v1, %v2307_v34 }
 0x4e0   : > { %3201 = vmatprep.subr.bf16.mxu1 %v3200_v20 }
 0x4e1   : > { %3203 = vmatpush1.bf16.msra.mxu1 %v3202_v12 }
 0x4e4   : > { %3035 = vmatmul.mubr.msk.f32.vlgmr.msra.gmra.mrb[184].mxu1 %vm2322_vm0, %v5125_v2 }
 0x4e5   : > { %2476 = vmatprep.mubr.f32.mxu1 %v5275_v45 }
 0x4e8   : > { %3036 = vmatmul.mubr.msk.f32.gmra.mrb[186].mxu1 %vm2322_vm0, %v2313_v62 }
 0x4e9   : > { %2572 = vmatprep.mubr.f32.mxu1 %v5275_v45 }
 0x4fc   : > { %v2496_v4 = vpop.permute.xlu0 %2495 }
 0x531   : > { %v2316_v44 = vpop.permute.xlu1 %2315 }
 0x535   : > { %v2320_v49 = vpop.permute.xlu1 %2319 }
 0x537   : > { %v2395_v40 = vpop.f32.mrb[180].mxu1 }
 0x538   : > { %v2396_v38 = vadd.f32 %v2395_v40, %v2316_v44  ;;  %v2397_v63 = vpop.f32.mrb[181].mxu1 }
 0x539   : > { %v2398_v16 = vadd.f32 %v2397_v63, %v2316_v44 }
 0x53a   : > { %3872 = vtanh.f32 %v2396_v38  ;;  %v2500_v35 = vpop.permute.xlu1 %2499 }
 0x53b   : > { %v2401_v24 = vpop.f32.mrb[182].mxu1  ;;  %3874 = vtanh.f32 %v2398_v16 }
 0x53c   : > { %v2403_v32 = vpop.f32.mrb[183].mxu1  ;;  %v2402_v59 = vadd.f32 %v2401_v24, %v2320_v49 }
 0x53d   : > { %v2404_v23 = vadd.f32 %v2403_v32, %v2320_v49 }
 0x53e   : > { %3876 = vtanh.f32 %v2402_v59 }
 0x53f   : > { %3878 = vtanh.f32 %v2404_v23  ;;  %v2675_v42 = vpop.permute.xlu1 %2674 }
 0x544   : > { %v3873_v0 = vpop.eup %3872 }
 0x545   : > { %v3875_v39 = vpop.eup %3874 }
 0x548   : > { %v3877_v14 = vpop.eup %3876 }
 0x549   : > { %v3879_v52 = vpop.eup %3878  ;;  %v3206_v46 = vpack.c.bf16 %v3877_v14, %v3873_v0  ;;  %v4201_v14 = vmov 1966171168  }
 0x54a   : > { %v3204_v57 = vpack.c.bf16 %v3879_v52, %v3875_v39  ;;  %v2843_v52 = vunpack.c.l.s4 %v4201_v14 }
 0x54c   : > { %3205 = vmatprep.subr.bf16.mxu1 %v3204_v57 }
 0x54d   : > { %3207 = vmatpush1.bf16.msra.mxu1 %v3206_v46  ;;  %v2844_v46 = vunpack.c.0.s8 %v2843_v52 }
 0x550   : > { %3037 = vmatmul.mubr.msk.f32.vlgmr.msra.gmra.mrb[188].mxu1 %vm2322_vm0, %v2492_v48 }
 0x551   : > { %2578 = vmatprep.mubr.f32.mxu1 %v5275_v45 }
 0x554   : > { %3038 = vmatmul.mubr.msk.f32.gmra.mrb[190].mxu1 %vm2322_vm0, %v2493_v33 }
 0x555   : > { %2649 = vmatprep.mubr.f32.mxu1 %v5275_v45 }
 0x5b7   : > { %v2472_v8 = vpop.f32.mrb[184].mxu1 }
 0x5b8   : > { %v2473_v51 = vadd.f32 %v2472_v8, %v2316_v44  ;;  %v2474_v2 = vpop.f32.mrb[185].mxu1 }
 0x5b9   : > { %v2475_v3 = vadd.f32 %v2474_v2, %v2316_v44 }
 0x5ba   : > { %3880 = vtanh.f32 %v2473_v51 }
 0x5bb   : > { %v2478_v9 = vpop.f32.mrb[186].mxu1  ;;  %3882 = vtanh.f32 %v2475_v3 }
 0x5bc   : > { %v2479_v62 = vadd.f32 %v2478_v9, %v2320_v49  ;;  %v2480_v10 = vpop.f32.mrb[187].mxu1 }
 0x5bd   : > { %v2481_v41 = vadd.f32 %v2480_v10, %v2320_v49  ;;  %v5276_v10 = vlaneseq }
 0x5be   : > { %3884 = vtanh.f32 %v2479_v62 }
 0x5bf   : > { %3886 = vtanh.f32 %v2481_v41  ;;  %vm2867_vm1 = vcmp.lt.s32.totalorder %v5276_v10, 512 }
 0x5c4   : > { %v3881_v55 = vpop.eup %3880 }
 0x5c5   : > { %v3883_v60 = vpop.eup %3882 }
 0x5c8   : > { %v3885_v7 = vpop.eup %3884 }
 0x5c9   : > { %v3887_v19 = vpop.eup %3886  ;;  %v3210_v18 = vpack.c.bf16 %v3885_v7, %v3881_v55 }
 0x5ca   : > { %v3208_v26 = vpack.c.bf16 %v3887_v19, %v3883_v60 }
 0x5cc   : > { %3209 = vmatprep.subr.bf16.mxu1 %v3208_v26 }
 0x5cd   : > { %3211 = vmatpush1.bf16.msra.mxu1 %v3210_v18 }
 0x5d0   : > { %3039 = vmatmul.mubr.msk.f32.vlgmr.msra.gmra.mrb[192].mxu1 %vm2322_vm0, %v2492_v48 }
 0x5d1   : > { %2655 = vmatprep.mubr.f32.mxu1 %v5275_v45 }
 0x5d4   : > { %3040 = vmatmul.mubr.msk.f32.gmra.mrb[194].mxu1 %vm2322_vm0, %v2493_v33 }
 0x5d5   : > { %2750 = vmatprep.mubr.f32.mxu1 %v5275_v45 }
 0x623   : > { %v2574_v31 = vpop.f32.mrb[188].mxu1 }
 0x624   : > { %v2576_v11 = vpop.f32.mrb[189].mxu1  ;;  %v2575_v15 = vadd.f32 %v2574_v31, %v2496_v4 }
 0x625   : > { %v2577_v61 = vadd.f32 %v2576_v11, %v2496_v4 }
 0x626   : > { %3888 = vtanh.f32 %v2575_v15 }
 0x627   : > { %v2580_v25 = vpop.f32.mrb[190].mxu1  ;;  %3890 = vtanh.f32 %v2577_v61 }
 0x628   : > { %v2582_v17 = vpop.f32.mrb[191].mxu1  ;;  %v2581_v6 = vadd.f32 %v2580_v25, %v2500_v35 }
 0x629   : > { %v2583_v30 = vadd.f32 %v2582_v17, %v2500_v35 }
 0x62a   : > { %3892 = vtanh.f32 %v2581_v6 }
 0x62b   : > { %3894 = vtanh.f32 %v2583_v30 }
 0x630   : > { %v3889_v47 = vpop.eup %3888 }
 0x631   : > { %v3891_v56 = vpop.eup %3890 }
 0x634   : > { %v3893_v29 = vpop.eup %3892 }
 0x635   : > { %v3895_v22 = vpop.eup %3894  ;;  %v3214_v28 = vpack.c.bf16 %v3893_v29, %v3889_v47 }
 0x636   : > { %v3212_v54 = vpack.c.bf16 %v3895_v22, %v3891_v56 }
 0x638   : > { %3213 = vmatprep.subr.bf16.mxu1 %v3212_v54 }
 0x639   : > { %3215 = vmatpush1.bf16.msra.mxu1 %v3214_v28 }
 0x63c   : > { %3041 = vmatmul.mubr.msk.f32.vlgmr.msra.gmra.mrb[196].mxu1 %vm2322_vm0, %v2671_v50 }
 0x63d   : > { %2756 = vmatprep.mubr.f32.mxu1 %v5275_v45 }
 0x640   : > { %3042 = vmatmul.mubr.msk.f32.gmra.mrb[198].mxu1 %vm2322_vm0, %v2672_v58 }
 0x641   : > { %2825 = vmatprep.mubr.f32.mxu1 %v5275_v45 }
 0x6a3   : > { %v2651_v27 = vpop.f32.mrb[192].mxu1 }
 0x6a4   : > { %v2652_v53 = vadd.f32 %v2651_v27, %v2496_v4  ;;  %v2653_v5 = vpop.f32.mrb[193].mxu1 }
 0x6a5   : > { %v2654_v36 = vadd.f32 %v2653_v5, %v2496_v4 }
 0x6a6   : > { %3896 = vtanh.f32 %v2652_v53 }
 0x6a7   : > { %v2657_v34 = vpop.f32.mrb[194].mxu1  ;;  %3898 = vtanh.f32 %v2654_v36 }
 0x6a8   : > { %v2658_v1 = vadd.f32 %v2657_v34, %v2500_v35  ;;  %v2659_v43 = vpop.f32.mrb[195].mxu1 }
 0x6a9   : > { %v2660_v20 = vadd.f32 %v2659_v43, %v2500_v35 }
 0x6aa   : > { %3900 = vtanh.f32 %v2658_v1 }
 0x6ab   : > { %3902 = vtanh.f32 %v2660_v20 }
 0x6b0   : > { %v3897_v12 = vpop.eup %3896 }
 0x6b1   : > { %v3899_v44 = vpop.eup %3898 }
 0x6b4   : > { %v3901_v40 = vpop.eup %3900 }
 0x6b5   : > { %v3903_v38 = vpop.eup %3902  ;;  %v3218_v63 = vpack.c.bf16 %v3901_v40, %v3897_v12 }
 0x6b6   : > { %v3216_v16 = vpack.c.bf16 %v3903_v38, %v3899_v44 }
 0x6b8   : > { %3217 = vmatprep.subr.bf16.mxu1 %v3216_v16 }
 0x6b9   : > { %3219 = vmatpush1.bf16.msra.mxu1 %v3218_v63 }
 0x6bc   : > { %3043 = vmatmul.mubr.msk.f32.vlgmr.msra.gmra.mrb[200].mxu1 %vm2322_vm0, %v2671_v50 }
 0x6bd   : > { %2831 = vmatprep.mubr.f32.mxu1 %v5275_v45  ;;  %v2847_v45 = vsub.s32 %v2844_v46, %v4662_v21 }
 0x6c0   : > { %3044 = vmatmul.mubr.msk.f32.gmra.mrb[202].mxu1 %vm2322_vm0, %v2672_v58 }
 0x70f   : > { %v2752_v49 = vpop.f32.mrb[196].mxu1 }
 0x710   : > { %v2754_v24 = vpop.f32.mrb[197].mxu1  ;;  %v2753_v32 = vadd.f32 %v2752_v49, %v2675_v42 }
 0x711   : > { %v2755_v59 = vadd.f32 %v2754_v24, %v2675_v42 }
 0x713   : > { %v2758_v23 = vpop.f32.mrb[198].mxu1  ;;  %v2840_v0 = vcombine.low %v2753_v32, %v2755_v59 }
 0x714   : > { %v2759_v39 = vpop.f32.mrb[199].mxu1 }
 0x715   : > { %v2848_v3 = vrot.slane %v2840_v0, %v2847_v45 }
 0x78f   : > { %v2827_v57 = vpop.f32.mrb[200].mxu1 }
 0x790   : > { %v2829_v48 = vpop.f32.mrb[201].mxu1  ;;  %v2828_v33 = vadd.f32 %v2827_v57, %v2675_v42 }
 0x791   : > { %v2830_v13 = vadd.f32 %v2829_v48, %v2675_v42 }
 0x793   : > { %v2841_v8 = vcombine.low %v2828_v33, %v2830_v13  ;;  %v2833_v51 = vpop.f32.mrb[202].mxu1 }
 0x794   : > { %v2834_v2 = vpop.f32.mrb[203].mxu1 }
 0x795   : > { %v2855_v9 = vrot.slane %v2841_v8, %v2847_v45 }
 0x797   : > { %v2856_v62 = vcombine.low %v2848_v3, %v2855_v9 }
 0x799   : > { %v2863_v41 = vrot.slane %v2856_v62, %v2847_v45 }
 0x79b   : > { %2869 = vst.msk [vmem:[%s406_s21] sm:$0xf] %vm2867_vm1, %v2863_v41 }
 0x79c   : > { %4117 = shalt.err (!%p4114_p7)
}
 0x79d   : > { %s4118_s24 = scalar_lea.hbm %s5174_s12, 64  ;;  %s4122_s14 = scalar_lea.hbm %s5225_s8, 512 }
 0x79e   : > { %p4119_p9 = scmp.ne.s32.totalorder %s5174_s12, %s4118_s24  ;;  %p4123_p0 = scmp.lt.u32.totalorder %s5174_s12, %s5225_s8 }
 0x79f   : > { %p4124_p4 = scmp.lt.u32.totalorder %s4122_s14, %s4118_s24  ;;  %p4126_p5 = scmp.lt.u32.totalorder %s4118_s24, %s5174_s12 }
 0x7a0   : > { %p4120_p10 = pnand %p4119_p9, %p5277_p8 }
 0x7a1   : > { %p4125_p6 = por %p4124_p4, %p4123_p0 }
 0x7a2   : > { %p4121_p11 = pneg %p4120_p10 }
 0x7a3   : > { %p4127_p12 = por %p4126_p5, %p4125_p6 }
 0x7a5   : > { %p4128_p13 = pnand %p4127_p12, %p4121_p11 }
 0x7a7   : > { %4131 = shalt.err (!%p4128_p13)
}
 0x7a8   : > { %3262 = dma.vmem_to_hbm [thread:$0]  (%p5277_p8), %s5176_s16, 64, %s5174_s12, %s2871_s9  }
 0x7a9 PF: > { %p3304_p1 = scmp.ge.s32.totalorder %s4182_s30, 2  ;;  %s2897_s21 = sand.u32 1, %s4170_s27  }
 0x7aa   : > { %p5278_p3 = scmp.ne.s32.totalorder %s5247_s18, 0  ;;  %s2898_s26 = scalar_lea.sflag [#allocation4], %s2897_s21 }
 0x7ac   : > { %p3288_p2 = pnand %p3304_p1, %p5278_p3 }
 0x7ae   : > { %4165 = dma.done.wait (!%p3288_p2), %s2898_s26, 64  }
 0x7af   : > { %4167 = vsyncadd (!%p3288_p2), %s2898_s26, 4294967232  ;;  %p24_p7 = scmp.ge.s32.totalorder %s4429_s23, 10   ;;  %s5279_s27 = smov %s4174_s28 }
 0x7b0   : > { %s5280_s28 = smov %s4178_s29  ;;  %s5281_s29 = smov %s4440_s17 }
 0x7b1   : > { %s5282_s30 = smov %s4429_s23  ;;  %26 = sbr.rel (!%p24_p7) target bundleno = 11 (0xb), region = 123 }
 0x7b8   :  { %2903 = vsyncpa [#allocation3], 1 }
 0x7b9   :  { %2905 = vsyncpa [#allocation3 + $0x1], 1 }
 0x7ba   :  { %2906 = vsyncpa [#allocation6], 1 }
 0x7bb   :  { %2907 = vsyncpa [#allocation9], 1 }
 0x7bc   :  { %2908 = vsyncpa [#allocation12], 1 }
 0x7bd   :  { %2909 = vsyncpa [#allocation4], 1 }
 0x7be   :  { %2911 = vsyncpa [#allocation4 + $0x1], 1 }

</bundles_post_ra>
